<compile_context>
chip_gen: v6e
topology: v6e:2x2x1
jax: 0.10.0
libtpu: 0.0.40
codegen_flags: <defaults>
</compile_context>

<pallas_src>
import functools

import jax
import jax.numpy as jnp
from jax.experimental import pallas as pl
from jax.experimental.pallas import tpu as pltpu

_BN_EPS = 1e-5


# ----------------------------------------------------------------------------
# In-kernel helpers (traced inside the Pallas body).
# ----------------------------------------------------------------------------
def _bn_relu(acc, s_ref, b_ref):
    # acc: (M, C) f32 bias-free conv output; folded BN affine + ReLU, all f32.
    return jnp.maximum(acc * s_ref[...] + b_ref[...], 0.0)


def _maxpool2x2(y):
    # y: (nb, h, w, C) f32 with h, w even.  C stays in the lane dim throughout;
    # row-pair max needs no relayout, column-pair max is a sublane-pair select.
    nb, h, w, c = y.shape
    yr = y.reshape(nb * h // 2, 2, w, c)                 # leading-dim regroup
    y = jnp.maximum(yr[:, 0, :, :], yr[:, 1, :, :])      # pool row pairs
    yr = y.reshape(nb * h // 2, w // 2, 2, c)            # sublane pair grouping
    y = jnp.maximum(yr[:, :, 0, :], yr[:, :, 1, :])      # pool column pairs
    return y.reshape(nb, h // 2, w // 2, c)


def _pad_hw_bf16(y):
    # Zero-pad H and W by 1 and cast once to bf16 (the MXU operand dtype).
    nb, h, w, c = y.shape
    zc = jnp.zeros((nb, h, 1, c), jnp.float32)
    y = jnp.concatenate([zc, y, zc], axis=2)
    zr = jnp.zeros((nb, 1, w + 2, c), jnp.float32)
    y = jnp.concatenate([zr, y, zr], axis=1)
    return y.astype(jnp.bfloat16)


def _conv3x3_bn_relu(y, w_ref, s_ref, b_ref):
    # y: (nb, h, w, cin) f32.  9 accumulating MXU matmuls (K = cin) from shifted
    # views of the padded bf16 activation -- no materialized im2col buffer.
    nb, h, w, cin = y.shape
    cout = w_ref.shape[-1]
    yp = _pad_hw_bf16(y)
    acc = jnp.zeros((nb * h * w, cout), jnp.float32)
    for t in range(9):
        dy, dx = divmod(t, 3)
        patch = yp[:, dy:dy + h, dx:dx + w, :].reshape(nb * h * w, cin)
        acc = acc + jnp.dot(patch, w_ref[t], preferred_element_type=jnp.float32)
    return _bn_relu(acc, s_ref, b_ref).reshape(nb, h, w, cout)


# ----------------------------------------------------------------------------
# Fused kernel: whole network for one batch block; weights resident in VMEM.
# ----------------------------------------------------------------------------
def _rail_angle_fused_kernel(
    col1_ref,                    # (nb*H*W, 9) bf16: wrapper-packed stage-1 im2col
    w1_ref, s1_ref, b1_ref,      # (9, 32)      bf16, (1, 32)  f32, (1, 32)  f32
    w2_ref, s2_ref, b2_ref,      # (9, 32, 64)  bf16, (1, 64),  (1, 64)
    w3_ref, s3_ref, b3_ref,      # (9, 64, 128) bf16, (1, 128), (1, 128)
    w4_ref, s4_ref, b4_ref,      # (9, 128, 256) bf16, (1, 256), (1, 256)
    fw1_ref, fb1_ref,            # (256, 512) bf16, (1, 512) f32
    fw2_ref, fb2_ref,            # (512, NCp) bf16, (1, NCp) f32
    o_ref,                       # (nb, 1, NCp) f32
    *, nb, h, w,
):
    f32, bf16 = jnp.float32, jnp.bfloat16
    c1 = w1_ref.shape[-1]

    # ---- Stage 1: Conv(1->32)+BN+ReLU+MaxPool2 as one MXU matmul (K = 9). ----
    y = jnp.dot(col1_ref[...], w1_ref[...], preferred_element_type=f32)
    y = _bn_relu(y, s1_ref, b1_ref).reshape(nb, h, w, c1)
    y = _maxpool2x2(y)

    # ---- Stage 2: Conv(32->64)+BN+ReLU+MaxPool2. ----
    y = _maxpool2x2(_conv3x3_bn_relu(y, w2_ref, s2_ref, b2_ref))
    # ---- Stage 3: Conv(64->128)+BN+ReLU+MaxPool2. ----
    y = _maxpool2x2(_conv3x3_bn_relu(y, w3_ref, s3_ref, b3_ref))
    # ---- Stage 4: Conv(128->256)+BN+ReLU. ----
    y = _conv3x3_bn_relu(y, w4_ref, s4_ref, b4_ref)

    # ---- AdaptiveAvgPool2d((1,1)): global mean over spatial dims. ----
    nbb, h4, w4, c4 = y.shape
    feat = jnp.mean(y.reshape(nbb, h4 * w4, c4), axis=1)            # (nb, 256) f32

    # ---- FC head: Linear(256,512) -> ReLU -> Dropout -> Linear(512, NC). ----
    # TODO(synk): Dropout(0.5) is training-mode only; eval-mode forward is identity.
    hfc = jnp.dot(feat.astype(bf16), fw1_ref[...],
                  preferred_element_type=f32) + fb1_ref[...]
    hfc = jnp.maximum(hfc, 0.0)
    logits = jnp.dot(hfc.astype(bf16), fw2_ref[...],
                     preferred_element_type=f32) + fb2_ref[...]
    o_ref[...] = logits.reshape(nb, 1, -1)


# ----------------------------------------------------------------------------
# Wrapper: fold BN, pack weights, pick batch block, one batch-parallel call.
# ----------------------------------------------------------------------------
def _fold_bn(conv):
    """Fold conv bias + BatchNorm (running stats, eval) into scale/bias."""
    inv = conv["gamma"] * jax.lax.rsqrt(conv["var"] + _BN_EPS)
    scale = inv.reshape(1, -1).astype(jnp.float32)
    bias = (conv["beta"] + (conv["bias"] - conv["mean"]) * inv).reshape(1, -1)
    return scale, bias.astype(jnp.float32)


def _pick_batch_block(n, hw):
    # >= 2 grid steps whenever N >= 2 (use both v7x TensorCores) while keeping
    # the per-step matmul M (= nb*hw at stage 1) and VMEM footprint bounded.
    cap = max(1, min(n // 2 if n > 1 else 1, 8, 65536 // max(hw, 1)))
    nb = 1
    for d in range(1, n + 1):
        if n % d == 0 and d <= cap:
            nb = d
    return nb


def _resident_spec(a):
    # Whole array resident in VMEM (constant block index across the grid).
    zeros = (0,) * a.ndim
    return pl.BlockSpec(a.shape, lambda b, _z=zeros: _z)


@jax.jit
def rail_angle_cnn_forward(x_nchw, params):
    N, cin, H, W = x_nchw.shape
    assert cin == 1 and H % 8 == 0 and W % 8 == 0, (cin, H, W)
    x = x_nchw[:, 0, :, :].astype(jnp.float32)                       # (N, H, W)

    # Stage-1 im2col done in the wrapper (9x the tiny 1-channel input) so the
    # kernel's first op is a single MXU matmul instead of trailing-dim-1
    # broadcasts.  All other stages stay fully inside the kernel.
    xp = jnp.pad(x, ((0, 0), (1, 1), (1, 1)))
    taps = [xp[:, dy:dy + H, dx:dx + W] for dy in range(3) for dx in range(3)]
    col1 = jnp.stack(taps, axis=-1).reshape(N * H * W, 9).astype(jnp.bfloat16)

    c = [params[f"conv{i}"] for i in range(4)]
    s1, b1 = _fold_bn(c[0])
    s2, b2 = _fold_bn(c[1])
    s3, b3 = _fold_bn(c[2])
    s4, b4 = _fold_bn(c[3])
    w1 = c[0]["w"].reshape(9, -1).astype(jnp.bfloat16)               # (9, 32)
    w2 = c[1]["w"].reshape(9, c[1]["w"].shape[2], -1).astype(jnp.bfloat16)
    w3 = c[2]["w"].reshape(9, c[2]["w"].shape[2], -1).astype(jnp.bfloat16)
    w4 = c[3]["w"].reshape(9, c[3]["w"].shape[2], -1).astype(jnp.bfloat16)

    fc = params["fc"]
    nc = fc["w2"].shape[1]
    ncp = ((nc + 127) // 128) * 128        # pad classes -> lane-dense output store
    fw1 = fc["w1"].astype(jnp.bfloat16)
    fb1 = fc["b1"].reshape(1, -1).astype(jnp.float32)
    fw2 = jnp.pad(fc["w2"], ((0, 0), (0, ncp - nc))).astype(jnp.bfloat16)
    fb2 = jnp.pad(fc["b2"], (0, ncp - nc)).reshape(1, -1).astype(jnp.float32)

    nb = _pick_batch_block(N, H * W)
    weights = (w1, s1, b1, w2, s2, b2, w3, s3, b3, w4, s4, b4,
               fw1, fb1, fw2, fb2)

    out = pl.pallas_call(
        functools.partial(_rail_angle_fused_kernel, nb=nb, h=H, w=W),
        out_shape=jax.ShapeDtypeStruct((N, 1, ncp), jnp.float32),
        grid=(N // nb,),
        in_specs=[pl.BlockSpec((nb * H * W, 9), lambda b: (b, 0))]
        + [_resident_spec(a) for a in weights],
        out_specs=pl.BlockSpec((nb, 1, ncp), lambda b: (b, 0, 0)),
        compiler_params=pltpu.CompilerParams(
            dimension_semantics=("parallel",),
            vmem_limit_bytes=64 * 1024 * 1024),
    )(col1, *weights)
    return out[:, 0, :nc]


# ----------------------------------------------------------------------------
# Deterministic synthetic parameters (HWIO conv weights, eval-mode BN stats).
# ----------------------------------------------------------------------------
def init_params(key, num_classes=180):
    params = {}
    chans = [(1, 32), (32, 64), (64, 128), (128, 256)]
    for i, (ci, co) in enumerate(chans):
        key, kw, kb, kg, kbe, km, kv = jax.random.split(key, 7)
        params[f"conv{i}"] = dict(
            w=0.05 * jax.random.normal(kw, (3, 3, ci, co), jnp.float32),   # HWIO
            bias=0.05 * jax.random.normal(kb, (co,), jnp.float32),
            gamma=1.0 + 0.1 * jax.random.normal(kg, (co,), jnp.float32),
            beta=0.1 * jax.random.normal(kbe, (co,), jnp.float32),
            mean=0.1 * jax.random.normal(km, (co,), jnp.float32),
            var=jax.random.uniform(kv, (co,), jnp.float32, 0.5, 1.5),
        )
    key, k1, k2, k3, k4 = jax.random.split(key, 5)
    params["fc"] = dict(
        w1=0.05 * jax.random.normal(k1, (256, 512), jnp.float32),
        b1=0.05 * jax.random.normal(k2, (512,), jnp.float32),
        w2=0.05 * jax.random.normal(k3, (512, num_classes), jnp.float32),
        b2=0.05 * jax.random.normal(k4, (num_classes,), jnp.float32),
    )
    return params


if __name__ == "__main__":
    key = jax.random.PRNGKey(0)
    kx, kp = jax.random.split(key)
    # Small input consistent with the module: batch=2, 1 channel, 16x16 spatial.
    x = jax.random.normal(kx, (2, 1, 16, 16), jnp.float32)
    params = init_params(kp, num_classes=180)

    out = rail_angle_cnn_forward(x, params)
    out = jax.block_until_ready(out)
    assert out.shape == (2, 180), out.shape
    assert bool(jnp.all(jnp.isfinite(out)))
    print("KERNEL_OK")
</pallas_src>

<mosaic_0001>
module attributes {stable_mosaic.version = 11 : i64} {
  func.func @_rail_angle_fused_kernel(%arg0: i32, %arg1: memref<256x9xbf16, #tpu.memory_space<vmem>>, %arg2: memref<9x32xbf16, #tpu.memory_space<vmem>>, %arg3: memref<1x32xf32, #tpu.memory_space<vmem>>, %arg4: memref<1x32xf32, #tpu.memory_space<vmem>>, %arg5: memref<9x32x64xbf16, #tpu.memory_space<vmem>>, %arg6: memref<1x64xf32, #tpu.memory_space<vmem>>, %arg7: memref<1x64xf32, #tpu.memory_space<vmem>>, %arg8: memref<9x64x128xbf16, #tpu.memory_space<vmem>>, %arg9: memref<1x128xf32, #tpu.memory_space<vmem>>, %arg10: memref<1x128xf32, #tpu.memory_space<vmem>>, %arg11: memref<9x128x256xbf16, #tpu.memory_space<vmem>>, %arg12: memref<1x256xf32, #tpu.memory_space<vmem>>, %arg13: memref<1x256xf32, #tpu.memory_space<vmem>>, %arg14: memref<256x512xbf16, #tpu.memory_space<vmem>>, %arg15: memref<1x512xf32, #tpu.memory_space<vmem>>, %arg16: memref<512x256xbf16, #tpu.memory_space<vmem>>, %arg17: memref<1x256xf32, #tpu.memory_space<vmem>>, %arg18: memref<1x1x256xf32, #tpu.memory_space<vmem>>) attributes {dimension_semantics = [#tpu.dimension_semantics<parallel>], iteration_bounds = array<i64: 2>, scalar_prefetch = 0 : i64, scratch_operands = 0 : i64, tpu.core_type = #tpu.core_type<tc>, window_params = [{transform_indices = @transform_0, window_bounds = array<i64: 256, 9>}, {pipeline_mode = #tpu.pipeline_mode<synchronous>, transform_indices = @transform_1, window_bounds = array<i64: 9, 32>}, {pipeline_mode = #tpu.pipeline_mode<synchronous>, transform_indices = @transform_2, window_bounds = array<i64: 1, 32>}, {pipeline_mode = #tpu.pipeline_mode<synchronous>, transform_indices = @transform_3, window_bounds = array<i64: 1, 32>}, {pipeline_mode = #tpu.pipeline_mode<synchronous>, transform_indices = @transform_4, window_bounds = array<i64: 9, 32, 64>}, {pipeline_mode = #tpu.pipeline_mode<synchronous>, transform_indices = @transform_5, window_bounds = array<i64: 1, 64>}, {pipeline_mode = #tpu.pipeline_mode<synchronous>, transform_indices = @transform_6, window_bounds = array<i64: 1, 64>}, {pipeline_mode = #tpu.pipeline_mode<synchronous>, transform_indices = @transform_7, window_bounds = array<i64: 9, 64, 128>}, {pipeline_mode = #tpu.pipeline_mode<synchronous>, transform_indices = @transform_8, window_bounds = array<i64: 1, 128>}, {pipeline_mode = #tpu.pipeline_mode<synchronous>, transform_indices = @transform_9, window_bounds = array<i64: 1, 128>}, {pipeline_mode = #tpu.pipeline_mode<synchronous>, transform_indices = @transform_10, window_bounds = array<i64: 9, 128, 256>}, {pipeline_mode = #tpu.pipeline_mode<synchronous>, transform_indices = @transform_11, window_bounds = array<i64: 1, 256>}, {pipeline_mode = #tpu.pipeline_mode<synchronous>, transform_indices = @transform_12, window_bounds = array<i64: 1, 256>}, {pipeline_mode = #tpu.pipeline_mode<synchronous>, transform_indices = @transform_13, window_bounds = array<i64: 256, 512>}, {pipeline_mode = #tpu.pipeline_mode<synchronous>, transform_indices = @transform_14, window_bounds = array<i64: 1, 512>}, {pipeline_mode = #tpu.pipeline_mode<synchronous>, transform_indices = @transform_15, window_bounds = array<i64: 512, 256>}, {pipeline_mode = #tpu.pipeline_mode<synchronous>, transform_indices = @transform_16, window_bounds = array<i64: 1, 256>}, {transform_indices = @transform_17, window_bounds = array<i64: 1, 1, 256>}]} {
    %c0 = arith.constant 0 : index
    %c0_0 = arith.constant 0 : index
    %0 = vector.load %arg1[%c0, %c0_0] : memref<256x9xbf16, #tpu.memory_space<vmem>>, vector<256x9xbf16>
    %c0_1 = arith.constant 0 : index
    %c0_2 = arith.constant 0 : index
    %1 = vector.load %arg2[%c0_1, %c0_2] : memref<9x32xbf16, #tpu.memory_space<vmem>>, vector<9x32xbf16>
    %cst = arith.constant dense<0.000000e+00> : vector<256x32xf32>
    %2 = tpu.matmul %0, %1, %cst {dimension_numbers = #tpu.dot_dimension_numbers<[1], [0], [0], [1], [0, 0, 1, 1], [], []>} : vector<256x9xbf16>, vector<9x32xbf16>, vector<256x32xf32> -> vector<256x32xf32>
    %c0_3 = arith.constant 0 : index
    %c0_4 = arith.constant 0 : index
    %3 = vector.load %arg3[%c0_3, %c0_4] : memref<1x32xf32, #tpu.memory_space<vmem>>, vector<1x32xf32>
    %4 = vector.broadcast %3 : vector<1x32xf32> to vector<256x32xf32>
    %5 = arith.mulf %2, %4 : vector<256x32xf32>
    %c0_5 = arith.constant 0 : index
    %c0_6 = arith.constant 0 : index
    %6 = vector.load %arg4[%c0_5, %c0_6] : memref<1x32xf32, #tpu.memory_space<vmem>>, vector<1x32xf32>
    %7 = vector.broadcast %6 : vector<1x32xf32> to vector<256x32xf32>
    %8 = arith.addf %5, %7 : vector<256x32xf32>
    %cst_7 = arith.constant 0.000000e+00 : f32
    %9 = vector.broadcast %cst_7 : f32 to vector<256x32xf32>
    %10 = arith.maximumf %8, %9 : vector<256x32xf32>
    %11 = vector.shape_cast %10 : vector<256x32xf32> to vector<1x16x16x32xf32>
    %12 = vector.shape_cast %11 : vector<1x16x16x32xf32> to vector<8x2x16x32xf32>
    %13 = vector.extract_strided_slice %12 {offsets = [0, 0, 0, 0], sizes = [8, 1, 16, 32], strides = [1, 1, 1, 1]} : vector<8x2x16x32xf32> to vector<8x1x16x32xf32>
    %14 = vector.shape_cast %13 : vector<8x1x16x32xf32> to vector<8x16x32xf32>
    %15 = vector.extract_strided_slice %12 {offsets = [0, 1, 0, 0], sizes = [8, 1, 16, 32], strides = [1, 1, 1, 1]} : vector<8x2x16x32xf32> to vector<8x1x16x32xf32>
    %16 = vector.shape_cast %15 : vector<8x1x16x32xf32> to vector<8x16x32xf32>
    %17 = arith.maximumf %14, %16 : vector<8x16x32xf32>
    %18 = vector.shape_cast %17 : vector<8x16x32xf32> to vector<8x8x2x32xf32>
    %19 = vector.extract_strided_slice %18 {offsets = [0, 0, 0, 0], sizes = [8, 8, 1, 32], strides = [1, 1, 1, 1]} : vector<8x8x2x32xf32> to vector<8x8x1x32xf32>
    %20 = vector.shape_cast %19 : vector<8x8x1x32xf32> to vector<8x8x32xf32>
    %21 = vector.extract_strided_slice %18 {offsets = [0, 0, 1, 0], sizes = [8, 8, 1, 32], strides = [1, 1, 1, 1]} : vector<8x8x2x32xf32> to vector<8x8x1x32xf32>
    %22 = vector.shape_cast %21 : vector<8x8x1x32xf32> to vector<8x8x32xf32>
    %23 = arith.maximumf %20, %22 : vector<8x8x32xf32>
    %24 = vector.shape_cast %23 : vector<8x8x32xf32> to vector<1x8x8x32xf32>
    %cst_8 = arith.constant 0.000000e+00 : f32
    %25 = vector.broadcast %cst_8 : f32 to vector<1x8x1x32xf32>
    %26 = tpu.concatenate %25, %24, %25 in 2 : vector<1x8x1x32xf32>, vector<1x8x8x32xf32>, vector<1x8x1x32xf32> -> vector<1x8x10x32xf32>
    %cst_9 = arith.constant 0.000000e+00 : f32
    %27 = vector.broadcast %cst_9 : f32 to vector<1x1x10x32xf32>
    %28 = tpu.concatenate %27, %26, %27 in 1 : vector<1x1x10x32xf32>, vector<1x8x10x32xf32>, vector<1x1x10x32xf32> -> vector<1x10x10x32xf32>
    %29 = arith.truncf %28 : vector<1x10x10x32xf32> to vector<1x10x10x32xbf16>
    %cst_10 = arith.constant 0.000000e+00 : f32
    %30 = vector.broadcast %cst_10 : f32 to vector<64x64xf32>
    %31 = vector.extract_strided_slice %29 {offsets = [0, 0, 0, 0], sizes = [1, 8, 8, 32], strides = [1, 1, 1, 1]} : vector<1x10x10x32xbf16> to vector<1x8x8x32xbf16>
    %32 = vector.shape_cast %31 : vector<1x8x8x32xbf16> to vector<64x32xbf16>
    %c0_11 = arith.constant 0 : index
    %c0_12 = arith.constant 0 : index
    %c0_13 = arith.constant 0 : index
    %33 = vector.load %arg5[%c0_11, %c0_12, %c0_13] : memref<9x32x64xbf16, #tpu.memory_space<vmem>>, vector<1x32x64xbf16>
    %34 = vector.shape_cast %33 : vector<1x32x64xbf16> to vector<32x64xbf16>
    %cst_14 = arith.constant dense<0.000000e+00> : vector<64x64xf32>
    %35 = tpu.matmul %32, %34, %cst_14 {dimension_numbers = #tpu.dot_dimension_numbers<[1], [0], [0], [1], [0, 0, 1, 1], [], []>} : vector<64x32xbf16>, vector<32x64xbf16>, vector<64x64xf32> -> vector<64x64xf32>
    %36 = arith.addf %30, %35 : vector<64x64xf32>
    %37 = vector.extract_strided_slice %29 {offsets = [0, 0, 1, 0], sizes = [1, 8, 8, 32], strides = [1, 1, 1, 1]} : vector<1x10x10x32xbf16> to vector<1x8x8x32xbf16>
    %38 = vector.shape_cast %37 : vector<1x8x8x32xbf16> to vector<64x32xbf16>
    %c1 = arith.constant 1 : index
    %c0_15 = arith.constant 0 : index
    %c0_16 = arith.constant 0 : index
    %39 = vector.load %arg5[%c1, %c0_15, %c0_16] : memref<9x32x64xbf16, #tpu.memory_space<vmem>>, vector<1x32x64xbf16>
    %40 = vector.shape_cast %39 : vector<1x32x64xbf16> to vector<32x64xbf16>
    %cst_17 = arith.constant dense<0.000000e+00> : vector<64x64xf32>
    %41 = tpu.matmul %38, %40, %cst_17 {dimension_numbers = #tpu.dot_dimension_numbers<[1], [0], [0], [1], [0, 0, 1, 1], [], []>} : vector<64x32xbf16>, vector<32x64xbf16>, vector<64x64xf32> -> vector<64x64xf32>
    %42 = arith.addf %36, %41 : vector<64x64xf32>
    %43 = vector.extract_strided_slice %29 {offsets = [0, 0, 2, 0], sizes = [1, 8, 8, 32], strides = [1, 1, 1, 1]} : vector<1x10x10x32xbf16> to vector<1x8x8x32xbf16>
    %44 = vector.shape_cast %43 : vector<1x8x8x32xbf16> to vector<64x32xbf16>
    %c2 = arith.constant 2 : index
    %c0_18 = arith.constant 0 : index
    %c0_19 = arith.constant 0 : index
    %45 = vector.load %arg5[%c2, %c0_18, %c0_19] : memref<9x32x64xbf16, #tpu.memory_space<vmem>>, vector<1x32x64xbf16>
    %46 = vector.shape_cast %45 : vector<1x32x64xbf16> to vector<32x64xbf16>
    %cst_20 = arith.constant dense<0.000000e+00> : vector<64x64xf32>
    %47 = tpu.matmul %44, %46, %cst_20 {dimension_numbers = #tpu.dot_dimension_numbers<[1], [0], [0], [1], [0, 0, 1, 1], [], []>} : vector<64x32xbf16>, vector<32x64xbf16>, vector<64x64xf32> -> vector<64x64xf32>
    %48 = arith.addf %42, %47 : vector<64x64xf32>
    %49 = vector.extract_strided_slice %29 {offsets = [0, 1, 0, 0], sizes = [1, 8, 8, 32], strides = [1, 1, 1, 1]} : vector<1x10x10x32xbf16> to vector<1x8x8x32xbf16>
    %50 = vector.shape_cast %49 : vector<1x8x8x32xbf16> to vector<64x32xbf16>
    %c3 = arith.constant 3 : index
    %c0_21 = arith.constant 0 : index
    %c0_22 = arith.constant 0 : index
    %51 = vector.load %arg5[%c3, %c0_21, %c0_22] : memref<9x32x64xbf16, #tpu.memory_space<vmem>>, vector<1x32x64xbf16>
    %52 = vector.shape_cast %51 : vector<1x32x64xbf16> to vector<32x64xbf16>
    %cst_23 = arith.constant dense<0.000000e+00> : vector<64x64xf32>
    %53 = tpu.matmul %50, %52, %cst_23 {dimension_numbers = #tpu.dot_dimension_numbers<[1], [0], [0], [1], [0, 0, 1, 1], [], []>} : vector<64x32xbf16>, vector<32x64xbf16>, vector<64x64xf32> -> vector<64x64xf32>
    %54 = arith.addf %48, %53 : vector<64x64xf32>
    %55 = vector.extract_strided_slice %29 {offsets = [0, 1, 1, 0], sizes = [1, 8, 8, 32], strides = [1, 1, 1, 1]} : vector<1x10x10x32xbf16> to vector<1x8x8x32xbf16>
    %56 = vector.shape_cast %55 : vector<1x8x8x32xbf16> to vector<64x32xbf16>
    %c4 = arith.constant 4 : index
    %c0_24 = arith.constant 0 : index
    %c0_25 = arith.constant 0 : index
    %57 = vector.load %arg5[%c4, %c0_24, %c0_25] : memref<9x32x64xbf16, #tpu.memory_space<vmem>>, vector<1x32x64xbf16>
    %58 = vector.shape_cast %57 : vector<1x32x64xbf16> to vector<32x64xbf16>
    %cst_26 = arith.constant dense<0.000000e+00> : vector<64x64xf32>
    %59 = tpu.matmul %56, %58, %cst_26 {dimension_numbers = #tpu.dot_dimension_numbers<[1], [0], [0], [1], [0, 0, 1, 1], [], []>} : vector<64x32xbf16>, vector<32x64xbf16>, vector<64x64xf32> -> vector<64x64xf32>
    %60 = arith.addf %54, %59 : vector<64x64xf32>
    %61 = vector.extract_strided_slice %29 {offsets = [0, 1, 2, 0], sizes = [1, 8, 8, 32], strides = [1, 1, 1, 1]} : vector<1x10x10x32xbf16> to vector<1x8x8x32xbf16>
    %62 = vector.shape_cast %61 : vector<1x8x8x32xbf16> to vector<64x32xbf16>
    %c5 = arith.constant 5 : index
    %c0_27 = arith.constant 0 : index
    %c0_28 = arith.constant 0 : index
    %63 = vector.load %arg5[%c5, %c0_27, %c0_28] : memref<9x32x64xbf16, #tpu.memory_space<vmem>>, vector<1x32x64xbf16>
    %64 = vector.shape_cast %63 : vector<1x32x64xbf16> to vector<32x64xbf16>
    %cst_29 = arith.constant dense<0.000000e+00> : vector<64x64xf32>
    %65 = tpu.matmul %62, %64, %cst_29 {dimension_numbers = #tpu.dot_dimension_numbers<[1], [0], [0], [1], [0, 0, 1, 1], [], []>} : vector<64x32xbf16>, vector<32x64xbf16>, vector<64x64xf32> -> vector<64x64xf32>
    %66 = arith.addf %60, %65 : vector<64x64xf32>
    %67 = vector.extract_strided_slice %29 {offsets = [0, 2, 0, 0], sizes = [1, 8, 8, 32], strides = [1, 1, 1, 1]} : vector<1x10x10x32xbf16> to vector<1x8x8x32xbf16>
    %68 = vector.shape_cast %67 : vector<1x8x8x32xbf16> to vector<64x32xbf16>
    %c6 = arith.constant 6 : index
    %c0_30 = arith.constant 0 : index
    %c0_31 = arith.constant 0 : index
    %69 = vector.load %arg5[%c6, %c0_30, %c0_31] : memref<9x32x64xbf16, #tpu.memory_space<vmem>>, vector<1x32x64xbf16>
    %70 = vector.shape_cast %69 : vector<1x32x64xbf16> to vector<32x64xbf16>
    %cst_32 = arith.constant dense<0.000000e+00> : vector<64x64xf32>
    %71 = tpu.matmul %68, %70, %cst_32 {dimension_numbers = #tpu.dot_dimension_numbers<[1], [0], [0], [1], [0, 0, 1, 1], [], []>} : vector<64x32xbf16>, vector<32x64xbf16>, vector<64x64xf32> -> vector<64x64xf32>
    %72 = arith.addf %66, %71 : vector<64x64xf32>
    %73 = vector.extract_strided_slice %29 {offsets = [0, 2, 1, 0], sizes = [1, 8, 8, 32], strides = [1, 1, 1, 1]} : vector<1x10x10x32xbf16> to vector<1x8x8x32xbf16>
    %74 = vector.shape_cast %73 : vector<1x8x8x32xbf16> to vector<64x32xbf16>
    %c7 = arith.constant 7 : index
    %c0_33 = arith.constant 0 : index
    %c0_34 = arith.constant 0 : index
    %75 = vector.load %arg5[%c7, %c0_33, %c0_34] : memref<9x32x64xbf16, #tpu.memory_space<vmem>>, vector<1x32x64xbf16>
    %76 = vector.shape_cast %75 : vector<1x32x64xbf16> to vector<32x64xbf16>
    %cst_35 = arith.constant dense<0.000000e+00> : vector<64x64xf32>
    %77 = tpu.matmul %74, %76, %cst_35 {dimension_numbers = #tpu.dot_dimension_numbers<[1], [0], [0], [1], [0, 0, 1, 1], [], []>} : vector<64x32xbf16>, vector<32x64xbf16>, vector<64x64xf32> -> vector<64x64xf32>
    %78 = arith.addf %72, %77 : vector<64x64xf32>
    %79 = vector.extract_strided_slice %29 {offsets = [0, 2, 2, 0], sizes = [1, 8, 8, 32], strides = [1, 1, 1, 1]} : vector<1x10x10x32xbf16> to vector<1x8x8x32xbf16>
    %80 = vector.shape_cast %79 : vector<1x8x8x32xbf16> to vector<64x32xbf16>
    %c8 = arith.constant 8 : index
    %c0_36 = arith.constant 0 : index
    %c0_37 = arith.constant 0 : index
    %81 = vector.load %arg5[%c8, %c0_36, %c0_37] : memref<9x32x64xbf16, #tpu.memory_space<vmem>>, vector<1x32x64xbf16>
    %82 = vector.shape_cast %81 : vector<1x32x64xbf16> to vector<32x64xbf16>
    %cst_38 = arith.constant dense<0.000000e+00> : vector<64x64xf32>
    %83 = tpu.matmul %80, %82, %cst_38 {dimension_numbers = #tpu.dot_dimension_numbers<[1], [0], [0], [1], [0, 0, 1, 1], [], []>} : vector<64x32xbf16>, vector<32x64xbf16>, vector<64x64xf32> -> vector<64x64xf32>
    %84 = arith.addf %78, %83 : vector<64x64xf32>
    %c0_39 = arith.constant 0 : index
    %c0_40 = arith.constant 0 : index
    %85 = vector.load %arg6[%c0_39, %c0_40] : memref<1x64xf32, #tpu.memory_space<vmem>>, vector<1x64xf32>
    %86 = vector.broadcast %85 : vector<1x64xf32> to vector<64x64xf32>
    %87 = arith.mulf %84, %86 : vector<64x64xf32>
    %c0_41 = arith.constant 0 : index
    %c0_42 = arith.constant 0 : index
    %88 = vector.load %arg7[%c0_41, %c0_42] : memref<1x64xf32, #tpu.memory_space<vmem>>, vector<1x64xf32>
    %89 = vector.broadcast %88 : vector<1x64xf32> to vector<64x64xf32>
    %90 = arith.addf %87, %89 : vector<64x64xf32>
    %cst_43 = arith.constant 0.000000e+00 : f32
    %91 = vector.broadcast %cst_43 : f32 to vector<64x64xf32>
    %92 = arith.maximumf %90, %91 : vector<64x64xf32>
    %93 = vector.shape_cast %92 : vector<64x64xf32> to vector<1x8x8x64xf32>
    %94 = vector.shape_cast %93 : vector<1x8x8x64xf32> to vector<4x2x8x64xf32>
    %95 = vector.extract_strided_slice %94 {offsets = [0, 0, 0, 0], sizes = [4, 1, 8, 64], strides = [1, 1, 1, 1]} : vector<4x2x8x64xf32> to vector<4x1x8x64xf32>
    %96 = vector.shape_cast %95 : vector<4x1x8x64xf32> to vector<4x8x64xf32>
    %97 = vector.extract_strided_slice %94 {offsets = [0, 1, 0, 0], sizes = [4, 1, 8, 64], strides = [1, 1, 1, 1]} : vector<4x2x8x64xf32> to vector<4x1x8x64xf32>
    %98 = vector.shape_cast %97 : vector<4x1x8x64xf32> to vector<4x8x64xf32>
    %99 = arith.maximumf %96, %98 : vector<4x8x64xf32>
    %100 = vector.shape_cast %99 : vector<4x8x64xf32> to vector<4x4x2x64xf32>
    %101 = vector.extract_strided_slice %100 {offsets = [0, 0, 0, 0], sizes = [4, 4, 1, 64], strides = [1, 1, 1, 1]} : vector<4x4x2x64xf32> to vector<4x4x1x64xf32>
    %102 = vector.shape_cast %101 : vector<4x4x1x64xf32> to vector<4x4x64xf32>
    %103 = vector.extract_strided_slice %100 {offsets = [0, 0, 1, 0], sizes = [4, 4, 1, 64], strides = [1, 1, 1, 1]} : vector<4x4x2x64xf32> to vector<4x4x1x64xf32>
    %104 = vector.shape_cast %103 : vector<4x4x1x64xf32> to vector<4x4x64xf32>
    %105 = arith.maximumf %102, %104 : vector<4x4x64xf32>
    %106 = vector.shape_cast %105 : vector<4x4x64xf32> to vector<1x4x4x64xf32>
    %cst_44 = arith.constant 0.000000e+00 : f32
    %107 = vector.broadcast %cst_44 : f32 to vector<1x4x1x64xf32>
    %108 = tpu.concatenate %107, %106, %107 in 2 : vector<1x4x1x64xf32>, vector<1x4x4x64xf32>, vector<1x4x1x64xf32> -> vector<1x4x6x64xf32>
    %cst_45 = arith.constant 0.000000e+00 : f32
    %109 = vector.broadcast %cst_45 : f32 to vector<1x1x6x64xf32>
    %110 = tpu.concatenate %109, %108, %109 in 1 : vector<1x1x6x64xf32>, vector<1x4x6x64xf32>, vector<1x1x6x64xf32> -> vector<1x6x6x64xf32>
    %111 = arith.truncf %110 : vector<1x6x6x64xf32> to vector<1x6x6x64xbf16>
    %cst_46 = arith.constant 0.000000e+00 : f32
    %112 = vector.broadcast %cst_46 : f32 to vector<16x128xf32>
    %113 = vector.extract_strided_slice %111 {offsets = [0, 0, 0, 0], sizes = [1, 4, 4, 64], strides = [1, 1, 1, 1]} : vector<1x6x6x64xbf16> to vector<1x4x4x64xbf16>
    %114 = vector.shape_cast %113 : vector<1x4x4x64xbf16> to vector<16x64xbf16>
    %c0_47 = arith.constant 0 : index
    %c0_48 = arith.constant 0 : index
    %c0_49 = arith.constant 0 : index
    %115 = vector.load %arg8[%c0_47, %c0_48, %c0_49] : memref<9x64x128xbf16, #tpu.memory_space<vmem>>, vector<1x64x128xbf16>
    %116 = vector.shape_cast %115 : vector<1x64x128xbf16> to vector<64x128xbf16>
    %cst_50 = arith.constant dense<0.000000e+00> : vector<16x128xf32>
    %117 = tpu.matmul %114, %116, %cst_50 {dimension_numbers = #tpu.dot_dimension_numbers<[1], [0], [0], [1], [0, 0, 1, 1], [], []>} : vector<16x64xbf16>, vector<64x128xbf16>, vector<16x128xf32> -> vector<16x128xf32>
    %118 = arith.addf %112, %117 : vector<16x128xf32>
    %119 = vector.extract_strided_slice %111 {offsets = [0, 0, 1, 0], sizes = [1, 4, 4, 64], strides = [1, 1, 1, 1]} : vector<1x6x6x64xbf16> to vector<1x4x4x64xbf16>
    %120 = vector.shape_cast %119 : vector<1x4x4x64xbf16> to vector<16x64xbf16>
    %c1_51 = arith.constant 1 : index
    %c0_52 = arith.constant 0 : index
    %c0_53 = arith.constant 0 : index
    %121 = vector.load %arg8[%c1_51, %c0_52, %c0_53] : memref<9x64x128xbf16, #tpu.memory_space<vmem>>, vector<1x64x128xbf16>
    %122 = vector.shape_cast %121 : vector<1x64x128xbf16> to vector<64x128xbf16>
    %cst_54 = arith.constant dense<0.000000e+00> : vector<16x128xf32>
    %123 = tpu.matmul %120, %122, %cst_54 {dimension_numbers = #tpu.dot_dimension_numbers<[1], [0], [0], [1], [0, 0, 1, 1], [], []>} : vector<16x64xbf16>, vector<64x128xbf16>, vector<16x128xf32> -> vector<16x128xf32>
    %124 = arith.addf %118, %123 : vector<16x128xf32>
    %125 = vector.extract_strided_slice %111 {offsets = [0, 0, 2, 0], sizes = [1, 4, 4, 64], strides = [1, 1, 1, 1]} : vector<1x6x6x64xbf16> to vector<1x4x4x64xbf16>
    %126 = vector.shape_cast %125 : vector<1x4x4x64xbf16> to vector<16x64xbf16>
    %c2_55 = arith.constant 2 : index
    %c0_56 = arith.constant 0 : index
    %c0_57 = arith.constant 0 : index
    %127 = vector.load %arg8[%c2_55, %c0_56, %c0_57] : memref<9x64x128xbf16, #tpu.memory_space<vmem>>, vector<1x64x128xbf16>
    %128 = vector.shape_cast %127 : vector<1x64x128xbf16> to vector<64x128xbf16>
    %cst_58 = arith.constant dense<0.000000e+00> : vector<16x128xf32>
    %129 = tpu.matmul %126, %128, %cst_58 {dimension_numbers = #tpu.dot_dimension_numbers<[1], [0], [0], [1], [0, 0, 1, 1], [], []>} : vector<16x64xbf16>, vector<64x128xbf16>, vector<16x128xf32> -> vector<16x128xf32>
    %130 = arith.addf %124, %129 : vector<16x128xf32>
    %131 = vector.extract_strided_slice %111 {offsets = [0, 1, 0, 0], sizes = [1, 4, 4, 64], strides = [1, 1, 1, 1]} : vector<1x6x6x64xbf16> to vector<1x4x4x64xbf16>
    %132 = vector.shape_cast %131 : vector<1x4x4x64xbf16> to vector<16x64xbf16>
    %c3_59 = arith.constant 3 : index
    %c0_60 = arith.constant 0 : index
    %c0_61 = arith.constant 0 : index
    %133 = vector.load %arg8[%c3_59, %c0_60, %c0_61] : memref<9x64x128xbf16, #tpu.memory_space<vmem>>, vector<1x64x128xbf16>
    %134 = vector.shape_cast %133 : vector<1x64x128xbf16> to vector<64x128xbf16>
    %cst_62 = arith.constant dense<0.000000e+00> : vector<16x128xf32>
    %135 = tpu.matmul %132, %134, %cst_62 {dimension_numbers = #tpu.dot_dimension_numbers<[1], [0], [0], [1], [0, 0, 1, 1], [], []>} : vector<16x64xbf16>, vector<64x128xbf16>, vector<16x128xf32> -> vector<16x128xf32>
    %136 = arith.addf %130, %135 : vector<16x128xf32>
    %137 = vector.extract_strided_slice %111 {offsets = [0, 1, 1, 0], sizes = [1, 4, 4, 64], strides = [1, 1, 1, 1]} : vector<1x6x6x64xbf16> to vector<1x4x4x64xbf16>
    %138 = vector.shape_cast %137 : vector<1x4x4x64xbf16> to vector<16x64xbf16>
    %c4_63 = arith.constant 4 : index
    %c0_64 = arith.constant 0 : index
    %c0_65 = arith.constant 0 : index
    %139 = vector.load %arg8[%c4_63, %c0_64, %c0_65] : memref<9x64x128xbf16, #tpu.memory_space<vmem>>, vector<1x64x128xbf16>
    %140 = vector.shape_cast %139 : vector<1x64x128xbf16> to vector<64x128xbf16>
    %cst_66 = arith.constant dense<0.000000e+00> : vector<16x128xf32>
    %141 = tpu.matmul %138, %140, %cst_66 {dimension_numbers = #tpu.dot_dimension_numbers<[1], [0], [0], [1], [0, 0, 1, 1], [], []>} : vector<16x64xbf16>, vector<64x128xbf16>, vector<16x128xf32> -> vector<16x128xf32>
    %142 = arith.addf %136, %141 : vector<16x128xf32>
    %143 = vector.extract_strided_slice %111 {offsets = [0, 1, 2, 0], sizes = [1, 4, 4, 64], strides = [1, 1, 1, 1]} : vector<1x6x6x64xbf16> to vector<1x4x4x64xbf16>
    %144 = vector.shape_cast %143 : vector<1x4x4x64xbf16> to vector<16x64xbf16>
    %c5_67 = arith.constant 5 : index
    %c0_68 = arith.constant 0 : index
    %c0_69 = arith.constant 0 : index
    %145 = vector.load %arg8[%c5_67, %c0_68, %c0_69] : memref<9x64x128xbf16, #tpu.memory_space<vmem>>, vector<1x64x128xbf16>
    %146 = vector.shape_cast %145 : vector<1x64x128xbf16> to vector<64x128xbf16>
    %cst_70 = arith.constant dense<0.000000e+00> : vector<16x128xf32>
    %147 = tpu.matmul %144, %146, %cst_70 {dimension_numbers = #tpu.dot_dimension_numbers<[1], [0], [0], [1], [0, 0, 1, 1], [], []>} : vector<16x64xbf16>, vector<64x128xbf16>, vector<16x128xf32> -> vector<16x128xf32>
    %148 = arith.addf %142, %147 : vector<16x128xf32>
    %149 = vector.extract_strided_slice %111 {offsets = [0, 2, 0, 0], sizes = [1, 4, 4, 64], strides = [1, 1, 1, 1]} : vector<1x6x6x64xbf16> to vector<1x4x4x64xbf16>
    %150 = vector.shape_cast %149 : vector<1x4x4x64xbf16> to vector<16x64xbf16>
    %c6_71 = arith.constant 6 : index
    %c0_72 = arith.constant 0 : index
    %c0_73 = arith.constant 0 : index
    %151 = vector.load %arg8[%c6_71, %c0_72, %c0_73] : memref<9x64x128xbf16, #tpu.memory_space<vmem>>, vector<1x64x128xbf16>
    %152 = vector.shape_cast %151 : vector<1x64x128xbf16> to vector<64x128xbf16>
    %cst_74 = arith.constant dense<0.000000e+00> : vector<16x128xf32>
    %153 = tpu.matmul %150, %152, %cst_74 {dimension_numbers = #tpu.dot_dimension_numbers<[1], [0], [0], [1], [0, 0, 1, 1], [], []>} : vector<16x64xbf16>, vector<64x128xbf16>, vector<16x128xf32> -> vector<16x128xf32>
    %154 = arith.addf %148, %153 : vector<16x128xf32>
    %155 = vector.extract_strided_slice %111 {offsets = [0, 2, 1, 0], sizes = [1, 4, 4, 64], strides = [1, 1, 1, 1]} : vector<1x6x6x64xbf16> to vector<1x4x4x64xbf16>
    %156 = vector.shape_cast %155 : vector<1x4x4x64xbf16> to vector<16x64xbf16>
    %c7_75 = arith.constant 7 : index
    %c0_76 = arith.constant 0 : index
    %c0_77 = arith.constant 0 : index
    %157 = vector.load %arg8[%c7_75, %c0_76, %c0_77] : memref<9x64x128xbf16, #tpu.memory_space<vmem>>, vector<1x64x128xbf16>
    %158 = vector.shape_cast %157 : vector<1x64x128xbf16> to vector<64x128xbf16>
    %cst_78 = arith.constant dense<0.000000e+00> : vector<16x128xf32>
    %159 = tpu.matmul %156, %158, %cst_78 {dimension_numbers = #tpu.dot_dimension_numbers<[1], [0], [0], [1], [0, 0, 1, 1], [], []>} : vector<16x64xbf16>, vector<64x128xbf16>, vector<16x128xf32> -> vector<16x128xf32>
    %160 = arith.addf %154, %159 : vector<16x128xf32>
    %161 = vector.extract_strided_slice %111 {offsets = [0, 2, 2, 0], sizes = [1, 4, 4, 64], strides = [1, 1, 1, 1]} : vector<1x6x6x64xbf16> to vector<1x4x4x64xbf16>
    %162 = vector.shape_cast %161 : vector<1x4x4x64xbf16> to vector<16x64xbf16>
    %c8_79 = arith.constant 8 : index
    %c0_80 = arith.constant 0 : index
    %c0_81 = arith.constant 0 : index
    %163 = vector.load %arg8[%c8_79, %c0_80, %c0_81] : memref<9x64x128xbf16, #tpu.memory_space<vmem>>, vector<1x64x128xbf16>
    %164 = vector.shape_cast %163 : vector<1x64x128xbf16> to vector<64x128xbf16>
    %cst_82 = arith.constant dense<0.000000e+00> : vector<16x128xf32>
    %165 = tpu.matmul %162, %164, %cst_82 {dimension_numbers = #tpu.dot_dimension_numbers<[1], [0], [0], [1], [0, 0, 1, 1], [], []>} : vector<16x64xbf16>, vector<64x128xbf16>, vector<16x128xf32> -> vector<16x128xf32>
    %166 = arith.addf %160, %165 : vector<16x128xf32>
    %c0_83 = arith.constant 0 : index
    %c0_84 = arith.constant 0 : index
    %167 = vector.load %arg9[%c0_83, %c0_84] : memref<1x128xf32, #tpu.memory_space<vmem>>, vector<1x128xf32>
    %168 = vector.broadcast %167 : vector<1x128xf32> to vector<16x128xf32>
    %169 = arith.mulf %166, %168 : vector<16x128xf32>
    %c0_85 = arith.constant 0 : index
    %c0_86 = arith.constant 0 : index
    %170 = vector.load %arg10[%c0_85, %c0_86] : memref<1x128xf32, #tpu.memory_space<vmem>>, vector<1x128xf32>
    %171 = vector.broadcast %170 : vector<1x128xf32> to vector<16x128xf32>
    %172 = arith.addf %169, %171 : vector<16x128xf32>
    %cst_87 = arith.constant 0.000000e+00 : f32
    %173 = vector.broadcast %cst_87 : f32 to vector<16x128xf32>
    %174 = arith.maximumf %172, %173 : vector<16x128xf32>
    %175 = vector.shape_cast %174 : vector<16x128xf32> to vector<1x4x4x128xf32>
    %176 = vector.shape_cast %175 : vector<1x4x4x128xf32> to vector<2x2x4x128xf32>
    %177 = vector.extract_strided_slice %176 {offsets = [0, 0, 0, 0], sizes = [2, 1, 4, 128], strides = [1, 1, 1, 1]} : vector<2x2x4x128xf32> to vector<2x1x4x128xf32>
    %178 = vector.shape_cast %177 : vector<2x1x4x128xf32> to vector<2x4x128xf32>
    %179 = vector.extract_strided_slice %176 {offsets = [0, 1, 0, 0], sizes = [2, 1, 4, 128], strides = [1, 1, 1, 1]} : vector<2x2x4x128xf32> to vector<2x1x4x128xf32>
    %180 = vector.shape_cast %179 : vector<2x1x4x128xf32> to vector<2x4x128xf32>
    %181 = arith.maximumf %178, %180 : vector<2x4x128xf32>
    %182 = vector.shape_cast %181 : vector<2x4x128xf32> to vector<2x2x2x128xf32>
    %183 = vector.extract_strided_slice %182 {offsets = [0, 0, 0, 0], sizes = [2, 2, 1, 128], strides = [1, 1, 1, 1]} : vector<2x2x2x128xf32> to vector<2x2x1x128xf32>
    %184 = vector.shape_cast %183 : vector<2x2x1x128xf32> to vector<2x2x128xf32>
    %185 = vector.extract_strided_slice %182 {offsets = [0, 0, 1, 0], sizes = [2, 2, 1, 128], strides = [1, 1, 1, 1]} : vector<2x2x2x128xf32> to vector<2x2x1x128xf32>
    %186 = vector.shape_cast %185 : vector<2x2x1x128xf32> to vector<2x2x128xf32>
    %187 = arith.maximumf %184, %186 : vector<2x2x128xf32>
    %188 = vector.shape_cast %187 : vector<2x2x128xf32> to vector<1x2x2x128xf32>
    %cst_88 = arith.constant 0.000000e+00 : f32
    %189 = vector.broadcast %cst_88 : f32 to vector<1x2x1x128xf32>
    %190 = tpu.concatenate %189, %188, %189 in 2 : vector<1x2x1x128xf32>, vector<1x2x2x128xf32>, vector<1x2x1x128xf32> -> vector<1x2x4x128xf32>
    %cst_89 = arith.constant 0.000000e+00 : f32
    %191 = vector.broadcast %cst_89 : f32 to vector<1x1x4x128xf32>
    %192 = tpu.concatenate %191, %190, %191 in 1 : vector<1x1x4x128xf32>, vector<1x2x4x128xf32>, vector<1x1x4x128xf32> -> vector<1x4x4x128xf32>
    %193 = arith.truncf %192 : vector<1x4x4x128xf32> to vector<1x4x4x128xbf16>
    %cst_90 = arith.constant 0.000000e+00 : f32
    %194 = vector.broadcast %cst_90 : f32 to vector<4x256xf32>
    %195 = vector.extract_strided_slice %193 {offsets = [0, 0, 0, 0], sizes = [1, 2, 2, 128], strides = [1, 1, 1, 1]} : vector<1x4x4x128xbf16> to vector<1x2x2x128xbf16>
    %196 = vector.shape_cast %195 : vector<1x2x2x128xbf16> to vector<4x128xbf16>
    %c0_91 = arith.constant 0 : index
    %c0_92 = arith.constant 0 : index
    %c0_93 = arith.constant 0 : index
    %197 = vector.load %arg11[%c0_91, %c0_92, %c0_93] : memref<9x128x256xbf16, #tpu.memory_space<vmem>>, vector<1x128x256xbf16>
    %198 = vector.shape_cast %197 : vector<1x128x256xbf16> to vector<128x256xbf16>
    %cst_94 = arith.constant dense<0.000000e+00> : vector<4x256xf32>
    %199 = tpu.matmul %196, %198, %cst_94 {dimension_numbers = #tpu.dot_dimension_numbers<[1], [0], [0], [1], [0, 0, 1, 1], [], []>} : vector<4x128xbf16>, vector<128x256xbf16>, vector<4x256xf32> -> vector<4x256xf32>
    %200 = arith.addf %194, %199 : vector<4x256xf32>
    %201 = vector.extract_strided_slice %193 {offsets = [0, 0, 1, 0], sizes = [1, 2, 2, 128], strides = [1, 1, 1, 1]} : vector<1x4x4x128xbf16> to vector<1x2x2x128xbf16>
    %202 = vector.shape_cast %201 : vector<1x2x2x128xbf16> to vector<4x128xbf16>
    %c1_95 = arith.constant 1 : index
    %c0_96 = arith.constant 0 : index
    %c0_97 = arith.constant 0 : index
    %203 = vector.load %arg11[%c1_95, %c0_96, %c0_97] : memref<9x128x256xbf16, #tpu.memory_space<vmem>>, vector<1x128x256xbf16>
    %204 = vector.shape_cast %203 : vector<1x128x256xbf16> to vector<128x256xbf16>
    %cst_98 = arith.constant dense<0.000000e+00> : vector<4x256xf32>
    %205 = tpu.matmul %202, %204, %cst_98 {dimension_numbers = #tpu.dot_dimension_numbers<[1], [0], [0], [1], [0, 0, 1, 1], [], []>} : vector<4x128xbf16>, vector<128x256xbf16>, vector<4x256xf32> -> vector<4x256xf32>
    %206 = arith.addf %200, %205 : vector<4x256xf32>
    %207 = vector.extract_strided_slice %193 {offsets = [0, 0, 2, 0], sizes = [1, 2, 2, 128], strides = [1, 1, 1, 1]} : vector<1x4x4x128xbf16> to vector<1x2x2x128xbf16>
    %208 = vector.shape_cast %207 : vector<1x2x2x128xbf16> to vector<4x128xbf16>
    %c2_99 = arith.constant 2 : index
    %c0_100 = arith.constant 0 : index
    %c0_101 = arith.constant 0 : index
    %209 = vector.load %arg11[%c2_99, %c0_100, %c0_101] : memref<9x128x256xbf16, #tpu.memory_space<vmem>>, vector<1x128x256xbf16>
    %210 = vector.shape_cast %209 : vector<1x128x256xbf16> to vector<128x256xbf16>
    %cst_102 = arith.constant dense<0.000000e+00> : vector<4x256xf32>
    %211 = tpu.matmul %208, %210, %cst_102 {dimension_numbers = #tpu.dot_dimension_numbers<[1], [0], [0], [1], [0, 0, 1, 1], [], []>} : vector<4x128xbf16>, vector<128x256xbf16>, vector<4x256xf32> -> vector<4x256xf32>
    %212 = arith.addf %206, %211 : vector<4x256xf32>
    %213 = vector.extract_strided_slice %193 {offsets = [0, 1, 0, 0], sizes = [1, 2, 2, 128], strides = [1, 1, 1, 1]} : vector<1x4x4x128xbf16> to vector<1x2x2x128xbf16>
    %214 = vector.shape_cast %213 : vector<1x2x2x128xbf16> to vector<4x128xbf16>
    %c3_103 = arith.constant 3 : index
    %c0_104 = arith.constant 0 : index
    %c0_105 = arith.constant 0 : index
    %215 = vector.load %arg11[%c3_103, %c0_104, %c0_105] : memref<9x128x256xbf16, #tpu.memory_space<vmem>>, vector<1x128x256xbf16>
    %216 = vector.shape_cast %215 : vector<1x128x256xbf16> to vector<128x256xbf16>
    %cst_106 = arith.constant dense<0.000000e+00> : vector<4x256xf32>
    %217 = tpu.matmul %214, %216, %cst_106 {dimension_numbers = #tpu.dot_dimension_numbers<[1], [0], [0], [1], [0, 0, 1, 1], [], []>} : vector<4x128xbf16>, vector<128x256xbf16>, vector<4x256xf32> -> vector<4x256xf32>
    %218 = arith.addf %212, %217 : vector<4x256xf32>
    %219 = vector.extract_strided_slice %193 {offsets = [0, 1, 1, 0], sizes = [1, 2, 2, 128], strides = [1, 1, 1, 1]} : vector<1x4x4x128xbf16> to vector<1x2x2x128xbf16>
    %220 = vector.shape_cast %219 : vector<1x2x2x128xbf16> to vector<4x128xbf16>
    %c4_107 = arith.constant 4 : index
    %c0_108 = arith.constant 0 : index
    %c0_109 = arith.constant 0 : index
    %221 = vector.load %arg11[%c4_107, %c0_108, %c0_109] : memref<9x128x256xbf16, #tpu.memory_space<vmem>>, vector<1x128x256xbf16>
    %222 = vector.shape_cast %221 : vector<1x128x256xbf16> to vector<128x256xbf16>
    %cst_110 = arith.constant dense<0.000000e+00> : vector<4x256xf32>
    %223 = tpu.matmul %220, %222, %cst_110 {dimension_numbers = #tpu.dot_dimension_numbers<[1], [0], [0], [1], [0, 0, 1, 1], [], []>} : vector<4x128xbf16>, vector<128x256xbf16>, vector<4x256xf32> -> vector<4x256xf32>
    %224 = arith.addf %218, %223 : vector<4x256xf32>
    %225 = vector.extract_strided_slice %193 {offsets = [0, 1, 2, 0], sizes = [1, 2, 2, 128], strides = [1, 1, 1, 1]} : vector<1x4x4x128xbf16> to vector<1x2x2x128xbf16>
    %226 = vector.shape_cast %225 : vector<1x2x2x128xbf16> to vector<4x128xbf16>
    %c5_111 = arith.constant 5 : index
    %c0_112 = arith.constant 0 : index
    %c0_113 = arith.constant 0 : index
    %227 = vector.load %arg11[%c5_111, %c0_112, %c0_113] : memref<9x128x256xbf16, #tpu.memory_space<vmem>>, vector<1x128x256xbf16>
    %228 = vector.shape_cast %227 : vector<1x128x256xbf16> to vector<128x256xbf16>
    %cst_114 = arith.constant dense<0.000000e+00> : vector<4x256xf32>
    %229 = tpu.matmul %226, %228, %cst_114 {dimension_numbers = #tpu.dot_dimension_numbers<[1], [0], [0], [1], [0, 0, 1, 1], [], []>} : vector<4x128xbf16>, vector<128x256xbf16>, vector<4x256xf32> -> vector<4x256xf32>
    %230 = arith.addf %224, %229 : vector<4x256xf32>
    %231 = vector.extract_strided_slice %193 {offsets = [0, 2, 0, 0], sizes = [1, 2, 2, 128], strides = [1, 1, 1, 1]} : vector<1x4x4x128xbf16> to vector<1x2x2x128xbf16>
    %232 = vector.shape_cast %231 : vector<1x2x2x128xbf16> to vector<4x128xbf16>
    %c6_115 = arith.constant 6 : index
    %c0_116 = arith.constant 0 : index
    %c0_117 = arith.constant 0 : index
    %233 = vector.load %arg11[%c6_115, %c0_116, %c0_117] : memref<9x128x256xbf16, #tpu.memory_space<vmem>>, vector<1x128x256xbf16>
    %234 = vector.shape_cast %233 : vector<1x128x256xbf16> to vector<128x256xbf16>
    %cst_118 = arith.constant dense<0.000000e+00> : vector<4x256xf32>
    %235 = tpu.matmul %232, %234, %cst_118 {dimension_numbers = #tpu.dot_dimension_numbers<[1], [0], [0], [1], [0, 0, 1, 1], [], []>} : vector<4x128xbf16>, vector<128x256xbf16>, vector<4x256xf32> -> vector<4x256xf32>
    %236 = arith.addf %230, %235 : vector<4x256xf32>
    %237 = vector.extract_strided_slice %193 {offsets = [0, 2, 1, 0], sizes = [1, 2, 2, 128], strides = [1, 1, 1, 1]} : vector<1x4x4x128xbf16> to vector<1x2x2x128xbf16>
    %238 = vector.shape_cast %237 : vector<1x2x2x128xbf16> to vector<4x128xbf16>
    %c7_119 = arith.constant 7 : index
    %c0_120 = arith.constant 0 : index
    %c0_121 = arith.constant 0 : index
    %239 = vector.load %arg11[%c7_119, %c0_120, %c0_121] : memref<9x128x256xbf16, #tpu.memory_space<vmem>>, vector<1x128x256xbf16>
    %240 = vector.shape_cast %239 : vector<1x128x256xbf16> to vector<128x256xbf16>
    %cst_122 = arith.constant dense<0.000000e+00> : vector<4x256xf32>
    %241 = tpu.matmul %238, %240, %cst_122 {dimension_numbers = #tpu.dot_dimension_numbers<[1], [0], [0], [1], [0, 0, 1, 1], [], []>} : vector<4x128xbf16>, vector<128x256xbf16>, vector<4x256xf32> -> vector<4x256xf32>
    %242 = arith.addf %236, %241 : vector<4x256xf32>
    %243 = vector.extract_strided_slice %193 {offsets = [0, 2, 2, 0], sizes = [1, 2, 2, 128], strides = [1, 1, 1, 1]} : vector<1x4x4x128xbf16> to vector<1x2x2x128xbf16>
    %244 = vector.shape_cast %243 : vector<1x2x2x128xbf16> to vector<4x128xbf16>
    %c8_123 = arith.constant 8 : index
    %c0_124 = arith.constant 0 : index
    %c0_125 = arith.constant 0 : index
    %245 = vector.load %arg11[%c8_123, %c0_124, %c0_125] : memref<9x128x256xbf16, #tpu.memory_space<vmem>>, vector<1x128x256xbf16>
    %246 = vector.shape_cast %245 : vector<1x128x256xbf16> to vector<128x256xbf16>
    %cst_126 = arith.constant dense<0.000000e+00> : vector<4x256xf32>
    %247 = tpu.matmul %244, %246, %cst_126 {dimension_numbers = #tpu.dot_dimension_numbers<[1], [0], [0], [1], [0, 0, 1, 1], [], []>} : vector<4x128xbf16>, vector<128x256xbf16>, vector<4x256xf32> -> vector<4x256xf32>
    %248 = arith.addf %242, %247 : vector<4x256xf32>
    %c0_127 = arith.constant 0 : index
    %c0_128 = arith.constant 0 : index
    %249 = vector.load %arg12[%c0_127, %c0_128] : memref<1x256xf32, #tpu.memory_space<vmem>>, vector<1x256xf32>
    %250 = vector.broadcast %249 : vector<1x256xf32> to vector<4x256xf32>
    %251 = arith.mulf %248, %250 : vector<4x256xf32>
    %c0_129 = arith.constant 0 : index
    %c0_130 = arith.constant 0 : index
    %252 = vector.load %arg13[%c0_129, %c0_130] : memref<1x256xf32, #tpu.memory_space<vmem>>, vector<1x256xf32>
    %253 = vector.broadcast %252 : vector<1x256xf32> to vector<4x256xf32>
    %254 = arith.addf %251, %253 : vector<4x256xf32>
    %cst_131 = arith.constant 0.000000e+00 : f32
    %255 = vector.broadcast %cst_131 : f32 to vector<4x256xf32>
    %256 = arith.maximumf %254, %255 : vector<4x256xf32>
    %257 = vector.shape_cast %256 : vector<4x256xf32> to vector<1x2x2x256xf32>
    %258 = vector.shape_cast %257 : vector<1x2x2x256xf32> to vector<1x4x256xf32>
    %cst_132 = arith.constant dense<0.000000e+00> : vector<1x256xf32>
    %259 = vector.multi_reduction <add>, %258, %cst_132 [1] : vector<1x4x256xf32> to vector<1x256xf32>
    %cst_133 = arith.constant 4.000000e+00 : f32
    %260 = vector.broadcast %cst_133 : f32 to vector<1x256xf32>
    %261 = arith.divf %259, %260 : vector<1x256xf32>
    %262 = arith.truncf %261 : vector<1x256xf32> to vector<1x256xbf16>
    %c0_134 = arith.constant 0 : index
    %c0_135 = arith.constant 0 : index
    %263 = vector.load %arg14[%c0_134, %c0_135] : memref<256x512xbf16, #tpu.memory_space<vmem>>, vector<256x512xbf16>
    %cst_136 = arith.constant dense<0.000000e+00> : vector<1x512xf32>
    %264 = tpu.matmul %262, %263, %cst_136 {dimension_numbers = #tpu.dot_dimension_numbers<[1], [0], [0], [1], [0, 0, 1, 1], [], []>} : vector<1x256xbf16>, vector<256x512xbf16>, vector<1x512xf32> -> vector<1x512xf32>
    %c0_137 = arith.constant 0 : index
    %c0_138 = arith.constant 0 : index
    %265 = vector.load %arg15[%c0_137, %c0_138] : memref<1x512xf32, #tpu.memory_space<vmem>>, vector<1x512xf32>
    %266 = arith.addf %264, %265 : vector<1x512xf32>
    %cst_139 = arith.constant 0.000000e+00 : f32
    %267 = vector.broadcast %cst_139 : f32 to vector<1x512xf32>
    %268 = arith.maximumf %266, %267 : vector<1x512xf32>
    %269 = arith.truncf %268 : vector<1x512xf32> to vector<1x512xbf16>
    %c0_140 = arith.constant 0 : index
    %c0_141 = arith.constant 0 : index
    %270 = vector.load %arg16[%c0_140, %c0_141] : memref<512x256xbf16, #tpu.memory_space<vmem>>, vector<512x256xbf16>
    %cst_142 = arith.constant dense<0.000000e+00> : vector<1x256xf32>
    %271 = tpu.matmul %269, %270, %cst_142 {dimension_numbers = #tpu.dot_dimension_numbers<[1], [0], [0], [1], [0, 0, 1, 1], [], []>} : vector<1x512xbf16>, vector<512x256xbf16>, vector<1x256xf32> -> vector<1x256xf32>
    %c0_143 = arith.constant 0 : index
    %c0_144 = arith.constant 0 : index
    %272 = vector.load %arg17[%c0_143, %c0_144] : memref<1x256xf32, #tpu.memory_space<vmem>>, vector<1x256xf32>
    %273 = arith.addf %271, %272 : vector<1x256xf32>
    %274 = vector.shape_cast %273 : vector<1x256xf32> to vector<1x1x256xf32>
    %c0_145 = arith.constant 0 : index
    %c0_146 = arith.constant 0 : index
    %c0_147 = arith.constant 0 : index
    %275 = vector.load %arg18[%c0_145, %c0_146, %c0_147] : memref<1x1x256xf32, #tpu.memory_space<vmem>>, vector<1x1x256xf32>
    tpu.vector_store %arg18[%c0_145, %c0_146, %c0_147], %274 {strides = array<i32>} : memref<1x1x256xf32, #tpu.memory_space<vmem>>, vector<1x1x256xf32>,
    return
  }
  func.func @transform_0(%arg0: i32) -> (i32, i32) {
    %c0_i32 = arith.constant 0 : i32
    %c0_i32_0 = arith.constant 0 : i32
    return %arg0, %c0_i32 : i32, i32
  }
  func.func @transform_1(%arg0: i32) -> (i32, i32) {
    %c0_i32 = arith.constant 0 : i32
    %c0_i32_0 = arith.constant 0 : i32
    %c0_i32_1 = arith.constant 0 : i32
    return %c0_i32, %c0_i32_0 : i32, i32
  }
  func.func @transform_2(%arg0: i32) -> (i32, i32) {
    %c0_i32 = arith.constant 0 : i32
    %c0_i32_0 = arith.constant 0 : i32
    %c0_i32_1 = arith.constant 0 : i32
    return %c0_i32, %c0_i32_0 : i32, i32
  }
  func.func @transform_3(%arg0: i32) -> (i32, i32) {
    %c0_i32 = arith.constant 0 : i32
    %c0_i32_0 = arith.constant 0 : i32
    %c0_i32_1 = arith.constant 0 : i32
    return %c0_i32, %c0_i32_0 : i32, i32
  }
  func.func @transform_4(%arg0: i32) -> (i32, i32, i32) {
    %c0_i32 = arith.constant 0 : i32
    %c0_i32_0 = arith.constant 0 : i32
    %c0_i32_1 = arith.constant 0 : i32
    %c0_i32_2 = arith.constant 0 : i32
    return %c0_i32, %c0_i32_0, %c0_i32_1 : i32, i32, i32
  }
  func.func @transform_5(%arg0: i32) -> (i32, i32) {
    %c0_i32 = arith.constant 0 : i32
    %c0_i32_0 = arith.constant 0 : i32
    %c0_i32_1 = arith.constant 0 : i32
    return %c0_i32, %c0_i32_0 : i32, i32
  }
  func.func @transform_6(%arg0: i32) -> (i32, i32) {
    %c0_i32 = arith.constant 0 : i32
    %c0_i32_0 = arith.constant 0 : i32
    %c0_i32_1 = arith.constant 0 : i32
    return %c0_i32, %c0_i32_0 : i32, i32
  }
  func.func @transform_7(%arg0: i32) -> (i32, i32, i32) {
    %c0_i32 = arith.constant 0 : i32
    %c0_i32_0 = arith.constant 0 : i32
    %c0_i32_1 = arith.constant 0 : i32
    %c0_i32_2 = arith.constant 0 : i32
    return %c0_i32, %c0_i32_0, %c0_i32_1 : i32, i32, i32
  }
  func.func @transform_8(%arg0: i32) -> (i32, i32) {
    %c0_i32 = arith.constant 0 : i32
    %c0_i32_0 = arith.constant 0 : i32
    %c0_i32_1 = arith.constant 0 : i32
    return %c0_i32, %c0_i32_0 : i32, i32
  }
  func.func @transform_9(%arg0: i32) -> (i32, i32) {
    %c0_i32 = arith.constant 0 : i32
    %c0_i32_0 = arith.constant 0 : i32
    %c0_i32_1 = arith.constant 0 : i32
    return %c0_i32, %c0_i32_0 : i32, i32
  }
  func.func @transform_10(%arg0: i32) -> (i32, i32, i32) {
    %c0_i32 = arith.constant 0 : i32
    %c0_i32_0 = arith.constant 0 : i32
    %c0_i32_1 = arith.constant 0 : i32
    %c0_i32_2 = arith.constant 0 : i32
    return %c0_i32, %c0_i32_0, %c0_i32_1 : i32, i32, i32
  }
  func.func @transform_11(%arg0: i32) -> (i32, i32) {
    %c0_i32 = arith.constant 0 : i32
    %c0_i32_0 = arith.constant 0 : i32
    %c0_i32_1 = arith.constant 0 : i32
    return %c0_i32, %c0_i32_0 : i32, i32
  }
  func.func @transform_12(%arg0: i32) -> (i32, i32) {
    %c0_i32 = arith.constant 0 : i32
    %c0_i32_0 = arith.constant 0 : i32
    %c0_i32_1 = arith.constant 0 : i32
    return %c0_i32, %c0_i32_0 : i32, i32
  }
  func.func @transform_13(%arg0: i32) -> (i32, i32) {
    %c0_i32 = arith.constant 0 : i32
    %c0_i32_0 = arith.constant 0 : i32
    %c0_i32_1 = arith.constant 0 : i32
    return %c0_i32, %c0_i32_0 : i32, i32
  }
  func.func @transform_14(%arg0: i32) -> (i32, i32) {
    %c0_i32 = arith.constant 0 : i32
    %c0_i32_0 = arith.constant 0 : i32
    %c0_i32_1 = arith.constant 0 : i32
    return %c0_i32, %c0_i32_0 : i32, i32
  }
  func.func @transform_15(%arg0: i32) -> (i32, i32) {
    %c0_i32 = arith.constant 0 : i32
    %c0_i32_0 = arith.constant 0 : i32
    %c0_i32_1 = arith.constant 0 : i32
    return %c0_i32, %c0_i32_0 : i32, i32
  }
  func.func @transform_16(%arg0: i32) -> (i32, i32) {
    %c0_i32 = arith.constant 0 : i32
    %c0_i32_0 = arith.constant 0 : i32
    %c0_i32_1 = arith.constant 0 : i32
    return %c0_i32, %c0_i32_0 : i32, i32
  }
  func.func @transform_17(%arg0: i32) -> (i32, i32, i32) {
    %c0_i32 = arith.constant 0 : i32
    %c0_i32_0 = arith.constant 0 : i32
    %c0_i32_1 = arith.constant 0 : i32
    return %arg0, %c0_i32, %c0_i32_0 : i32, i32, i32
  }
}

</mosaic_0001>

<bundles_post_ra>
// kernel: rail_angle_cnn_forward.1
= control target key start
LH: loop header
LB: loop body
LE: loop exit
PB: predicated region body
PF: predicated region fallthrough
CT: control target
= control target key end

     0   :  { %s8945_s24 = smov 0   ;;  %s11082_s0 = inlined_call_operand.vmem [shape: bf16[512,9], index: 0, kind: input, shape index: {}]   ;;  %s11083_s1 = inlined_call_operand.vmem [shape: bf16[9,32], index: 1, kind: input, shape index: {}]   ;;  %s11084_s2 = inlined_call_operand.vmem [shape: f32[1,32], index: 2, kind: input, shape index: {}]   ;;  %s11085_s3 = inlined_call_operand.vmem [shape: f32[1,32], index: 3, kind: input, shape index: {}]   ;;  %s11086_s4 = inlined_call_operand.vmem [shape: bf16[9,32,64], index: 4, kind: input, shape index: {}]   ;;  %s11087_s5 = inlined_call_operand.vmem [shape: f32[1,64], index: 5, kind: input, shape index: {}]   ;;  %s11088_s6 = inlined_call_operand.vmem [shape: f32[1,64], index: 6, kind: input, shape index: {}]   ;;  %s11089_s7 = inlined_call_operand.vmem [shape: bf16[9,64,128], index: 7, kind: input, shape index: {}]   ;;  %s11090_s8 = inlined_call_operand.vmem [shape: f32[1,128], index: 8, kind: input, shape index: {}]   ;;  %s11091_s9 = inlined_call_operand.vmem [shape: f32[1,128], index: 9, kind: input, shape index: {}]   ;;  %s11092_s10 = inlined_call_operand.vmem [shape: bf16[9,128,256], index: 10, kind: input, shape index: {}]   ;;  %s11093_s11 = inlined_call_operand.vmem [shape: f32[1,256], index: 11, kind: input, shape index: {}]   ;;  %s11094_s12 = inlined_call_operand.vmem [shape: f32[1,256], index: 12, kind: input, shape index: {}]   ;;  %s11095_s13 = inlined_call_operand.vmem [shape: bf16[256,512], index: 13, kind: input, shape index: {}]   ;;  %s11096_s14 = inlined_call_operand.vmem [shape: f32[1,512], index: 14, kind: input, shape index: {}]   ;;  %s11097_s15 = inlined_call_operand.vmem [shape: bf16[512,256], index: 15, kind: input, shape index: {}]   ;;  %s11098_s16 = inlined_call_operand.vmem [shape: f32[1,256], index: 16, kind: input, shape index: {}]   ;;  %s11099_s17 = inlined_call_operand.vmem [shape: f32[2,1,256], index: 17, kind: output, shape index: {}]  }
   0x1   :  { %11109 = sst [smem:[#allocation5_spill]] %s11082_s0 }
   0x2   :  { %11110 = sst [smem:[#allocation6_spill]] %s11083_s1 }
   0x3 LB: > { %s8951_s25 = sadd.s32 4294967295, %s8846_s24   ;;  %p7164_p0 = scmp.ge.s32.totalorder %s8846_s24, 1  ;;  %s8846_s24 = sphi %s8945_s24, %s27_s24  }
   0x4   : > { %p488_p1 = scmp.lt.s32.totalorder %s8846_s24, 3 }
   0x6   : > { %p489_p2 = pnand %p7164_p0, %p488_p1 }
   0x8   : > { %492 = sbr.rel (%p489_p2) target bundleno = 1753 (0x6d9), region = 88 }
   0xd   : > { %s11111_s28 = sld [smem:[#allocation6_spill]]  ;;  %vm718_vm0 = vcmask 1043456   ;;  %vm719_vm1 = vcmask 1044480   ;;  %s7165_s29 = sshll.u32 %s8951_s25, 5  ;;  %vm669_vm2 = vcmask 72704   ;;  %v8848_v1 = vmov 65535  }
   0xe   : > { %v720_v2 = vsel %vm718_vm0, 4294967295, %v8848_v1  ;;  %p540_p3 = scmp.lt.s32.totalorder %s7165_s29, 63  ;;  %s11112_s19 = sld [smem:[#allocation5_spill]]  ;;  %v11103_v21 = vmov 0.0|0.0   ;;  %v8377_v23 = vld [vmem:[%s11086_s4 + $0x18] sm:$0xff]   ;;  %v11100_v29 = vlaneseq  ;;  %v8378_v41 = vld [vmem:[%s11086_s4 + $0x10] sm:$0xff]  }
   0xf   : > { %v721_v3 = vsel %vm719_vm1, %v720_v2, 0  ;;  %v9000_v22 = vcombine.low %v11103_v21, %v11103_v21  ;;  %v9010_v26 = vld [vmem:[%s11084_s2] ss:$0 sm:$0xff]  ;;  %v8850_v27 = vmov 1983009808   ;;  %v9023_v38 = vcombine.high %v11103_v21, %v11103_v21  ;;  %v8379_v51 = vld [vmem:[%s11086_s4 + $0x48] sm:$0xff]  }
  0x10   : > { %s11135_s29 = smov (!%p540_p3, %s7165_s29), 63  ;;  %v1030_v28 = vunpack.c.l.s4 %v8850_v27  ;;  %v9015_v31 = vld [vmem:[%s11085_s3] ss:$0 sm:$0xff]  ;;  %v9019_v37 = vshrl.u32 %v11100_v29, 7  ;;  %vm2080_vm3 = vsmask.f32 3328 }
  0x11   : > { %s7166_s0 = sshll.u32 %s11135_s29, 2  ;;  %v2084_v24 = vshrl.u32 %v9000_v22, 16  ;;  %v2087_v25 = vshll.u32 %v9000_v22, 16  ;;  %v2093_v44 = vshll.u32 %v9023_v38, 16  ;;  %vm2081_vm4 = vsmask.f32 7440 }
  0x12   : > { %v1031_v36 = vunpack.c.0.s8 %v1030_v28  ;;  %11113 = vst [vmem:[#allocation2_spill] sm:$0xff] %v9019_v37  ;;  %v8380_v52 = vld [vmem:[%s11086_s4 + $0x40] sm:$0xff]   ;;  %v8381_v60 = vld [vmem:[%s11086_s4 + $0x8] sm:$0xff]   ;;  %v9049_v62 = vsub.s32 0, %v9019_v37  ;;  %vm9055_vm5 = vmor %vm2080_vm3, %vm2081_vm4  ;;  %vm1940_vm6 = vcmask 1042434   ;;  %vm1942_vm7 = vcmask 1043459  }
  0x13   : > { %v8360_v0 = vld [vmem:[%s11111_s28] sm:$0x1f]   ;;  %v2086_v32 = vrot.slane %v2084_v24, 4  ;;  %v2089_v33 = vrot.slane %v2087_v25, 5  ;;  %v2095_v59 = vrot.slane %v2093_v44, 5  ;;  %vm1944_vm8 = vcmask 1044484  }
  0x14   : > { %v723_v4 = vand.u32 %v8360_v0, %v721_v3  ;;  %s8964_s1 = scalar_lea.vmem %s11112_s19, %s7166_s0  ;;  %v9034_v48 = vsub.s32 %v1031_v36, %v9019_v37  ;;  %11114 = vst [vmem:[#allocation3_spill] sm:$0xff] %v9049_v62  ;;  %vm1946_vm9 = vcmask 1045509   ;;  %vm1948_vm10 = vcmask 1046534   ;;  %p545_p4 = scmp.lt.s32.totalorder %s8951_s25, 1 }
  0x15   : > { %v8361_v5 = vld [vmem:[%s8964_s1] sm:$0xff]   ;;  %v8362_v6 = vld [vmem:[%s8964_s1 + $0x8] sm:$0xff]   ;;  %v8363_v7 = vld [vmem:[%s8964_s1 + $0x10] sm:$0xff]   ;;  %v2090_v43 = vor.u32 %v2089_v33, %v2086_v32  ;;  %vm1950_vm11 = vcmask 1047559   ;;  %vm2010_vm12 = vcmask 1040384   ;;  %vm2224_vm13 = vcmask 261120  }
  0x16   : > { %8093 = vmatprep.subr.bf16.mxu0 %v723_v4  ;;  %8343 = vmatprep.subr.bf16.mxu1 %v723_v4  ;;  %v8364_v8 = vld [vmem:[%s8964_s1 + $0x18] sm:$0xff]   ;;  %v8367_v9 = vld [vmem:[%s8964_s1 + $0x60] sm:$0xff]   ;;  %v8368_v10 = vld [vmem:[%s8964_s1 + $0x68] sm:$0xff]   ;;  %vm2395_vm14 = vcmask 1042432   ;;  %vm2396_vm15 = vcmask 1046532   ;;  %vm8852_vm3 = vmmov 0  }
  0x17   : > { %8094 = vmatpush3.bf16.msra.mxu0 %v723_v4  ;;  %8344 = vmatpush3.bf16.msra.mxu1 %v723_v4  ;;  %v8365_v11 = vld [vmem:[%s8964_s1 + $0x20] sm:$0xff]   ;;  %v8371_v12 = vld [vmem:[%s8964_s1 + $0x70] sm:$0xff]   ;;  %v8372_v13 = vld [vmem:[%s8964_s1 + $0x78] sm:$0xff]   ;;  %v2091_v58 = vrot.slane %v2090_v43, 4  ;;  %vm3514_vm4 = vsmask.f32 1280 }
  0x18   : > { %8095 = vmatprep.mubr.msk.bf16.mxu0 %vm669_vm2, %v8361_v5  ;;  %8119 = vmatprep.mubr.msk.bf16.mxu1 %vm669_vm2, %v8367_v9  ;;  %v8366_v14 = vld [vmem:[%s8964_s1 + $0x28] sm:$0xff]   ;;  %v8369_v15 = vld [vmem:[%s8964_s1 + $0x30] sm:$0xff]   ;;  %v8370_v16 = vld [vmem:[%s8964_s1 + $0x38] sm:$0xff]   ;;  %s11137_s25 = smov (!%p545_p4, %s8951_s25), 1 }
  0x19   : > { %v8373_v17 = vld [vmem:[%s8964_s1 + $0x40] sm:$0xff]   ;;  %v8374_v18 = vld [vmem:[%s8964_s1 + $0x48] sm:$0xff]   ;;  %v8375_v19 = vld [vmem:[%s8964_s1 + $0x50] sm:$0xff]   ;;  %8127 = vmatprep.subr.bf16.mxu1 %v8377_v23  ;;  %8175 = vmatprep.subr.bf16.mxu0 %v8379_v51  ;;  %s7167_s19 = sshll.u32 %s11137_s25, 1 }
  0x1a   : > { %8096 = vmatmul.mubr.msk.bf16.vlgmr.msra.gmra.mxu0 %vm669_vm2, %v8362_v6  ;;  %8120 = vmatmul.mubr.msk.bf16.vlgmr.msra.gmra.mxu1 %vm669_vm2, %v8368_v10  ;;  %v8376_v20 = vld [vmem:[%s8964_s1 + $0x58] sm:$0xff]   ;;  %s548_s21 = scalar_lea.vmem %s11099_s17, %s7167_s19 }
  0x1b   : > { %8099 = vmatprep.mubr.msk.bf16.mxu0 %vm669_vm2, %v8363_v7  ;;  %8123 = vmatprep.mubr.msk.bf16.mxu1 %vm669_vm2, %v8371_v12 }
  0x1c   : > { %8128 = vmatpush3.bf16.msra.mxu1 %v8377_v23  ;;  %8176 = vmatpush3.bf16.msra.mxu0 %v8379_v51 }
  0x1d   : > { %8129 = vmatprep.subr.bf16.mxu1 %v8378_v41  ;;  %8177 = vmatprep.subr.bf16.mxu0 %v8380_v52 }
  0x20   : > { %8130 = vmatpush3.bf16.msra.mxu1 %v8378_v41  ;;  %8178 = vmatpush3.bf16.msra.mxu0 %v8380_v52 }
  0x21   : > { %8139 = vmatprep.subr.bf16.mxu1 %v8381_v60 }
  0x22   : > { %8100 = vmatmul.mubr.msk.bf16.gmra.mxu0 %vm669_vm2, %v8364_v8  ;;  %8124 = vmatmul.mubr.msk.bf16.gmra.mxu1 %vm669_vm2, %v8372_v13 }
  0x23   : > { %8103 = vmatprep.mubr.msk.bf16.mxu0 %vm669_vm2, %v8365_v11 }
  0x2a   : > { %8104 = vmatmul.mubr.msk.bf16.gmra.mxu0 %vm669_vm2, %v8366_v14 }
  0x2b   : > { %8107 = vmatprep.mubr.msk.bf16.mxu0 %vm669_vm2, %v8369_v15  ;;  %v9072_v15 = vsel %vm9055_vm5, %v2091_v58, %v2095_v59 }
  0x32   : > { %8108 = vmatmul.mubr.msk.bf16.gmra.mxu0 %vm669_vm2, %v8370_v16 }
  0x33   : > { %8111 = vmatprep.mubr.msk.bf16.mxu0 %vm669_vm2, %v8373_v17 }
  0x3a   : > { %8112 = vmatmul.mubr.msk.bf16.gmra.mxu0 %vm669_vm2, %v8374_v18 }
  0x3b   : > { %8115 = vmatprep.mubr.msk.bf16.mxu0 %vm669_vm2, %v8375_v19 }
  0x42   : > { %8116 = vmatmul.mubr.msk.bf16.gmra.mxu0 %vm669_vm2, %v8376_v20  ;;  %vm9542_vm2 = vmor %vm2395_vm14, %vm2396_vm15 }
  0xda   : > { %v8097_v30 = vpop.f32.mrf.mxu0  ;;  %v8121_v50 = vpop.f32.mrf.mxu1 }
  0xdb   : > { %v895_v34 = vmul.f32 %v8097_v30, %v9010_v26  ;;  %v919_v56 = vmul.f32 %v8121_v50, %v9010_v26 }
  0xdc   : > { %v759_v35 = vpop.f32.mrf.mxu0  ;;  %v855_v1 = vpop.f32.mrf.mxu1 }
  0xdd   : > { %v934_v39 = vadd.f32 %v9015_v31, %v895_v34  ;;  %v893_v40 = vmul.f32 %v9010_v26, %v759_v35  ;;  %v9060_v5 = vadd.f32 %v9015_v31, %v919_v56  ;;  %v917_v6 = vmul.f32 %v9010_v26, %v855_v1 }
  0xde   : > { %v8098_v42 = vpop.f32.mrf.mxu0  ;;  %v8122_v20 = vpop.f32.mrf.mxu1 }
  0xdf   : > { %v932_v45 = vadd.f32 %v9015_v31, %v893_v40  ;;  %v896_v46 = vmul.f32 %v8098_v42, %v9010_v26  ;;  %v966_v47 = vmax.f32 %v934_v39, 0.0  ;;  %v990_v13 = vmax.f32 %v9060_v5, 0.0 }
  0xe0   : > { %v762_v49 = vpop.f32.mrf.mxu0  ;;  %v9068_v14 = vadd.f32 %v9015_v31, %v917_v6  ;;  %v9078_v28 = vmul.f32 %v8122_v20, %v9010_v26 }
  0xe1   : > { %v964_v53 = vmax.f32 %v932_v45, 0.0  ;;  %v935_v54 = vadd.f32 %v9015_v31, %v896_v46  ;;  %v894_v55 = vmul.f32 %v9010_v26, %v762_v49 }
  0xe2   : > { %v8101_v57 = vpop.f32.mrf.mxu0  ;;  %v988_v41 = vmax.f32 %v9068_v14, 0.0 }
  0xe3   : > { %v996_v61 = vmax.f32 %v964_v53, %v966_v47  ;;  %v933_v63 = vadd.f32 %v9015_v31, %v894_v55  ;;  %v899_v0 = vmul.f32 %v8101_v57, %v9010_v26  ;;  %v967_v3 = vmax.f32 %v935_v54, 0.0 }
  0xe4   : > { %v775_v4 = vpop.f32.mrf.mxu0 }
  0xe5   : > { %v1028_v7 = vcombine.high %v996_v61, %v996_v61  ;;  %v1035_v8 = vrot.slane %v996_v61, %v9034_v48  ;;  %v965_v9 = vmax.f32 %v933_v63, 0.0  ;;  %v938_v10 = vadd.f32 %v9015_v31, %v899_v0 }
  0xe6   : > { %v897_v11 = vmul.f32 %v9010_v26, %v775_v4  ;;  %v8102_v12 = vpop.f32.mrf.mxu0 }
  0xe7   : > { %v1042_v16 = vrot.slane %v1028_v7, %v9034_v48  ;;  %v1043_v17 = vcombine.high %v1035_v8, %v1035_v8  ;;  %v7203_v18 = vrot.slane %v1035_v8, 9  ;;  %v997_v19 = vmax.f32 %v965_v9, %v967_v3 }
  0xe8   : > { %v970_v23 = vmax.f32 %v938_v10, 0.0  ;;  %v936_v24 = vadd.f32 %v9015_v31, %v897_v11  ;;  %v900_v25 = vmul.f32 %v8102_v12, %v9010_v26  ;;  %v778_v27 = vpop.f32.mrf.mxu0  ;;  %v9099_v12 = vld [vmem:[%s11086_s4 + $0x68] sm:$0xff]  }
  0xe9   : > { %v1044_v30 = vcombine.high %v1042_v16, %v1042_v16  ;;  %v7204_v32 = vrot.slane %v1043_v17, 9  ;;  %v7205_v33 = vrot.slane %v1042_v16, 9  ;;  %v1556_v34 = vmax.f32 %v1035_v8, %v7203_v18  ;;  %8199 = vmatprep.subr.bf16.mxu0 %v9099_v12 }
  0xea   : > { %v1045_v35 = vcombine.high %v997_v19, %v997_v19  ;;  %v1052_v36 = vrot.slane %v997_v19, %v9034_v48  ;;  %v968_v39 = vmax.f32 %v936_v24, 0.0  ;;  %v8105_v40 = vpop.f32.mrf.mxu0  ;;  %v9083_v45 = vadd.f32 %v9015_v31, %v900_v25 }
  0xeb   : > { %v7206_v42 = vrot.slane %v1044_v30, 9  ;;  %v1557_v43 = vmax.f32 %v1043_v17, %v7204_v32  ;;  %v1558_v44 = vmax.f32 %v1042_v16, %v7205_v33  ;;  %v1687_v52 = vrot.slane %v1556_v34, %v9049_v62 }
  0xec   : > { %v1059_v46 = vrot.slane %v1045_v35, %v9034_v48  ;;  %v1060_v47 = vcombine.high %v1052_v36, %v1052_v36  ;;  %v7207_v49 = vrot.slane %v1052_v36, 9  ;;  %v998_v50 = vmax.f32 %v968_v39, %v970_v23  ;;  %v791_v55 = vpop.f32.mrf.mxu0 }
  0xed   : > { %v1559_v51 = vmax.f32 %v1044_v30, %v7206_v42  ;;  %v1691_v53 = vrot.slane %v1557_v43, %v9049_v62  ;;  %v1695_v54 = vrot.slane %v1558_v44, %v9049_v62  ;;  %v971_v33 = vmax.f32 %v9083_v45, 0.0 }
  0xee   : > { %v1061_v56 = vcombine.high %v1059_v46, %v1059_v46  ;;  %v7208_v57 = vrot.slane %v1060_v47, 9  ;;  %v7209_v58 = vrot.slane %v1059_v46, 9  ;;  %v1560_v59 = vmax.f32 %v1052_v36, %v7207_v49  ;;  %v8106_v11 = vpop.f32.mrf.mxu0 }
  0xef   : > { %v1699_v60 = vrot.slane %v1559_v51, %v9049_v62  ;;  %v1941_v61 = vsel %vm1940_vm6, %v1691_v53, %v1687_v52  ;;  %v1062_v63 = vcombine.high %v998_v50, %v998_v50  ;;  %v1069_v0 = vrot.slane %v998_v50, %v9034_v48 }
  0xf0   : > { %v1943_v1 = vsel %vm1942_vm7, %v1695_v54, %v1941_v61  ;;  %v7210_v3 = vrot.slane %v1061_v56, 9  ;;  %v1561_v4 = vmax.f32 %v1060_v47, %v7208_v57  ;;  %v1562_v6 = vmax.f32 %v1059_v46, %v7209_v58  ;;  %v794_v43 = vpop.f32.mrf.mxu0 }
  0xf1   : > { %v1703_v7 = vrot.slane %v1560_v59, %v9049_v62  ;;  %v1945_v8 = vsel %vm1944_vm8, %v1699_v60, %v1943_v1  ;;  %v1076_v9 = vrot.slane %v1062_v63, %v9034_v48  ;;  %v1077_v10 = vcombine.high %v1069_v0, %v1069_v0 }
  0xf2   : > { %v9101_v16 = vmax.f32 %v1061_v56, %v7210_v3  ;;  %v1707_v17 = vrot.slane %v1561_v4, %v9049_v62  ;;  %v1711_v18 = vrot.slane %v1562_v6, %v9049_v62  ;;  %v7211_v19 = vrot.slane %v1069_v0, 9  ;;  %v8109_v6 = vpop.f32.mrf.mxu0 }
  0xf3   : > { %v1947_v20 = vsel %vm1946_vm9, %v1703_v7, %v1945_v8  ;;  %v1078_v23 = vcombine.high %v1076_v9, %v1076_v9  ;;  %v7212_v24 = vrot.slane %v1077_v10, 9  ;;  %v7213_v25 = vrot.slane %v1076_v9, 9 }
  0xf4   : > { %v1949_v30 = vsel %vm1948_vm10, %v1707_v17, %v1947_v20  ;;  %v1564_v32 = vmax.f32 %v1069_v0, %v7211_v19  ;;  %v898_v34 = vmul.f32 %v9010_v26, %v778_v27  ;;  %v1715_v35 = vrot.slane %v9101_v16, %v9049_v62 }
  0xf5   : > { %v7214_v36 = vrot.slane %v1078_v23, 9  ;;  %v1565_v39 = vmax.f32 %v1077_v10, %v7212_v24  ;;  %v1566_v42 = vmax.f32 %v1076_v9, %v7213_v25  ;;  %v1951_v44 = vsel %vm1950_vm11, %v1711_v18, %v1949_v30 }
  0xf6   : > { %v1719_v46 = vrot.slane %v1564_v32, %v9049_v62  ;;  %v937_v47 = vadd.f32 %v9015_v31, %v898_v34  ;;  %v903_v49 = vmul.f32 %v8105_v40, %v9010_v26  ;;  %v901_v51 = vmul.f32 %v9010_v26, %v791_v55 }
  0xf7   : > { %v1567_v50 = vmax.f32 %v1078_v23, %v7214_v36  ;;  %v1723_v45 = vrot.slane %v1565_v39, %v9049_v62  ;;  %v1727_v27 = vrot.slane %v1566_v42, %v9049_v62  ;;  %v904_v54 = vmul.f32 %v8106_v11, %v9010_v26 }
  0xf8   : > { %v969_v52 = vmax.f32 %v937_v47, 0.0  ;;  %v942_v53 = vadd.f32 %v9015_v31, %v903_v49  ;;  %v902_v56 = vmul.f32 %v9010_v26, %v794_v43  ;;  %v940_v40 = vadd.f32 %v9015_v31, %v901_v51 }
  0xf9   : > { %v1731_v57 = vrot.slane %v1567_v50, %v9049_v62  ;;  %v1952_v58 = vsel %vm1940_vm6, %v1723_v45, %v1719_v46  ;;  %v1008_v59 = vmax.f32 %v988_v41, %v990_v13  ;;  %v9130_v55 = vsel %vm2010_vm12, 0.0, %v1951_v44 }
  0xfa   : > { %v1953_v60 = vsel %vm1942_vm7, %v1727_v27, %v1952_v58  ;;  %v999_v61 = vmax.f32 %v969_v52, %v971_v33  ;;  %v943_v63 = vadd.f32 %v9015_v31, %v904_v54  ;;  %v974_v0 = vmax.f32 %v942_v53, 0.0 }
  0xfb   : > { %v972_v1 = vmax.f32 %v940_v40, 0.0  ;;  %v941_v3 = vadd.f32 %v9015_v31, %v902_v56  ;;  %v1232_v4 = vcombine.high %v1008_v59, %v1008_v59  ;;  %v1954_v14 = vsel %vm1944_vm8, %v1731_v57, %v1953_v60  ;;  %v807_v60 = vpop.f32.mrf.mxu0 }
  0xfc   : > { %v1079_v7 = vcombine.high %v999_v61, %v999_v61  ;;  %v1086_v5 = vrot.slane %v999_v61, %v9034_v48  ;;  %v9138_v13 = vrot.slane %v1008_v59, %v9034_v48  ;;  %v975_v8 = vmax.f32 %v943_v63, 0.0 }
  0xfd   : > { %v1000_v41 = vmax.f32 %v972_v1, %v974_v0  ;;  %v973_v9 = vmax.f32 %v941_v3, 0.0  ;;  %v9141_v10 = vrot.slane %v1232_v4, %v9034_v48  ;;  %v9145_v19 = vmul.f32 %v8109_v6, %v9010_v26 }
  0xfe   : > { %v1093_v11 = vrot.slane %v1079_v7, %v9034_v48  ;;  %v1094_v17 = vcombine.high %v1086_v5, %v1086_v5  ;;  %v7215_v18 = vrot.slane %v1086_v5, 9  ;;  %v1247_v25 = vcombine.high %v9138_v13, %v9138_v13 }
  0xff   : > { %v1096_v20 = vcombine.high %v1000_v41, %v1000_v41  ;;  %v1103_v23 = vrot.slane %v1000_v41, %v9034_v48  ;;  %v1001_v24 = vmax.f32 %v973_v9, %v975_v8  ;;  %v1248_v59 = vcombine.high %v9141_v10, %v9141_v10  ;;  %v858_v9 = vpop.f32.mrf.mxu1 }
 0x100   : > { %v1095_v30 = vcombine.high %v1093_v11, %v1093_v11  ;;  %v7216_v32 = vrot.slane %v1094_v17, 9  ;;  %v7217_v33 = vrot.slane %v1093_v11, 9  ;;  %v1568_v34 = vmax.f32 %v1086_v5, %v7215_v18 }
 0x101   : > { %v1110_v36 = vrot.slane %v1096_v20, %v9034_v48  ;;  %v1111_v39 = vcombine.high %v1103_v23, %v1103_v23  ;;  %v7219_v42 = vrot.slane %v1103_v23, 9  ;;  %v1113_v43 = vcombine.high %v1001_v24, %v1001_v24 }
 0x102   : > { %v7218_v44 = vrot.slane %v1095_v30, 9  ;;  %v1569_v46 = vmax.f32 %v1094_v17, %v7216_v32  ;;  %v1570_v47 = vmax.f32 %v1093_v11, %v7217_v33  ;;  %v1735_v49 = vrot.slane %v1568_v34, %v9049_v62 }
 0x103   : > { %v1112_v50 = vcombine.high %v1110_v36, %v1110_v36  ;;  %v7220_v45 = vrot.slane %v1111_v39, 9  ;;  %v7221_v27 = vrot.slane %v1110_v36, 9  ;;  %v1572_v51 = vmax.f32 %v1103_v23, %v7219_v42  ;;  %v8110_v23 = vpop.f32.mrf.mxu0 }
 0x104   : > { %v9152_v52 = vmax.f32 %v1095_v30, %v7218_v44  ;;  %v1739_v53 = vrot.slane %v1569_v46, %v9049_v62  ;;  %v1743_v54 = vrot.slane %v1570_v47, %v9049_v62  ;;  %v1955_v56 = vsel %vm1946_vm9, %v1735_v49, %v1954_v14  ;;  %v8125_v49 = vpop.f32.mrf.mxu1 }
 0x105   : > { %v7222_v57 = vrot.slane %v1112_v50, 9  ;;  %v1573_v58 = vmax.f32 %v1111_v39, %v7220_v45  ;;  %v1574_v40 = vmax.f32 %v1110_v36, %v7221_v27  ;;  %v1751_v63 = vrot.slane %v1572_v51, %v9049_v62 }
 0x106   : > { %v1956_v61 = vsel %vm1948_vm10, %v1739_v53, %v1955_v56  ;;  %v1120_v0 = vrot.slane %v1001_v24, %v9034_v48  ;;  %v1127_v1 = vrot.slane %v1113_v43, %v9034_v48  ;;  %v1747_v3 = vrot.slane %v9152_v52, %v9049_v62  ;;  %v810_v53 = vpop.f32.mrf.mxu0 }
 0x107   : > { %v1575_v4 = vmax.f32 %v1112_v50, %v7222_v57  ;;  %v1755_v6 = vrot.slane %v1573_v58, %v9049_v62  ;;  %v1759_v7 = vrot.slane %v1574_v40, %v9049_v62  ;;  %v1957_v5 = vsel %vm1950_vm11, %v1743_v54, %v1956_v61 }
 0x108   : > { %v1128_v14 = vcombine.high %v1120_v0, %v1120_v0  ;;  %v1129_v41 = vcombine.high %v1127_v1, %v1127_v1  ;;  %v7223_v8 = vrot.slane %v1120_v0, 9  ;;  %v7225_v18 = vrot.slane %v1127_v1, 9 }
 0x109   : > { %v1763_v11 = vrot.slane %v1575_v4, %v9049_v62  ;;  %v1958_v17 = vsel %vm1940_vm6, %v1755_v6, %v1751_v63  ;;  %v7251_v20 = vrot.slane %v9138_v13, 9  ;;  %v7252_v39 = vrot.slane %v1247_v25, 9 }
 0x10a   : > { %v1959_v24 = vsel %vm1942_vm7, %v1759_v7, %v1958_v17  ;;  %v7224_v30 = vrot.slane %v1128_v14, 9  ;;  %v7226_v32 = vrot.slane %v1129_v41, 9  ;;  %v1576_v33 = vmax.f32 %v1120_v0, %v7223_v8 }
 0x10b   : > { %v1578_v34 = vmax.f32 %v1127_v1, %v7225_v18  ;;  %v1960_v36 = vsel %vm1944_vm8, %v1763_v11, %v1959_v24  ;;  %v7253_v42 = vrot.slane %v9141_v10, 9  ;;  %v7254_v47 = vrot.slane %v1248_v59, 9 }
 0x10c   : > { %v1577_v43 = vmax.f32 %v1128_v14, %v7224_v30  ;;  %v9174_v44 = vmax.f32 %v1129_v41, %v7226_v32  ;;  %v1767_v46 = vrot.slane %v1576_v33, %v9049_v62  ;;  %v1604_v45 = vmax.f32 %v9138_v13, %v7251_v20 }
 0x10d   : > { %v1775_v50 = vrot.slane %v1578_v34, %v9049_v62  ;;  %v1605_v27 = vmax.f32 %v1247_v25, %v7252_v39  ;;  %v1606_v51 = vmax.f32 %v9141_v10, %v7253_v42  ;;  %v9181_v54 = vsel %vm2010_vm12, 0.0, %v1957_v5 }
 0x10e   : > { %v1771_v56 = vrot.slane %v1577_v43, %v9049_v62  ;;  %v1961_v57 = vsel %vm1946_vm9, %v1767_v46, %v1960_v36  ;;  %v1607_v58 = vmax.f32 %v1248_v59, %v7254_v47  ;;  %v1879_v40 = vrot.slane %v1604_v45, %v9049_v62  ;;  %v871_v59 = vpop.f32.mrf.mxu1 }
 0x10f   : > { %v1883_v61 = vrot.slane %v1605_v27, %v9049_v62  ;;  %v1887_v63 = vrot.slane %v1606_v51, %v9049_v62  ;;  %v946_v13 = vadd.f32 %v9015_v31, %v9145_v19  ;;  %v1779_v10 = vrot.slane %v9174_v44, %v9049_v62  ;;  %v8113_v19 = vpop.f32.mrf.mxu0 }
 0x110   : > { %v1962_v25 = vsel %vm1948_vm10, %v1771_v56, %v1961_v57  ;;  %v959_v0 = vadd.f32 %v9015_v31, %v9078_v28  ;;  %v905_v1 = vmul.f32 %v9010_v26, %v807_v60  ;;  %v1891_v6 = vrot.slane %v1607_v58, %v9049_v62  ;;  %v8126_v32 = vpop.f32.mrf.mxu1 }
 0x111   : > { %v1963_v4 = vsel %vm1950_vm11, %v1775_v50, %v1962_v25  ;;  %v1982_v7 = vsel %vm1940_vm6, %v1883_v61, %v1879_v40  ;;  %v918_v5 = vmul.f32 %v9010_v26, %v858_v9  ;;  %v978_v8 = vmax.f32 %v946_v13, 0.0 }
 0x112   : > { %v9201_v14 = vsel %vm2010_vm12, 0.0, %v1963_v4  ;;  %v1983_v41 = vsel %vm1942_vm7, %v1887_v63, %v1982_v7  ;;  %v944_v28 = vadd.f32 %v9015_v31, %v905_v1  ;;  %v991_v11 = vmax.f32 %v959_v0, 0.0 }
 0x113   : > { %v957_v60 = vadd.f32 %v9015_v31, %v918_v5  ;;  %v908_v17 = vmul.f32 %v8110_v23, %v9010_v26  ;;  %v923_v18 = vmul.f32 %v8125_v49, %v9010_v26  ;;  %v906_v24 = vmul.f32 %v9010_v26, %v810_v53 }
 0x114   : > { %v976_v20 = vmax.f32 %v944_v28, 0.0  ;;  %v921_v9 = vmul.f32 %v9010_v26, %v871_v59  ;;  %v911_v30 = vmul.f32 %v8113_v19, %v9010_v26  ;;  %v924_v39 = vmul.f32 %v8126_v32, %v9010_v26 }
 0x115   : > { %v989_v33 = vmax.f32 %v957_v60, 0.0  ;;  %v947_v34 = vadd.f32 %v9015_v31, %v908_v17  ;;  %v962_v36 = vadd.f32 %v9015_v31, %v923_v18  ;;  %v945_v23 = vadd.f32 %v9015_v31, %v906_v24 }
 0x116   : > { %v1002_v42 = vmax.f32 %v976_v20, %v978_v8  ;;  %v960_v43 = vadd.f32 %v9015_v31, %v921_v9  ;;  %v9217_v46 = vadd.f32 %v9015_v31, %v911_v30  ;;  %v1984_v49 = vsel %vm1944_vm8, %v1891_v6, %v1983_v41 }
 0x117   : > { %v1009_v47 = vmax.f32 %v989_v33, %v991_v11  ;;  %v979_v50 = vmax.f32 %v947_v34, 0.0  ;;  %v994_v45 = vmax.f32 %v962_v36, 0.0  ;;  %v977_v53 = vmax.f32 %v945_v23, 0.0 }
 0x118   : > { %v1130_v27 = vcombine.high %v1002_v42, %v1002_v42  ;;  %v1137_v51 = vrot.slane %v1002_v42, %v9034_v48  ;;  %v992_v56 = vmax.f32 %v960_v43, 0.0  ;;  %v982_v40 = vmax.f32 %v9217_v46, 0.0 }
 0x119   : > { %v1249_v57 = vcombine.high %v1009_v47, %v1009_v47  ;;  %v1256_v58 = vrot.slane %v1009_v47, %v9034_v48  ;;  %v9224_v61 = vadd.f32 %v9015_v31, %v924_v39  ;;  %v1003_v0 = vmax.f32 %v977_v53, %v979_v50 }
 0x11a   : > { %v1144_v63 = vrot.slane %v1130_v27, %v9034_v48  ;;  %v1145_v13 = vcombine.high %v1137_v51, %v1137_v51  ;;  %v7227_v25 = vrot.slane %v1137_v51, 9  ;;  %v1010_v6 = vmax.f32 %v992_v56, %v994_v45  ;;  %v823_v45 = vpop.f32.mrf.mxu0 }
 0x11b   : > { %v1263_v1 = vrot.slane %v1249_v57, %v9034_v48  ;;  %v1264_v59 = vcombine.high %v1256_v58, %v1256_v58  ;;  %v7255_v4 = vrot.slane %v1256_v58, 9  ;;  %v1147_v42 = vcombine.high %v1003_v0, %v1003_v0 }
 0x11c   : > { %v1146_v7 = vcombine.high %v1144_v63, %v1144_v63  ;;  %v7228_v5 = vrot.slane %v1145_v13, 9  ;;  %v7229_v19 = vrot.slane %v1144_v63, 9  ;;  %v1580_v41 = vmax.f32 %v1137_v51, %v7227_v25 }
 0x11d   : > { %v1265_v8 = vcombine.high %v1263_v1, %v1263_v1  ;;  %v7256_v28 = vrot.slane %v1264_v59, 9  ;;  %v7257_v11 = vrot.slane %v1263_v1, 9  ;;  %v1608_v60 = vmax.f32 %v1256_v58, %v7255_v4 }
 0x11e   : > { %v7230_v17 = vrot.slane %v1146_v7, 9  ;;  %v1581_v18 = vmax.f32 %v1145_v13, %v7228_v5  ;;  %v1582_v20 = vmax.f32 %v1144_v63, %v7229_v19  ;;  %v1783_v24 = vrot.slane %v1580_v41, %v9049_v62  ;;  %v8114_v19 = vpop.f32.mrf.mxu0 }
 0x11f   : > { %v7258_v9 = vrot.slane %v1265_v8, 9  ;;  %v1609_v30 = vmax.f32 %v1264_v59, %v7256_v28  ;;  %v1610_v32 = vmax.f32 %v1263_v1, %v7257_v11  ;;  %v1895_v33 = vrot.slane %v1608_v60, %v9049_v62 }
 0x120   : > { %v1583_v34 = vmax.f32 %v1146_v7, %v7230_v17  ;;  %v1787_v36 = vrot.slane %v1581_v18, %v9049_v62  ;;  %v1791_v39 = vrot.slane %v1582_v20, %v9049_v62  ;;  %v1154_v53 = vrot.slane %v1003_v0, %v9034_v48 }
 0x121   : > { %v9232_v23 = vmax.f32 %v1265_v8, %v7258_v9  ;;  %v1899_v43 = vrot.slane %v1609_v30, %v9049_v62  ;;  %v1903_v47 = vrot.slane %v1610_v32, %v9049_v62  ;;  %v1985_v50 = vsel %vm1946_vm9, %v1895_v33, %v1984_v49 }
 0x122   : > { %v1795_v27 = vrot.slane %v1583_v34, %v9049_v62  ;;  %v1964_v51 = vsel %vm1940_vm6, %v1787_v36, %v1783_v24  ;;  %v1161_v56 = vrot.slane %v1147_v42, %v9034_v48  ;;  %v1266_v63 = vcombine.high %v1010_v6, %v1010_v6  ;;  %v874_v36 = vpop.f32.mrf.mxu1 }
 0x123   : > { %v1965_v57 = vsel %vm1942_vm7, %v1791_v39, %v1964_v51  ;;  %v1986_v58 = vsel %vm1948_vm10, %v1899_v43, %v1985_v50  ;;  %v995_v13 = vmax.f32 %v9224_v61, 0.0  ;;  %v1907_v25 = vrot.slane %v9232_v23, %v9049_v62  ;;  %v826_v39 = vpop.f32.mrf.mxu0  ;;  %v8382_v23 = vld [vmem:[%s11086_s4] sm:$0xff]  }
 0x124   : > { %v1162_v49 = vcombine.high %v1154_v53, %v1154_v53  ;;  %v1163_v1 = vcombine.high %v1161_v56, %v1161_v56  ;;  %v7231_v59 = vrot.slane %v1154_v53, 9  ;;  %v1987_v4 = vsel %vm1950_vm11, %v1903_v47, %v1986_v58 }
 0x125   : > { %v7233_v7 = vrot.slane %v1161_v56, 9  ;;  %v1966_v0 = vsel %vm1944_vm8, %v1795_v27, %v1965_v57  ;;  %v1273_v5 = vrot.slane %v1010_v6, %v9034_v48  ;;  %v1280_v11 = vrot.slane %v1266_v63, %v9034_v48 }
 0x126   : > { %v7232_v41 = vrot.slane %v1162_v49, 9  ;;  %v7234_v8 = vrot.slane %v1163_v1, 9  ;;  %v1584_v28 = vmax.f32 %v1154_v53, %v7231_v59  ;;  %v909_v18 = vmul.f32 %v9010_v26, %v823_v45 }
 0x127   : > { %v1586_v61 = vmax.f32 %v1161_v56, %v7233_v7  ;;  %v1281_v60 = vcombine.high %v1273_v5, %v1273_v5  ;;  %v7259_v17 = vrot.slane %v1273_v5, 9  ;;  %v1282_v30 = vcombine.high %v1280_v11, %v1280_v11 }
 0x128   : > { %v1585_v20 = vmax.f32 %v1162_v49, %v7232_v41  ;;  %v1587_v24 = vmax.f32 %v1163_v1, %v7234_v8  ;;  %v1799_v9 = vrot.slane %v1584_v28, %v9049_v62  ;;  %v7261_v6 = vrot.slane %v1280_v11, 9 }
 0x129   : > { %v1807_v32 = vrot.slane %v1586_v61, %v9049_v62  ;;  %v7260_v33 = vrot.slane %v1281_v60, 9  ;;  %v1612_v34 = vmax.f32 %v1273_v5, %v7259_v17  ;;  %v7262_v50 = vrot.slane %v1282_v30, 9 }
 0x12a   : > { %v1803_v42 = vrot.slane %v1585_v20, %v9049_v62  ;;  %v1811_v43 = vrot.slane %v1587_v24, %v9049_v62  ;;  %v1967_v47 = vsel %vm1946_vm9, %v1799_v9, %v1966_v0  ;;  %v1614_v27 = vmax.f32 %v1280_v11, %v7261_v6  ;;  %v8117_v0 = vpop.f32.mrf.mxu0 }
 0x12b   : > { %v1613_v45 = vmax.f32 %v1281_v60, %v7260_v33  ;;  %v1911_v51 = vrot.slane %v1612_v34, %v9049_v62  ;;  %v948_v53 = vadd.f32 %v9015_v31, %v909_v18  ;;  %v9259_v56 = vsel %vm2010_vm12, 0.0, %v1987_v4 }
 0x12c   : > { %v1968_v57 = vsel %vm1948_vm10, %v1803_v42, %v1967_v47  ;;  %v1615_v58 = vmax.f32 %v1282_v30, %v7262_v50  ;;  %v922_v63 = vmul.f32 %v9010_v26, %v874_v36  ;;  %v1919_v59 = vrot.slane %v1614_v27, %v9049_v62 }
 0x12d   : > { %v1969_v49 = vsel %vm1950_vm11, %v1807_v32, %v1968_v57  ;;  %v1915_v1 = vrot.slane %v1613_v45, %v9049_v62  ;;  %v980_v7 = vmax.f32 %v948_v53, 0.0  ;;  %v912_v8 = vmul.f32 %v8114_v19, %v9010_v26 }
 0x12e   : > { %v9267_v5 = vsel %vm2010_vm12, 0.0, %v1969_v49  ;;  %v1923_v41 = vrot.slane %v1615_v58, %v9049_v62  ;;  %v961_v4 = vadd.f32 %v9015_v31, %v922_v63  ;;  %v9273_v28 = vsel %vm2010_vm12, %v1811_v43, 0.0 }
 0x12f   : > { %v1988_v11 = vsel %vm1940_vm6, %v1915_v1, %v1911_v51  ;;  %v1004_v61 = vmax.f32 %v980_v7, %v982_v40  ;;  %v910_v60 = vmul.f32 %v9010_v26, %v826_v39  ;;  %v951_v20 = vadd.f32 %v9015_v31, %v912_v8 }
 0x130   : > { %v1989_v17 = vsel %vm1942_vm7, %v1919_v59, %v1988_v11  ;;  %v993_v18 = vmax.f32 %v961_v4, 0.0  ;;  %v915_v24 = vmul.f32 %v8117_v0, %v9010_v26  ;;  %v9284_v19 = vpack.c.bf16 %v9267_v5, %v9267_v5 }
 0x131   : > { %v1164_v9 = vcombine.high %v1004_v61, %v1004_v61  ;;  %v1171_v30 = vrot.slane %v1004_v61, %v9034_v48  ;;  %v949_v32 = vadd.f32 %v9015_v31, %v910_v60  ;;  %v1990_v40 = vsel %vm1944_vm8, %v1923_v41, %v1989_v17  ;;  %v839_v17 = vpop.f32.mrf.mxu0 }
 0x132   : > { %v1011_v46 = vmax.f32 %v993_v18, %v995_v13  ;;  %v983_v33 = vmax.f32 %v951_v20, 0.0  ;;  %v9290_v6 = vadd.f32 %v9015_v31, %v915_v24  ;;  %v9298_v50 = vsel %vm2010_vm12, %v1715_v35, 0.0 }
 0x133   : > { %v1178_v34 = vrot.slane %v1164_v9, %v9034_v48  ;;  %v1179_v36 = vcombine.high %v1171_v30, %v1171_v30  ;;  %v7235_v39 = vrot.slane %v1171_v30, 9  ;;  %v981_v42 = vmax.f32 %v949_v32, 0.0 }
 0x134   : > { %v1283_v43 = vcombine.high %v1011_v46, %v1011_v46  ;;  %v1290_v47 = vrot.slane %v1011_v46, %v9034_v48  ;;  %v9302_v13 = vpack.c.bf16 %v9130_v55, %v9130_v55  ;;  %v9363_v52 = vpack.c.bf16 %v9181_v54, %v9181_v54 }
 0x135   : > { %v1180_v45 = vcombine.high %v1178_v34, %v1178_v34  ;;  %v7236_v27 = vrot.slane %v1179_v36, 9  ;;  %v7237_v51 = vrot.slane %v1178_v34, 9  ;;  %v1588_v53 = vmax.f32 %v1171_v30, %v7235_v39 }
 0x136   : > { %v1297_v57 = vrot.slane %v1283_v43, %v9034_v48  ;;  %v1298_v58 = vcombine.high %v1290_v47, %v1290_v47  ;;  %v7263_v63 = vrot.slane %v1290_v47, 9  ;;  %v1005_v49 = vmax.f32 %v981_v42, %v983_v33 }
 0x137   : > { %v7238_v1 = vrot.slane %v1180_v45, 9  ;;  %v1589_v59 = vmax.f32 %v1179_v36, %v7236_v27  ;;  %v1590_v7 = vmax.f32 %v1178_v34, %v7237_v51  ;;  %v1815_v16 = vrot.slane %v1588_v53, %v9049_v62  ;;  %v8118_v51 = vpop.f32.mrf.mxu0 }
 0x138   : > { %v1299_v35 = vcombine.high %v1297_v57, %v1297_v57  ;;  %v7264_v0 = vrot.slane %v1298_v58, 9  ;;  %v7265_v41 = vrot.slane %v1297_v57, 9  ;;  %v1616_v4 = vmax.f32 %v1290_v47, %v7263_v63 }
 0x139   : > { %v1591_v8 = vmax.f32 %v1180_v45, %v7238_v1  ;;  %v1819_v11 = vrot.slane %v1589_v59, %v9049_v62  ;;  %v1823_v61 = vrot.slane %v1590_v7, %v9049_v62  ;;  %v1181_v60 = vcombine.high %v1005_v49, %v1005_v49 }
 0x13a   : > { %v7266_v18 = vrot.slane %v1299_v35, 9  ;;  %v1617_v20 = vmax.f32 %v1298_v58, %v7264_v0  ;;  %v1618_v24 = vmax.f32 %v1297_v57, %v7265_v41  ;;  %v1927_v9 = vrot.slane %v1616_v4, %v9049_v62 }
 0x13b   : > { %v1827_v30 = vrot.slane %v1591_v8, %v9049_v62  ;;  %v1970_v32 = vsel %vm1940_vm6, %v1819_v11, %v1815_v16  ;;  %v1188_v46 = vrot.slane %v1005_v49, %v9034_v48  ;;  %v1195_v33 = vrot.slane %v1181_v60, %v9034_v48  ;;  %v842_v11 = vpop.f32.mrf.mxu0 }
 0x13c   : > { %v1971_v34 = vsel %vm1942_vm7, %v1823_v61, %v1970_v32  ;;  %v9314_v36 = vmax.f32 %v1299_v35, %v7266_v18  ;;  %v1931_v39 = vrot.slane %v1617_v20, %v9049_v62  ;;  %v1935_v42 = vrot.slane %v1618_v24, %v9049_v62 }
 0x13d   : > { %v1991_v43 = vsel %vm1946_vm9, %v1927_v9, %v1990_v40  ;;  %v1196_v47 = vcombine.high %v1188_v46, %v1188_v46  ;;  %v1197_v45 = vcombine.high %v1195_v33, %v1195_v33  ;;  %v7239_v27 = vrot.slane %v1188_v46, 9 }
 0x13e   : > { %v1939_v53 = vrot.slane %v9314_v36, %v9049_v62  ;;  %v1992_v57 = vsel %vm1948_vm10, %v1931_v39, %v1991_v43  ;;  %v7241_v58 = vrot.slane %v1195_v33, 9  ;;  %v986_v63 = vmax.f32 %v9290_v6, 0.0  ;;  %v8387_v36 = vld [vmem:[%s11086_s4 + $0x88] sm:$0xff]  }
 0x13f   : > { %v7240_v49 = vrot.slane %v1196_v47, 9  ;;  %v7242_v1 = vrot.slane %v1197_v45, 9  ;;  %v1592_v59 = vmax.f32 %v1188_v46, %v7239_v27  ;;  %v1972_v7 = vsel %vm1944_vm8, %v1827_v30, %v1971_v34 }
 0x140   : > { %v9325_v16 = vsel %vm1950_vm11, %v1935_v42, %v1992_v57  ;;  %v1594_v40 = vmax.f32 %v1195_v33, %v7241_v58  ;;  %v9329_v35 = vpack.c.bf16 %v9298_v50, %v9298_v50  ;;  %v2098_v0 = vshrl.u32 %v9302_v13, 16 }
 0x141   : > { %v1593_v41 = vmax.f32 %v1196_v47, %v7240_v49  ;;  %v9332_v4 = vmax.f32 %v1197_v45, %v7242_v1  ;;  %v1831_v6 = vrot.slane %v1592_v59, %v9049_v62  ;;  %v2101_v8 = vshll.u32 %v9302_v13, 16 }
 0x142   : > { %v1839_v61 = vrot.slane %v1594_v40, %v9049_v62  ;;  %v2100_v60 = vrot.slane %v2098_v0, 4  ;;  %v2107_v18 = vshll.u32 %v9329_v35, 16  ;;  %v913_v20 = vmul.f32 %v9010_v26, %v839_v17 }
 0x143   : > { %v1835_v24 = vrot.slane %v1593_v41, %v9049_v62  ;;  %v1843_v9 = vrot.slane %v9332_v4, %v9049_v62  ;;  %v1973_v30 = vsel %vm1946_vm9, %v1831_v6, %v1972_v7  ;;  %v2103_v32 = vrot.slane %v2101_v8, 5 }
 0x144   : > { %v2109_v46 = vrot.slane %v2107_v18, 5  ;;  %v952_v33 = vadd.f32 %v9015_v31, %v913_v20  ;;  %v916_v34 = vmul.f32 %v8118_v51, %v9010_v26  ;;  %v914_v39 = vmul.f32 %v9010_v26, %v842_v11 }
 0x145   : > { %v1974_v42 = vsel %vm1948_vm10, %v1835_v24, %v1973_v30  ;;  %v2104_v43 = vor.u32 %v2103_v32, %v2100_v60  ;;  %v2020_v17 = vsel %vm2010_vm12, %v1747_v3, 0.0  ;;  %v2021_v47 = vsel %vm2010_vm12, %v1779_v10, 0.0 }
 0x146   : > { %v1975_v45 = vsel %vm1950_vm11, %v1839_v61, %v1974_v42  ;;  %v984_v27 = vmax.f32 %v952_v33, 0.0  ;;  %v955_v51 = vadd.f32 %v9015_v31, %v916_v34  ;;  %v953_v26 = vadd.f32 %v9015_v31, %v914_v39 }
 0x147   : > { %v9359_v57 = vsel %vm2010_vm12, 0.0, %v1975_v45  ;;  %v2105_v58 = vrot.slane %v2104_v43, 4  ;;  %v9365_v3 = vpack.c.bf16 %v2020_v17, %v2020_v17  ;;  %v9369_v1 = vpack.c.bf16 %v9201_v14, %v9201_v14 }
 0x148   : > { %v1006_v44 = vmax.f32 %v984_v27, %v986_v63  ;;  %v987_v49 = vmax.f32 %v955_v51, 0.0  ;;  %v985_v10 = vmax.f32 %v953_v26, 0.0  ;;  %v9375_v59 = vpack.c.bf16 %v2021_v47, %v2021_v47 }
 0x149   : > { %v9373_v31 = vsel %vm9055_vm5, %v2105_v58, %v2109_v46  ;;  %v9379_v7 = vpack.c.bf16 %v9273_v28, %v9273_v28  ;;  %v2112_v40 = vshrl.u32 %v9363_v52, 16  ;;  %v2115_v11 = vshll.u32 %v9363_v52, 16 }
 0x14a   : > { %v7287_v63 = vcombine.low %v9072_v15, %v9373_v31  ;;  %v1198_v0 = vcombine.high %v1006_v44, %v1006_v44  ;;  %v1205_v41 = vrot.slane %v1006_v44, %v9034_v48  ;;  %v1007_v6 = vmax.f32 %v985_v10, %v987_v49 }
 0x14b   : > { %v2114_v8 = vrot.slane %v2112_v40, 4  ;;  %v2121_v61 = vshll.u32 %v9365_v3, 16  ;;  %v2126_v60 = vshrl.u32 %v9369_v1, 16  ;;  %v2117_v32 = vrot.slane %v2115_v11, 5 }
 0x14c   : > { %8131 = vmatprep.mubr.msk.bf16.mxu1 %vm2224_vm13, %v7287_v63  ;;  %v1212_v28 = vrot.slane %v1198_v0, %v9034_v48  ;;  %v1213_v18 = vcombine.high %v1205_v41, %v1205_v41  ;;  %v7243_v20 = vrot.slane %v1205_v41, 9  ;;  %v1215_v24 = vcombine.high %v1007_v6, %v1007_v6 }
 0x14d   : > { %v1222_v30 = vrot.slane %v1007_v6, %v9034_v48  ;;  %v2123_v46 = vrot.slane %v2121_v61, 5  ;;  %v2128_v33 = vrot.slane %v2126_v60, 4  ;;  %v2118_v27 = vor.u32 %v2117_v32, %v2114_v8 }
 0x14e   : > { %v1214_v34 = vcombine.high %v1212_v28, %v1212_v28  ;;  %v7244_v39 = vrot.slane %v1213_v18, 9  ;;  %v7245_v42 = vrot.slane %v1212_v28, 9  ;;  %v1596_v43 = vmax.f32 %v1205_v41, %v7243_v20 }
 0x14f   : > { %v1229_v17 = vrot.slane %v1215_v24, %v9034_v48  ;;  %v1230_v47 = vcombine.high %v1222_v30, %v1222_v30  ;;  %v7247_v45 = vrot.slane %v1222_v30, 9  ;;  %v2119_v41 = vrot.slane %v2118_v27, 4 }
 0x150   : > { %v7246_v51 = vrot.slane %v1214_v34, 9  ;;  %v1597_v26 = vmax.f32 %v1213_v18, %v7244_v39  ;;  %v1598_v58 = vmax.f32 %v1212_v28, %v7245_v42  ;;  %v1847_v44 = vrot.slane %v1596_v43, %v9049_v62 }
 0x151   : > { %v1231_v49 = vcombine.high %v1229_v17, %v1229_v17  ;;  %v7248_v10 = vrot.slane %v1230_v47, 9  ;;  %v7249_v40 = vrot.slane %v1229_v17, 9  ;;  %v1600_v63 = vmax.f32 %v1222_v30, %v7247_v45 }
 0x152   : > { %v1599_v0 = vmax.f32 %v1214_v34, %v7246_v51  ;;  %v1851_v6 = vrot.slane %v1597_v26, %v9049_v62  ;;  %v1855_v11 = vrot.slane %v1598_v58, %v9049_v62  ;;  %v2124_v24 = vsel %vm9055_vm5, %v2119_v41, %v2123_v46 }
 0x153   : > { %v7250_v61 = vrot.slane %v1231_v49, 9  ;;  %v1601_v60 = vmax.f32 %v1230_v47, %v7248_v10  ;;  %v1602_v20 = vmax.f32 %v1229_v17, %v7249_v40  ;;  %v1863_v8 = vrot.slane %v1600_v63, %v9049_v62 }
 0x154   : > { %v1859_v18 = vrot.slane %v1599_v0, %v9049_v62  ;;  %v1976_v28 = vsel %vm1940_vm6, %v1851_v6, %v1847_v44  ;;  %v2129_v30 = vshll.u32 %v9369_v1, 16  ;;  %v2135_v47 = vshll.u32 %v9375_v59, 16 }
 0x155   : > { %v1977_v32 = vsel %vm1942_vm7, %v1855_v11, %v1976_v28  ;;  %v1603_v34 = vmax.f32 %v1231_v49, %v7250_v61  ;;  %v1867_v39 = vrot.slane %v1601_v60, %v9049_v62  ;;  %v1871_v42 = vrot.slane %v1602_v20, %v9049_v62 }
 0x156   : > { %v1978_v43 = vsel %vm1944_vm8, %v1859_v18, %v1977_v32  ;;  %v2131_v17 = vrot.slane %v2129_v30, 5  ;;  %v2140_v45 = vshrl.u32 %v9284_v19, 16  ;;  %v2143_v51 = vshll.u32 %v9284_v19, 16 }
 0x157   : > { %v1875_v27 = vrot.slane %v1603_v34, %v9049_v62  ;;  %v1979_v46 = vsel %vm1946_vm9, %v1863_v8, %v1978_v43  ;;  %v2149_v26 = vshll.u32 %v9379_v7, 16  ;;  %v2137_v49 = vrot.slane %v2135_v47, 5 }
 0x158   : > { %v1980_v58 = vsel %vm1948_vm10, %v1867_v39, %v1979_v46  ;;  %v2132_v44 = vor.u32 %v2131_v17, %v2128_v33  ;;  %v2142_v10 = vrot.slane %v2140_v45, 4  ;;  %v2145_v63 = vrot.slane %v2143_v51, 5 }
 0x159   : > { %v1981_v40 = vsel %vm1950_vm11, %v1871_v42, %v1980_v58  ;;  %v2151_v0 = vrot.slane %v2149_v26, 5  ;;  %v7349_v6 = vcombine.low %v9373_v31, %v2124_v24  ;;  %v2023_v61 = vsel %vm2010_vm12, %v1843_v9, 0.0  ;;  %v8839_v26 = vld [vmem:[%s11086_s4 + $0x8] sm:$0xff]  }
 0x15a   : > { %v9415_v11 = vsel %vm2010_vm12, 0.0, %v1981_v40  ;;  %v2133_v41 = vrot.slane %v2132_v44, 4  ;;  %v9423_v33 = vpack.c.bf16 %v9359_v57, %v9359_v57  ;;  %v2146_v60 = vor.u32 %v2145_v63, %v2142_v10  ;;  %v8384_v63 = vld [vmem:[%s11086_s4 + $0x60] sm:$0xff]  }
 0x15b   : > { %8179 = vmatprep.mubr.msk.bf16.mxu0 %vm2224_vm13, %v7349_v6  ;;  %v9426_v20 = vpack.c.bf16 %v2023_v61, %v2023_v61  ;;  %v2024_v31 = vsel %vm2010_vm12, %v1875_v27, 0.0  ;;  %v2025_v8 = vsel %vm2010_vm12, %v1907_v25, 0.0  ;;  %v9439_v28 = vpack.c.bf16 %v9415_v11, %v9415_v11 }
 0x15c   : > { %v2138_v4 = vsel %vm9055_vm5, %v2133_v41, %v2137_v49  ;;  %v2154_v9 = vshrl.u32 %v9423_v33, 16  ;;  %v2157_v18 = vshll.u32 %v9423_v33, 16  ;;  %v2147_v30 = vrot.slane %v2146_v60, 4 }
 0x15d   : > { %v9441_v32 = vcombine.low %v2124_v24, %v2138_v4  ;;  %v2163_v34 = vshll.u32 %v9426_v20, 16  ;;  %v9447_v25 = vpack.c.bf16 %v2024_v31, %v2024_v31  ;;  %v9451_v43 = vpack.c.bf16 %v9259_v56, %v9259_v56 }
 0x15e   : > { %v2156_v39 = vrot.slane %v2154_v9, 4  ;;  %v2159_v42 = vrot.slane %v2157_v18, 5  ;;  %v9453_v17 = vpack.c.bf16 %v2025_v8, %v2025_v8  ;;  %v9457_v24 = vsel %vm2010_vm12, 0.0, %v9325_v16 }
 0x15f   : > { %v2152_v47 = vsel %vm9055_vm5, %v2147_v30, %v2151_v0  ;;  %8132 = vmatmul.mubr.msk.bf16.vlgmr.msra.gmra.mxu1 %vm2224_vm13, %v9441_v32  ;;  %v2168_v45 = vshrl.u32 %v9439_v28, 16  ;;  %v2171_v27 = vshll.u32 %v9439_v28, 16  ;;  %v2177_v16 = vshll.u32 %v9447_v25, 16  ;;  %v8385_v0 = vld [vmem:[%s11086_s4 + $0x28] sm:$0xff]  }
 0x160   : > { %v7350_v46 = vcombine.low %v2138_v4, %v2152_v47  ;;  %v2160_v51 = vor.u32 %v2159_v42, %v2156_v39  ;;  %8140 = vmatpush3.bf16.msra.mxu1 %v8839_v26  ;;  %v2182_v58 = vshrl.u32 %v9451_v43, 16  ;;  %v2185_v10 = vshll.u32 %v9451_v43, 16 }
 0x161   : > { %8141 = vmatprep.subr.bf16.mxu1 %v8382_v23  ;;  %v2170_v44 = vrot.slane %v2168_v45, 4  ;;  %v2173_v49 = vrot.slane %v2171_v27, 5  ;;  %v2191_v40 = vshll.u32 %v9453_v17, 16  ;;  %v2165_v41 = vrot.slane %v2163_v34, 5 }
 0x162   : > { %8180 = vmatmul.mubr.msk.bf16.vlgmr.msra.gmra.mxu0 %vm2224_vm13, %v7350_v46  ;;  %v2161_v6 = vrot.slane %v2160_v51, 4  ;;  %v2184_v61 = vrot.slane %v2182_v58, 4  ;;  %v2187_v31 = vrot.slane %v2185_v10, 5  ;;  %v9483_v8 = vsel %vm2010_vm12, %v1939_v53, 0.0 }
 0x163   : > { %v2174_v60 = vor.u32 %v2173_v49, %v2170_v44  ;;  %8200 = vmatpush3.bf16.msra.mxu0 %v9099_v12  ;;  %v2179_v9 = vrot.slane %v2177_v16, 5  ;;  %v9490_v18 = vpack.c.bf16 %v9457_v24, %v9457_v24  ;;  %v9494_v30 = vpack.c.bf16 %v9483_v8, %v9483_v8 }
 0x164   : > { %v2166_v4 = vsel %vm9055_vm5, %v2161_v6, %v2165_v41  ;;  %8142 = vmatpush3.bf16.msra.mxu1 %v8382_v23  ;;  %v2188_v34 = vor.u32 %v2187_v31, %v2184_v61  ;;  %v2193_v39 = vrot.slane %v2191_v40, 5  ;;  %8201 = vmatprep.subr.bf16.mxu0 %v8384_v63  ;;  %v7968_v41 = vpack.c.bf16 %v9201_v14, %v9181_v54  ;;  %v8386_v61 = vld [vmem:[%s11086_s4 + $0x20] sm:$0xff]  }
 0x165   : > { %v9499_v53 = vcombine.low %v2152_v47, %v2166_v4  ;;  %v2175_v12 = vrot.slane %v2174_v60, 4  ;;  %8151 = vmatprep.subr.bf16.mxu1 %v8385_v0  ;;  %v2656_v23 = vshrl.u32 %v9490_v18, 16  ;;  %v2659_v42 = vshll.u32 %v9490_v18, 16 }
 0x166   : > { %v2665_v45 = vshll.u32 %v9494_v30, 16  ;;  %v2189_v46 = vrot.slane %v2188_v34, 4  ;;  %v2028_v47 = vpack.c.bf16 %v9298_v50, %v9130_v55  ;;  %v7969_v2 = vpack.c.bf16 %v9359_v57, %v9267_v5 }
 0x167   : > { %8135 = vmatprep.mubr.msk.bf16.mxu1 %vm2224_vm13, %v9499_v53  ;;  %v2180_v27 = vsel %vm9055_vm5, %v2175_v12, %v2179_v9  ;;  %8202 = vmatpush3.bf16.msra.mxu0 %v8384_v63  ;;  %v2658_v26 = vrot.slane %v2656_v23, 4  ;;  %v2661_v16 = vrot.slane %v2659_v42, 5  ;;  %v7307_v60 = vrot.slane %v9000_v22, 9  ;;  %v8388_v22 = vld [vmem:[%s11086_s4 + $0x80] sm:$0xff]  }
 0x168   : > { %v7351_v51 = vcombine.low %v2166_v4, %v2180_v27  ;;  %8223 = vmatprep.subr.bf16.mxu0 %v8387_v36  ;;  %v2194_v58 = vsel %vm9055_vm5, %v2189_v46, %v2193_v39  ;;  %v2667_v10 = vrot.slane %v2665_v45, 5  ;;  %v7297_v40 = vcombine.low %v11103_v21, %v2028_v47 }
 0x169   : > { %v9512_v44 = vcombine.low %v2180_v27, %v2194_v58  ;;  %v2662_v49 = vor.u32 %v2661_v16, %v2658_v26  ;;  %v2400_v31 = vrot.slane %v9023_v38, 5  ;;  %v7308_v4 = vrot.slane %v9302_v13, 9  ;;  %v8389_v38 = vld [vmem:[%s11086_s4 + $0x38] sm:$0xff]  }
 0x16a   : > { %8183 = vmatprep.mubr.msk.bf16.mxu0 %vm2224_vm13, %v7351_v51  ;;  %v2404_v9 = vrot.slane %v9329_v35, 5  ;;  %v7970_v13 = vpack.c.bf16 %v9259_v56, %v9415_v11  ;;  %v2035_v39 = vpack.c.bf16 %v9483_v8, %v9457_v24  ;;  %v7310_v23 = vrot.slane %v9369_v1, 9 }
 0x16b   : > { %8136 = vmatmul.mubr.msk.bf16.gmra.mxu1 %vm2224_vm13, %v9512_v44  ;;  %v2663_v50 = vrot.slane %v2662_v49, 4  ;;  %v2401_v35 = vsel %vm9542_vm2, %v7307_v60, %v2400_v31  ;;  %v2412_v42 = vrot.slane %v9375_v59, 5  ;;  %v7309_v27 = vrot.slane %v9363_v52, 9  ;;  %v8395_v60 = vld [vmem:[%s11089_s7 + $0x18] sm:$0xff]  }
 0x16c   : > { %8143 = vmatprep.mubr.msk.bf16.mxu1 %vm2224_vm13, %v7297_v40  ;;  %v2408_v46 = vrot.slane %v9365_v3, 5  ;;  %v7312_v47 = vrot.slane %v9423_v33, 9  ;;  %v2420_v8 = vrot.slane %v9426_v20, 5  ;;  %v7378_v1 = vcombine.low %v2035_v39, %v11103_v21 }
 0x16d   : > { %v9521_v63 = vsel %vm9055_vm5, %v2663_v50, %v2667_v10  ;;  %v2413_v59 = vsel %vm9542_vm2, %v7310_v23, %v2412_v42  ;;  %v7311_v52 = vrot.slane %v9284_v19, 9  ;;  %v2416_v3 = vrot.slane %v9379_v7, 5  ;;  %v8390_v7 = vld [vmem:[%s11086_s4 + $0x30] sm:$0xff]  }
 0x16e   : > { %v7352_v6 = vcombine.low %v2194_v58, %v9521_v63  ;;  %v7389_v12 = vcombine.low %v9521_v63, %v9072_v15  ;;  %v2421_v33 = vsel %vm9542_vm2, %v7312_v47, %v2420_v8  ;;  %v7313_v20 = vrot.slane %v9439_v28, 9  ;;  %v8396_v15 = vld [vmem:[%s11089_s7 + $0x10] sm:$0xff]  }
 0x16f   : > { %v2424_v26 = vrot.slane %v9447_v25, 5  ;;  %v2417_v19 = vsel %vm9542_vm2, %v7311_v52, %v2416_v3  ;;  %v7314_v58 = vrot.slane %v9451_v43, 9  ;;  %v2428_v49 = vrot.slane %v9453_v17, 5  ;;  %v8391_v25 = vld [vmem:[%s11086_s4 + $0x58] sm:$0xff]  }
 0x170   : > { %8184 = vmatmul.mubr.msk.bf16.gmra.mxu0 %vm2224_vm13, %v7352_v6  ;;  %v7321_v16 = vcombine.low %v2417_v19, %v2421_v33  ;;  %v7359_v43 = vrot.slane %v9490_v18, 9  ;;  %v2778_v17 = vrot.slane %v9494_v30, 5  ;;  %v7971_v50 = vpack.c.bf16 %v9181_v54, %v9130_v55  ;;  %v8392_v30 = vld [vmem:[%s11086_s4 + $0x50] sm:$0xff]   ;;  %v8393_v54 = vld [vmem:[%s11086_s4 + $0x78] sm:$0xff]  }
 0x171   : > { %8203 = vmatprep.mubr.msk.bf16.mxu0 %vm2224_vm13, %v7968_v41  ;;  %v2425_v28 = vsel %vm9542_vm2, %v7313_v20, %v2424_v26  ;;  %v2429_v10 = vsel %vm9542_vm2, %v7314_v58, %v2428_v49  ;;  %v7972_v18 = vpack.c.bf16 %v9267_v5, %v9201_v14  ;;  %v7973_v55 = vpack.c.bf16 %v9415_v11, %v9359_v57  ;;  %v8394_v11 = vld [vmem:[%s11086_s4 + $0x70] sm:$0xff]  }
 0x172   : > { %v7322_v40 = vcombine.low %v2425_v28, %v2429_v10  ;;  %v2779_v6 = vsel %vm9542_vm2, %v7359_v43, %v2778_v17  ;;  %v7974_v14 = vpack.c.bf16 %v9457_v24, %v9259_v56  ;;  %v7365_v57 = vcombine.low %v2413_v59, %v2417_v19 }
 0x173   : > { %8144 = vmatmul.mubr.msk.bf16.vlgmr.msra.gmra.mxu1 %vm2224_vm13, %v7968_v41  ;;  %v7400_v41 = vcombine.low %v2779_v6, %v2401_v35  ;;  %v7367_v56 = vcombine.low %v2429_v10, %v2779_v6  ;;  %v11101_v31 = vmov 0.0   ;;  %vm3515_vm5 = vsmask.f32 3336 }
 0x174   : > { %8152 = vmatpush3.bf16.msra.mxu1 %v8385_v0  ;;  %8147 = vmatprep.mubr.msk.bf16.mxu1 %vm2224_vm13, %v7969_v2  ;;  %v9558_v0 = vsel %vm9542_vm2, %v7308_v4, %v2404_v9  ;;  %vm3517_vm9 = vsmask.f32 5392  ;;  %vm9773_vm11 = vmor %vm3514_vm4, %vm3515_vm5 }
 0x175   : > { %8153 = vmatprep.subr.bf16.mxu1 %v8386_v61  ;;  %v7319_v45 = vcombine.low %v2401_v35, %v9558_v0  ;;  %vm3518_vm15 = vmor %vm9773_vm11, %vm3517_vm9  ;;  %vm3627_vm11 = vcmask 523264  }
 0x176   : > { %vm3759_vm4 = vmor %vm2010_vm12, %vm1940_vm6 }
 0x177   : > { %vm3761_vm5 = vmor %vm3759_vm4, %vm1944_vm8  ;;  %vm4622_vm4 = vsmask.f32 5396 }
 0x178   : > { %8204 = vmatmul.mubr.msk.bf16.vlgmr.msra.gmra.mxu0 %vm2224_vm13, %v7969_v2  ;;  %8154 = vmatpush3.bf16.msra.mxu1 %v8386_v61  ;;  %v7366_v61 = vcombine.low %v2421_v33, %v2425_v28  ;;  %vm9868_vm9 = vmor %vm3761_vm5, %vm1948_vm10  ;;  %vm4616_vm10 = vsmask.f32 2312 }
 0x179   : > { %8207 = vmatprep.mubr.msk.bf16.mxu0 %vm2224_vm13, %v7970_v13  ;;  %8224 = vmatpush3.bf16.msra.mxu0 %v8387_v36  ;;  %v2409_v36 = vsel %vm9542_vm2, %v7309_v27, %v2408_v46  ;;  %v8405_v27 = vld [vmem:[%s11089_s7 + $0x20] sm:$0xff]  }
 0x17a   : > { %8225 = vmatprep.subr.bf16.mxu0 %v8388_v22  ;;  %8163 = vmatprep.subr.bf16.mxu1 %v8389_v38  ;;  %v7320_v51 = vcombine.low %v2409_v36, %v2413_v59  ;;  %v7364_v5 = vcombine.low %v9558_v0, %v2409_v36  ;;  %v8403_v0 = vld [vmem:[%s11089_s7 + $0x28] sm:$0xff]  }
 0x17b   : > { %8148 = vmatmul.mubr.msk.bf16.gmra.mxu1 %vm2224_vm13, %v7970_v13 }
 0x17c   : > { %8155 = vmatprep.mubr.msk.bf16.mxu1 %vm2224_vm13, %v7319_v45 }
 0x17d   : > { %8226 = vmatpush3.bf16.msra.mxu0 %v8388_v22  ;;  %v8401_v22 = vld [vmem:[%s11089_s7 + $0x30] sm:$0xff]  }
 0x17e   : > { %8247 = vmatprep.subr.bf16.mxu0 %v11101_v31 }
 0x180   : > { %8208 = vmatmul.mubr.msk.bf16.gmra.mxu0 %vm2224_vm13, %v7378_v1 }
 0x181   : > { %8227 = vmatprep.mubr.msk.bf16.mxu0 %vm2224_vm13, %v7320_v51 }
 0x183   : > { %8156 = vmatmul.mubr.msk.bf16.vlgmr.msra.gmra.mxu1 %vm2224_vm13, %v7320_v51 }
 0x184   : > { %8164 = vmatpush3.bf16.msra.mxu1 %v8389_v38  ;;  %8159 = vmatprep.mubr.msk.bf16.mxu1 %vm2224_vm13, %v7321_v16 }
 0x185   : > { %8165 = vmatprep.subr.bf16.mxu1 %v8390_v7 }
 0x188   : > { %8228 = vmatmul.mubr.msk.bf16.vlgmr.msra.gmra.mxu0 %vm2224_vm13, %v7321_v16  ;;  %8166 = vmatpush3.bf16.msra.mxu1 %v8390_v7 }
 0x189   : > { %8231 = vmatprep.mubr.msk.bf16.mxu0 %vm2224_vm13, %v7322_v40  ;;  %8187 = vmatprep.subr.bf16.mxu1 %v8391_v25 }
 0x18a   : > { %8248 = vmatpush3.bf16.msra.mxu0 %v8395_v60 }
 0x18b   : > { %8160 = vmatmul.mubr.msk.bf16.gmra.mxu1 %vm2224_vm13, %v7322_v40  ;;  %8249 = vmatprep.subr.bf16.mxu0 %v11101_v31 }
 0x18c   : > { %8167 = vmatprep.mubr.msk.bf16.mxu1 %vm2224_vm13, %v7971_v50 }
 0x18e   : > { %8250 = vmatpush3.bf16.msra.mxu0 %v8396_v15 }
 0x18f   : > { %8251 = vmatprep.subr.bf16.mxu0 %v11101_v31 }
 0x190   : > { %8232 = vmatmul.mubr.msk.bf16.gmra.mxu0 %vm2224_vm13, %v7400_v41 }
 0x191   : > { %8255 = vmatprep.mubr.msk.bf16.mxu0 %vm8852_vm3, %v11101_v31 }
 0x193   : > { %8168 = vmatmul.mubr.msk.bf16.vlgmr.msra.gmra.mxu1 %vm2224_vm13, %v7972_v18 }
 0x194   : > { %8188 = vmatpush3.bf16.msra.mxu1 %v8391_v25  ;;  %8171 = vmatprep.mubr.msk.bf16.mxu1 %vm2224_vm13, %v7973_v55 }
 0x195   : > { %8189 = vmatprep.subr.bf16.mxu1 %v8392_v30 }
 0x198   : > { %8190 = vmatpush3.bf16.msra.mxu1 %v8392_v30 }
 0x199   : > { %8211 = vmatprep.subr.bf16.mxu1 %v8393_v54 }
 0x19b   : > { %8172 = vmatmul.mubr.msk.bf16.gmra.mxu1 %vm2224_vm13, %v7974_v14 }
 0x19c   : > { %8191 = vmatprep.mubr.msk.bf16.mxu1 %vm2224_vm13, %v7364_v5 }
 0x1a3   : > { %8192 = vmatmul.mubr.msk.bf16.vlgmr.msra.gmra.mxu1 %vm2224_vm13, %v7365_v57 }
 0x1a4   : > { %8212 = vmatpush3.bf16.msra.mxu1 %v8393_v54  ;;  %8195 = vmatprep.mubr.msk.bf16.mxu1 %vm2224_vm13, %v7366_v61 }
 0x1a5   : > { %8213 = vmatprep.subr.bf16.mxu1 %v8394_v11 }
 0x1a8   : > { %8214 = vmatpush3.bf16.msra.mxu1 %v8394_v11 }
 0x1a9   : > { %8235 = vmatprep.subr.bf16.mxu1 %v11101_v31 }
 0x1ab   : > { %8196 = vmatmul.mubr.msk.bf16.gmra.mxu1 %vm2224_vm13, %v7367_v56 }
 0x1ac   : > { %8215 = vmatprep.mubr.msk.bf16.mxu1 %vm2224_vm13, %v9441_v32  ;;  %v8399_v32 = vld [vmem:[%s11089_s7 + $0x38] sm:$0xff]  }
 0x1b3   : > { %8216 = vmatmul.mubr.msk.bf16.vlgmr.msra.gmra.mxu1 %vm2224_vm13, %v9499_v53 }
 0x1b4   : > { %8219 = vmatprep.mubr.msk.bf16.mxu1 %vm2224_vm13, %v9512_v44  ;;  %8236 = vmatpush3.bf16.msra.mxu1 %v8399_v32  ;;  %v8397_v44 = vld [vmem:[%s11089_s7 + $0x8] sm:$0xff]  }
 0x1b5   : > { %8237 = vmatprep.subr.bf16.mxu1 %v11101_v31  ;;  %8252 = vmatpush3.bf16.msra.mxu0 %v8397_v44 }
 0x1b6   : > { %8253 = vmatprep.subr.bf16.mxu0 %v11101_v31 }
 0x1b8   : > { %8238 = vmatpush3.bf16.msra.mxu1 %v8401_v22 }
 0x1b9   : > { %8239 = vmatprep.subr.bf16.mxu1 %v11101_v31 }
 0x1bb   : > { %8220 = vmatmul.mubr.msk.bf16.gmra.mxu1 %vm2224_vm13, %v7389_v12  ;;  %v8398_v12 = vld [vmem:[%s11089_s7] sm:$0xff]   ;;  %vm3519_vm13 = vsmask.f32 7448 }
 0x1bc   : > { %8243 = vmatprep.mubr.msk.bf16.mxu1 %vm8852_vm3, %v11101_v31  ;;  %8254 = vmatpush3.bf16.msra.mxu0 %v8398_v12  ;;  %vm9787_vm2 = vmor %vm3518_vm15, %vm3519_vm13  ;;  %vm4618_vm13 = vsmask.f32 3340 }
 0x1bd   : > { %8271 = vmatprep.subr.bf16.mxu0 %v11101_v31  ;;  %8240 = vmatpush3.bf16.msra.mxu1 %v8403_v0 }
 0x1be   : > { %8241 = vmatprep.subr.bf16.mxu1 %v11101_v31 }
 0x1c1   : > { %8242 = vmatpush3.bf16.msra.mxu1 %v8405_v27 }
 0x1c2   : > { %8259 = vmatprep.subr.bf16.mxu1 %v11101_v31 }
 0x21f   : > { %v8133_v24 = vpop.f32.mrf.mxu1 }
 0x221   : > { %v9646_v2 = vpop.f32.mrf.mxu1 }
 0x222   : > { %v9673_v4 = vpop.f32.mrf.mxu0 }
 0x223   : > { %v9661_v53 = vpop.f32.mrf.mxu1 }
 0x224   : > { %v9684_v38 = vpop.f32.mrf.mxu0 }
 0x225   : > { %v9670_v63 = vpop.f32.mrf.mxu1 }
 0x226   : > { %v9693_v39 = vpop.f32.mrf.mxu0 }
 0x228   : > { %v9699_v46 = vpop.f32.mrf.mxu0 }
 0x22b   : > { %v8137_v9 = vpop.f32.mrf.mxu1 }
 0x22d   : > { %v9678_v34 = vpop.f32.mrf.mxu1 }
 0x22f   : > { %v8138_v13 = vpop.f32.mrf.mxu1 }
 0x230   : > { %v9701_v8 = vpop.f32.mrf.mxu0 }
 0x231   : > { %v9687_v35 = vpop.f32.mrf.mxu1 }
 0x232   : > { %v9704_v52 = vpop.f32.mrf.mxu0 }
 0x233   : > { %v8145_v23 = vpop.f32.mrf.mxu1 }
 0x234   : > { %v2373_v42 = vadd.f32 %v8145_v23, %v8133_v24  ;;  %v9706_v33 = vpop.f32.mrf.mxu0 }
 0x235   : > { %v2364_v45 = vpop.f32.mrf.mxu1 }
 0x236   : > { %v9710_v7 = vpop.f32.mrf.mxu0  ;;  %v2365_v15 = vadd.f32 %v2364_v45, %v9646_v2 }
 0x237   : > { %v8146_v47 = vpop.f32.mrf.mxu1 }
 0x238   : > { %v8205_v49 = vpop.f32.mrf.mxu0  ;;  %v2376_v12 = vadd.f32 %v8146_v47, %v9661_v53 }
 0x239   : > { %v2367_v1 = vpop.f32.mrf.mxu1 }
 0x23a   : > { %v2942_v10 = vpop.f32.mrf.mxu0  ;;  %v2368_v23 = vadd.f32 %v2367_v1, %v9670_v63 }
 0x23b   : > { %v8149_v59 = vpop.f32.mrf.mxu1 }
 0x23c   : > { %v2389_v3 = vadd.f32 %v8149_v59, %v8137_v9  ;;  %v9712_v17 = vpop.f32.mrf.mxu0 }
 0x23d   : > { %v2380_v36 = vpop.f32.mrf.mxu1 }
 0x23e   : > { %v9714_v41 = vpop.f32.mrf.mxu0 }
 0x23f   : > { %v8150_v51 = vpop.f32.mrf.mxu1 }
 0x240   : > { %v2392_v20 = vadd.f32 %v8150_v51, %v8138_v13  ;;  %v9716_v55 = vpop.f32.mrf.mxu0 }
 0x241   : > { %v9708_v26 = vpop.f32.mrf.mxu1 }
 0x242   : > { %v9718_v5 = vpop.f32.mrf.mxu0 }
 0x243   : > { %v8157_v19 = vpop.f32.mrf.mxu1 }
 0x244   : > { %v9720_v61 = vpop.f32.mrf.mxu0  ;;  %v2538_v44 = vadd.f32 %v8157_v19, %v2373_v42  ;;  %v2381_v42 = vadd.f32 %v2380_v36, %v9678_v34 }
 0x245   : > { %v2505_v16 = vpop.f32.mrf.mxu1 }
 0x246   : > { %v9722_v60 = vpop.f32.mrf.mxu0  ;;  %v2536_v13 = vadd.f32 %v2505_v16, %v2365_v15 }
 0x247   : > { %v8158_v58 = vpop.f32.mrf.mxu1  ;;  %11119 = vst [vmem:[#allocation4_spill] sm:$0xff] %v9722_v60 }
 0x248   : > { %v8229_v22 = vpop.f32.mrf.mxu0  ;;  %v2539_v59 = vadd.f32 %v8158_v58, %v2376_v12  ;;  %v9754_v12 = vld [vmem:[%s11088_s6] ss:$0 sm:$0xff] }
 0x249   : > { %v2508_v28 = vpop.f32.mrf.mxu1 }
 0x24a   : > { %v2537_v29 = vadd.f32 %v2508_v28, %v2368_v23  ;;  %v3130_v21 = vpop.f32.mrf.mxu0 }
 0x24b   : > { %v8161_v25 = vpop.f32.mrf.mxu1 }
 0x24c   : > { %v2542_v47 = vadd.f32 %v8161_v25, %v2389_v3  ;;  %v8230_v16 = vpop.f32.mrf.mxu0 }
 0x24d   : > { %v2521_v40 = vpop.f32.mrf.mxu1 }
 0x24e   : > { %v2540_v63 = vadd.f32 %v2521_v40, %v2381_v42 }
 0x24f   : > { %v8162_v43 = vpop.f32.mrf.mxu1 }
 0x250   : > { %v2543_v28 = vadd.f32 %v8162_v43, %v2392_v20  ;;  %v9742_v43 = vld [vmem:[%s11087_s5] ss:$0 sm:$0xff] }
 0x251   : > { %v2524_v50 = vpop.f32.mrf.mxu1 }
 0x253   : > { %v8169_v6 = vpop.f32.mrf.mxu1 }
 0x254   : > { %v2646_v0 = vadd.f32 %v8169_v6, %v2538_v44 }
 0x255   : > { %v2613_v18 = vpop.f32.mrf.mxu1 }
 0x256   : > { %v2644_v51 = vadd.f32 %v2613_v18, %v2536_v13  ;;  %v2770_v62 = vadd.f32 %v9673_v4, %v2646_v0 }
 0x257   : > { %v8170_v30 = vpop.f32.mrf.mxu1 }
 0x258   : > { %v2647_v37 = vadd.f32 %v8170_v30, %v2539_v59  ;;  %v2768_v53 = vadd.f32 %v9684_v38, %v2644_v51  ;;  %v2384_v38 = vadd.f32 %v9708_v26, %v9687_v35 }
 0x259   : > { %v2616_v54 = vpop.f32.mrf.mxu1 }
 0x25a   : > { %v2645_v60 = vadd.f32 %v2616_v54, %v2537_v29  ;;  %v2771_v58 = vadd.f32 %v9693_v39, %v2647_v37  ;;  %v11120_v29 = vmov 0.0|0.0   ;;  %v3133_v54 = vpop.f32.mrf.mxu0  ;;  %v2541_v20 = vadd.f32 %v2524_v50, %v2384_v38 }
 0x25b   : > { %v8173_v14 = vpop.f32.mrf.mxu1  ;;  %v9734_v4 = vrot.slane %v11120_v29, %v9034_v48 }
 0x25c   : > { %v2650_v6 = vadd.f32 %v8173_v14, %v2542_v47  ;;  %v2769_v18 = vadd.f32 %v9699_v46, %v2645_v60  ;;  %v8233_v15 = vpop.f32.mrf.mxu0 }
 0x25d   : > { %v2629_v57 = vpop.f32.mrf.mxu1  ;;  %v3525_v35 = vshll.u32 %v9734_v4, 16 }
 0x25e   : > { %v2648_v34 = vadd.f32 %v2629_v57, %v2540_v63  ;;  %v2774_v46 = vadd.f32 %v9701_v8, %v2650_v6  ;;  %v3146_v42 = vpop.f32.mrf.mxu0 }
 0x25f   : > { %v8174_v11 = vpop.f32.mrf.mxu1 }
 0x260   : > { %v2651_v3 = vadd.f32 %v8174_v11, %v2543_v28  ;;  %v2772_v26 = vadd.f32 %v9704_v52, %v2648_v34 }
 0x261   : > { %v2632_v56 = vpop.f32.mrf.mxu1 }
 0x262   : > { %v2775_v8 = vadd.f32 %v9706_v33, %v2651_v3 }
 0x263   : > { %v8193_v24 = vpop.f32.mrf.mxu1 }
 0x264   : > { %v2881_v45 = vadd.f32 %v8193_v24, %v2770_v62  ;;  %v2649_v24 = vadd.f32 %v2632_v56, %v2541_v20 }
 0x265   : > { %v2848_v32 = vpop.f32.mrf.mxu1 }
 0x266   : > { %v2879_v1 = vadd.f32 %v2848_v32, %v2768_v53  ;;  %v2975_v36 = vadd.f32 %v8205_v49, %v2881_v45  ;;  %v3522_v49 = vshrl.u32 %v9734_v4, 16 }
 0x267   : > { %v8194_v9 = vpop.f32.mrf.mxu1 }
 0x268   : > { %v2882_v62 = vadd.f32 %v8194_v9, %v2771_v58  ;;  %v2973_v39 = vadd.f32 %v2942_v10, %v2879_v1  ;;  %v3524_v33 = vrot.slane %v3522_v49, 6 }
 0x269   : > { %v2851_v27 = vpop.f32.mrf.mxu1 }
 0x26a   : > { %v2880_v25 = vadd.f32 %v2851_v27, %v2769_v18  ;;  %v2976_v10 = vadd.f32 %v9712_v17, %v2882_v62  ;;  %v3527_v17 = vrot.slane %v3525_v35, 7  ;;  %v2773_v27 = vadd.f32 %v9710_v7, %v2649_v24 }
 0x26b   : > { %v8197_v31 = vpop.f32.mrf.mxu1 }
 0x26c   : > { %v2885_v50 = vadd.f32 %v8197_v31, %v2774_v46  ;;  %v2974_v32 = vadd.f32 %v9714_v41, %v2880_v25  ;;  %v9758_v31 = vcombine.high %v9734_v4, %v9734_v4  ;;  %v3528_v7 = vor.u32 %v3527_v17, %v3524_v33 }
 0x26d   : > { %v2864_v2 = vpop.f32.mrf.mxu1 }
 0x26e   : > { %v2883_v44 = vadd.f32 %v2864_v2, %v2772_v26  ;;  %v3531_v2 = vshll.u32 %v9758_v31, 16  ;;  %v3529_v46 = vrot.slane %v3528_v7, 2 }
 0x26f   : > { %v8198_v19 = vpop.f32.mrf.mxu1 }
 0x270   : > { %v2886_v41 = vadd.f32 %v8198_v19, %v2775_v8  ;;  %v2977_v47 = vadd.f32 %v9718_v5, %v2883_v44  ;;  %v3533_v62 = vrot.slane %v3531_v2, 7 }
 0x271   : > { %v2867_v30 = vpop.f32.mrf.mxu1 }
 0x272   : > { %v2884_v19 = vadd.f32 %v2867_v30, %v2773_v27  ;;  %v2980_v6 = vadd.f32 %v9720_v61, %v2886_v41 }
 0x273   : > { %v8217_v40 = vpop.f32.mrf.mxu1 }
 0x274   : > { %v3069_v37 = vadd.f32 %v8217_v40, %v2975_v36  ;;  %v8234_v36 = vpop.f32.mrf.mxu0 }
 0x275   : > { %v3036_v14 = vpop.f32.mrf.mxu1 }
 0x276   : > { %v3163_v57 = vadd.f32 %v8229_v22, %v3069_v37  ;;  %v3067_v11 = vadd.f32 %v3036_v14, %v2973_v39  ;;  %v11123_v37 = vld [vmem:[#allocation4_spill] sm:$0xff] }
 0x277   : > { %v8218_v60 = vpop.f32.mrf.mxu1  ;;  %v2978_v39 = vadd.f32 %v11123_v37, %v2884_v19 }
 0x278   : > { %v3178_v9 = vmul.f32 %v9742_v43, %v3163_v57  ;;  %v3161_v52 = vadd.f32 %v3130_v21, %v3067_v11  ;;  %v3070_v22 = vadd.f32 %v8218_v60, %v2976_v10  ;;  %v2979_v21 = vadd.f32 %v9716_v55, %v2885_v50  ;;  %v3149_v10 = vpop.f32.mrf.mxu0 }
 0x279   : > { %v3039_v13 = vpop.f32.mrf.mxu1 }
 0x27a   : > { %v3176_v56 = vmul.f32 %v9742_v43, %v3161_v52  ;;  %v3164_v0 = vadd.f32 %v8230_v16, %v3070_v22  ;;  %v3068_v23 = vadd.f32 %v3039_v13, %v2974_v32  ;;  %v3193_v59 = vadd.f32 %v9754_v12, %v3178_v9 }
 0x27b   : > { %v8221_v51 = vpop.f32.mrf.mxu1  ;;  %v9797_v9 = vsel %vm9787_vm2, %v3529_v46, %v3533_v62 }
 0x27c   : > { %v3179_v45 = vmul.f32 %v9742_v43, %v3164_v0  ;;  %v3162_v53 = vadd.f32 %v3133_v54, %v3068_v23  ;;  %v3191_v16 = vadd.f32 %v9754_v12, %v3176_v56  ;;  %v3073_v63 = vadd.f32 %v8221_v51, %v2979_v21 }
 0x27d   : > { %v3052_v1 = vpop.f32.mrf.mxu1  ;;  %v3201_v5 = vmax.f32 %v3193_v59, 0.0 }
 0x27e   : > { %v3194_v58 = vadd.f32 %v9754_v12, %v3179_v45  ;;  %v3177_v55 = vmul.f32 %v9742_v43, %v3162_v53  ;;  %v3071_v28 = vadd.f32 %v3052_v1, %v2977_v47  ;;  %v3167_v30 = vadd.f32 %v8233_v15, %v3073_v63 }
 0x27f   : > { %v8222_v34 = vpop.f32.mrf.mxu1  ;;  %v3199_v54 = vmax.f32 %v3191_v16, 0.0  ;;  %v11126_v16 = vld [vmem:[#allocation3_spill] sm:$0xff] }
 0x280   : > { %v3202_v38 = vmax.f32 %v3194_v58, 0.0  ;;  %v3192_v3 = vadd.f32 %v9754_v12, %v3177_v55  ;;  %v3165_v25 = vadd.f32 %v3146_v42, %v3071_v28  ;;  %v3074_v40 = vadd.f32 %v8222_v34, %v2980_v6 }
 0x281   : > { %v3182_v61 = vmul.f32 %v9742_v43, %v3167_v30  ;;  %v3055_v20 = vpop.f32.mrf.mxu1 }
 0x282   : > { %v3208_v14 = vmax.f32 %v3201_v5, %v3202_v38  ;;  %v3200_v49 = vmax.f32 %v3192_v3, 0.0  ;;  %v3180_v35 = vmul.f32 %v9742_v43, %v3165_v25  ;;  %v3168_v26 = vadd.f32 %v8234_v36, %v3074_v40 }
 0x283   : > { %v3197_v57 = vadd.f32 %v9754_v12, %v3182_v61  ;;  %v3072_v11 = vadd.f32 %v3055_v20, %v2978_v39 }
 0x284   : > { %v3232_v24 = vcombine.high %v3208_v14, %v3208_v14  ;;  %v3239_v50 = vrot.slane %v3208_v14, %v9034_v48  ;;  %v3207_v8 = vmax.f32 %v3199_v54, %v3200_v49  ;;  %v9792_v32 = vadd.f32 %v9754_v12, %v3180_v35 }
 0x285   : > { %v3183_v15 = vmul.f32 %v9742_v43, %v3168_v26  ;;  %v3166_v44 = vadd.f32 %v3149_v10, %v3072_v11  ;;  %v3205_v41 = vmax.f32 %v3197_v57, 0.0 }
 0x286   : > { %v3246_v52 = vrot.slane %v3232_v24, %v9034_v48  ;;  %v3247_v22 = vcombine.high %v3239_v50, %v3239_v50  ;;  %v7413_v13 = vrot.slane %v3239_v50, 9  ;;  %v3215_v33 = vcombine.high %v3207_v8, %v3207_v8 }
 0x287   : > { %v3222_v17 = vrot.slane %v3207_v8, %v9034_v48  ;;  %v3198_v56 = vadd.f32 %v9754_v12, %v3183_v15  ;;  %v3181_v0 = vmul.f32 %v9742_v43, %v3166_v44  ;;  %v3203_v26 = vmax.f32 %v9792_v32, 0.0 }
 0x288   : > { %v3248_v23 = vcombine.high %v3246_v52, %v3246_v52  ;;  %v7414_v27 = vrot.slane %v3247_v22, 9  ;;  %v7415_v59 = vrot.slane %v3246_v52, 9  ;;  %v3351_v21 = vmax.f32 %v3239_v50, %v7413_v13 }
 0x289   : > { %v3229_v51 = vrot.slane %v3215_v33, %v9034_v48  ;;  %v3230_v2 = vcombine.high %v3222_v17, %v3222_v17  ;;  %v7409_v42 = vrot.slane %v3222_v17, 9  ;;  %v3206_v45 = vmax.f32 %v3198_v56, 0.0 }
 0x28a   : > { %v7416_v53 = vrot.slane %v3248_v23, 9  ;;  %v3352_v47 = vmax.f32 %v3247_v22, %v7414_v27  ;;  %v3353_v19 = vmax.f32 %v3246_v52, %v7415_v59  ;;  %v3398_v63 = vrot.slane %v3351_v21, %v11126_v16 }
 0x28b   : > { %v3231_v1 = vcombine.high %v3229_v51, %v3229_v51  ;;  %v7410_v7 = vrot.slane %v3230_v2, 9  ;;  %v7411_v58 = vrot.slane %v3229_v51, 9  ;;  %v3347_v55 = vmax.f32 %v3222_v17, %v7409_v42 }
 0x28c   : > { %v3354_v28 = vmax.f32 %v3248_v23, %v7416_v53  ;;  %v3402_v43 = vrot.slane %v3352_v47, %v11126_v16  ;;  %v3406_v6 = vrot.slane %v3353_v19, %v11126_v16  ;;  %v3210_v18 = vmax.f32 %v3205_v41, %v3206_v45 }
 0x28d   : > { %v7412_v5 = vrot.slane %v3231_v1, 9  ;;  %v3348_v30 = vmax.f32 %v3230_v2, %v7410_v7  ;;  %v3349_v34 = vmax.f32 %v3229_v51, %v7411_v58  ;;  %v3382_v62 = vrot.slane %v3347_v55, %v11126_v16 }
 0x28e   : > { %v3410_v36 = vrot.slane %v3354_v28, %v11126_v16  ;;  %v3446_v38 = vsel %vm1940_vm6, %v3402_v43, %v3398_v63  ;;  %v3266_v3 = vcombine.high %v3210_v18, %v3210_v18  ;;  %v3273_v25 = vrot.slane %v3210_v18, %v9034_v48 }
 0x28f   : > { %v3447_v40 = vsel %vm1942_vm7, %v3406_v6, %v3446_v38  ;;  %v3350_v54 = vmax.f32 %v3231_v1, %v7412_v5  ;;  %v3386_v61 = vrot.slane %v3348_v30, %v11126_v16  ;;  %v3390_v37 = vrot.slane %v3349_v34, %v11126_v16 }
 0x290   : > { %v3280_v39 = vrot.slane %v3266_v3, %v9034_v48  ;;  %v3281_v20 = vcombine.high %v3273_v25, %v3273_v25  ;;  %v7421_v46 = vrot.slane %v3273_v25, 9  ;;  %v3196_v14 = vadd.f32 %v9754_v12, %v3181_v0 }
 0x291   : > { %v3394_v49 = vrot.slane %v3350_v54, %v11126_v16  ;;  %v3443_v35 = vsel %vm1940_vm6, %v3386_v61, %v3382_v62  ;;  %v3448_v57 = vsel %vm1944_vm8, %v3410_v36, %v3447_v40  ;;  %v7444_v56 = vrot.slane %v9734_v4, 9 }
 0x292   : > { %v3444_v11 = vsel %vm1942_vm7, %v3390_v37, %v3443_v35  ;;  %v3282_v10 = vcombine.high %v3280_v39, %v3280_v39  ;;  %v7422_v24 = vrot.slane %v3281_v20, 9  ;;  %v7423_v50 = vrot.slane %v3280_v39, 9 }
 0x293   : > { %v3445_v8 = vsel %vm1944_vm8, %v3394_v49, %v3444_v11  ;;  %v3359_v15 = vmax.f32 %v3273_v25, %v7421_v46  ;;  %v3204_v44 = vmax.f32 %v3196_v14, 0.0  ;;  %v3460_v52 = vsel %vm2010_vm12, 0.0, %v3448_v57 }
 0x294   : > { %v7424_v12 = vrot.slane %v3282_v10, 9  ;;  %v3360_v22 = vmax.f32 %v3281_v20, %v7422_v24  ;;  %v3361_v13 = vmax.f32 %v3280_v39, %v7423_v50  ;;  %v3459_v33 = vsel %vm2010_vm12, 0.0, %v3445_v8 }
 0x295   : > { %v3209_v17 = vmax.f32 %v3203_v26, %v3204_v44  ;;  %v9825_v32 = vsel %vm719_vm1, %v3459_v33, 0.0  ;;  %v9828_v41 = vsel %vm719_vm1, %v3460_v52, 0.0  ;;  %v3766_v59 = vrot.slane %v9758_v31, 7 }
 0x296   : > { %v3362_v0 = vmax.f32 %v3282_v10, %v7424_v12  ;;  %v3434_v23 = vrot.slane %v3360_v22, %v11126_v16  ;;  %v3467_v27 = vpack.c.bf16 %v9825_v32, %v9825_v32  ;;  %v3468_v2 = vpack.c.bf16 %v9828_v41, %v9828_v41  ;;  %v8404_v10 = vld [vmem:[%s11089_s7 + $0x68] sm:$0xff]  }
 0x297   : > { %v3249_v21 = vcombine.high %v3209_v17, %v3209_v17  ;;  %v3256_v51 = vrot.slane %v3209_v17, %v9034_v48  ;;  %v7469_v42 = vpack.c.bf16 %v9828_v41, %v9825_v32  ;;  %v3430_v45 = vrot.slane %v3359_v15, %v11126_v16 }
 0x298   : > { %v3438_v4 = vrot.slane %v3361_v13, %v11126_v16  ;;  %v3442_v53 = vrot.slane %v3362_v0, %v11126_v16  ;;  %v9844_v47 = vrot.slane %v3467_v27, %v9034_v48  ;;  %v9848_v1 = vrot.slane %v3468_v2, %v9034_v48 }
 0x299   : > { %v3263_v31 = vrot.slane %v3249_v21, %v9034_v48  ;;  %v3264_v19 = vcombine.high %v3256_v51, %v3256_v51  ;;  %v7417_v63 = vrot.slane %v3256_v51, 9  ;;  %v3452_v7 = vsel %vm1940_vm6, %v3434_v23, %v3430_v45 }
 0x29a   : > { %v3497_v58 = vcombine.high %v9844_v47, %v9844_v47  ;;  %v3536_v55 = vshrl.u32 %v9844_v47, 16  ;;  %v3539_v28 = vshll.u32 %v9844_v47, 16  ;;  %v3672_v30 = vcombine.low %v11120_v29, %v3467_v27 }
 0x29b   : > { %v3265_v43 = vcombine.high %v3263_v31, %v3263_v31  ;;  %v7418_v6 = vrot.slane %v3264_v19, 9  ;;  %v7419_v18 = vrot.slane %v3263_v31, 9  ;;  %v3355_v5 = vmax.f32 %v3256_v51, %v7417_v63 }
 0x29c   : > { %v3505_v34 = vcombine.high %v9848_v1, %v9848_v1  ;;  %v3538_v62 = vrot.slane %v3536_v55, 6  ;;  %v3541_v36 = vrot.slane %v3539_v28, 7  ;;  %v3545_v40 = vshll.u32 %v3497_v58, 16 }
 0x29d   : > { %v7420_v38 = vrot.slane %v3265_v43, 9  ;;  %v3356_v3 = vmax.f32 %v3264_v19, %v7418_v6  ;;  %v3357_v25 = vmax.f32 %v3263_v31, %v7419_v18  ;;  %v3414_v54 = vrot.slane %v3355_v5, %v11126_v16  ;;  %v8400_v6 = vld [vmem:[%s11089_s7 + $0x78] sm:$0xff]  }
 0x29e   : > { %v3542_v61 = vor.u32 %v3541_v36, %v3538_v62  ;;  %v3550_v37 = vshrl.u32 %v9848_v1, 16  ;;  %v3553_v39 = vshll.u32 %v9848_v1, 16  ;;  %v3559_v49 = vshll.u32 %v3505_v34, 16 }
 0x29f   : > { %v3358_v20 = vmax.f32 %v3265_v43, %v7420_v38  ;;  %v3418_v46 = vrot.slane %v3356_v3, %v11126_v16  ;;  %v3422_v14 = vrot.slane %v3357_v25, %v11126_v16  ;;  %v3453_v11 = vsel %vm1942_vm7, %v3438_v4, %v3452_v7 }
 0x2a0   : > { %v3543_v35 = vrot.slane %v3542_v61, 2  ;;  %v3552_v26 = vrot.slane %v3550_v37, 6  ;;  %v3555_v57 = vrot.slane %v3553_v39, 7  ;;  %v3454_v8 = vsel %vm1944_vm8, %v3442_v53, %v3453_v11  ;;  %v8402_v39 = vld [vmem:[%s11089_s7 + $0x70] sm:$0xff]  }
 0x2a1   : > { %v3426_v24 = vrot.slane %v3358_v20, %v11126_v16  ;;  %v3449_v50 = vsel %vm1940_vm6, %v3418_v46, %v3414_v54  ;;  %v9877_v15 = vsel %vm9868_vm9, %v7444_v56, %v3766_v59  ;;  %v3547_v52 = vrot.slane %v3545_v40, 7 }
 0x2a2   : > { %v3450_v44 = vsel %vm1942_vm7, %v3422_v14, %v3449_v50  ;;  %v3556_v12 = vor.u32 %v3555_v57, %v3552_v26  ;;  %v3462_v22 = vsel %vm2010_vm12, 0.0, %v3454_v8  ;;  %v3680_v33 = vrot.slane %v3672_v30, %v9034_v48 }
 0x2a3   : > { %v3451_v13 = vsel %vm1944_vm8, %v3426_v24, %v3450_v44  ;;  %v3561_v17 = vrot.slane %v3559_v49, 7  ;;  %v3466_v0 = vsel %vm719_vm1, %v3462_v22, 0.0  ;;  %v9887_v27 = vsel %vm9787_vm2, %v3543_v35, %v3547_v52 }
 0x2a4   : > { %v3461_v23 = vsel %vm2010_vm12, 0.0, %v3451_v13  ;;  %v3557_v56 = vrot.slane %v3556_v12, 2  ;;  %v3470_v59 = vpack.c.bf16 %v3466_v0, %v3466_v0  ;;  %v7445_v51 = vrot.slane %v9844_v47, 9 }
 0x2a5   : > { %v3465_v21 = vsel %vm719_vm1, %v3461_v23, 0.0  ;;  %v3770_v2 = vrot.slane %v3497_v58, 7  ;;  %v7446_v45 = vrot.slane %v9848_v1, 9  ;;  %v3774_v55 = vrot.slane %v3505_v34, 7 }
 0x2a6   : > { %v3469_v4 = vpack.c.bf16 %v3465_v21, %v3465_v21  ;;  %v7438_v53 = vpack.c.bf16 %v3465_v21, %v9828_v41  ;;  %v9895_v31 = vsel %vm9787_vm2, %v3557_v56, %v3561_v17  ;;  %v7470_v19 = vpack.c.bf16 %v3466_v0, %v3465_v21 }
 0x2a7   : > { %v3979_v63 = vrot.slane %v3470_v59, %v9034_v48  ;;  %v3771_v7 = vsel %vm9868_vm9, %v7445_v51, %v3770_v2  ;;  %v4004_v47 = vcombine.low %v9887_v27, %v9895_v31  ;;  %v9908_v28 = vrot.slane %v7469_v42, %v9034_v48 }
 0x2a8   : > { %v3512_v58 = vrot.slane %v3469_v4, %v9034_v48  ;;  %v3687_v1 = vrot.slane %v7438_v53, %v9034_v48  ;;  %v9911_v43 = vrot.slane %v7470_v19, %v9034_v48  ;;  %v3775_v18 = vsel %vm9868_vm9, %v7446_v45, %v3774_v55 }
 0x2a9   : > { %v3789_v5 = vcombine.low %v9877_v15, %v3771_v7  ;;  %v3980_v30 = vcombine.high %v3979_v63, %v3979_v63  ;;  %v3982_v34 = vshrl.u32 %v3979_v63, 16  ;;  %v7489_v3 = vrot.slane %v3979_v63, 9 }
 0x2aa   : > { %v3688_v62 = vcombine.low %v3680_v33, %v3687_v1  ;;  %v3513_v36 = vcombine.high %v3512_v58, %v3512_v58  ;;  %v3564_v38 = vshrl.u32 %v3512_v58, 16  ;;  %v3567_v32 = vshll.u32 %v3512_v58, 16 }
 0x2ab   : > { %v3902_v41 = vcombine.low %v9908_v28, %v9911_v43  ;;  %v7447_v42 = vrot.slane %v3512_v58, 9  ;;  %v4093_v25 = vrot.slane %v3980_v30, 7  ;;  %v3586_v20 = vcombine.low %v9797_v9, %v9887_v27  ;;  %v8409_v27 = vld [vmem:[%s11089_s7 + $0x50] sm:$0xff]   ;;  %v8412_v28 = vld [vmem:[%s11089_s7 + $0xa8] sm:$0xff]   ;;  %v8413_v43 = vld [vmem:[%s11089_s7 + $0x40] sm:$0xff]  }
 0x2ac   : > { %8256 = vmatmul.mubr.msk.bf16.vlgmr.msra.gmra.mxu0 %vm3627_vm11, %v3688_v62  ;;  %v3566_v40 = vrot.slane %v3564_v38, 6  ;;  %v3569_v54 = vrot.slane %v3567_v32, 7  ;;  %v3573_v61 = vshll.u32 %v3513_v36, 16  ;;  %v3778_v37 = vrot.slane %v3513_v36, 7  ;;  %v8410_v36 = vld [vmem:[%s11089_s7 + $0xb0] sm:$0xff]   ;;  %v8411_v38 = vld [vmem:[%s11089_s7 + $0x48] sm:$0xff]  }
 0x2ad   : > { %8272 = vmatpush3.bf16.msra.mxu0 %v8400_v6  ;;  %v11129_v46 = vmov 0.0   ;;  %v4104_v14 = vcombine.low %v3771_v7, %v3775_v18  ;;  %v3984_v49 = vrot.slane %v3982_v34, 6  ;;  %v3985_v35 = vshll.u32 %v3979_v63, 16  ;;  %v8406_v63 = vld [vmem:[%s11089_s7 + $0x60] sm:$0xff]  }
 0x2ae   : > { %8279 = vmatprep.mubr.msk.bf16.mxu0 %vm8852_vm3, %v11129_v46  ;;  %8273 = vmatprep.subr.bf16.mxu0 %v11129_v46  ;;  %v3570_v26 = vor.u32 %v3569_v54, %v3566_v40  ;;  %v3779_v57 = vsel %vm9868_vm9, %v7447_v42, %v3778_v37  ;;  %v4094_v11 = vsel %vm9868_vm9, %v7489_v3, %v4093_v25  ;;  %v3991_v24 = vshll.u32 %v3980_v30, 16  ;;  %v8414_v32 = vld [vmem:[%s11089_s7 + $0xa0] sm:$0xff]   ;;  %v8416_v42 = vld [vmem:[%s11089_s7 + $0xf8] sm:$0xff]   ;;  %v8417_v3 = vld [vmem:[%s11089_s7 + $0x90] sm:$0xff]  }
 0x2af   : > { %v3790_v50 = vcombine.low %v3775_v18, %v3779_v57  ;;  %v9935_v8 = vrot.slane %v3789_v5, %v9034_v48  ;;  %v4105_v44 = vcombine.low %v3779_v57, %v4094_v11  ;;  %v3987_v52 = vrot.slane %v3985_v35, 7  ;;  %v8418_v25 = vld [vmem:[%s11089_s7 + $0xf0] sm:$0xff]   ;;  %v8419_v40 = vld [vmem:[%s11089_s7 + $0x88] sm:$0xff]   ;;  %v8422_v37 = vld [vmem:[%s11089_s7 + $0xe0] sm:$0xff]  }
 0x2b0   : > { %v3571_v12 = vrot.slane %v3570_v26, 2  ;;  %v3575_v22 = vrot.slane %v3573_v61, 7  ;;  %v9938_v13 = vrot.slane %v4104_v14, %v9034_v48  ;;  %v4200_v33 = vcombine.low %v3470_v59, %v11120_v29  ;;  %v8420_v54 = vld [vmem:[%s11089_s7 + $0xe8] sm:$0xff]   ;;  %v8421_v61 = vld [vmem:[%s11089_s7 + $0x80] sm:$0xff]   ;;  %v8427_v35 = vld [vmem:[%s11089_s7 + $0x118] sm:$0xff]  }
 0x2b1   : > { %8274 = vmatpush3.bf16.msra.mxu0 %v8402_v39  ;;  %v9945_v17 = vrot.slane %v3790_v50, %v9034_v48  ;;  %v9948_v0 = vrot.slane %v4105_v44, %v9034_v48  ;;  %v3988_v23 = vor.u32 %v3987_v52, %v3984_v49  ;;  %v4376_v56 = vcombine.low %v4094_v11, %v9877_v15  ;;  %v8423_v39 = vld [vmem:[%s11089_s7 + $0xd8] sm:$0xff]   ;;  %v8425_v14 = vld [vmem:[%s11089_s7 + $0xc8] sm:$0xff]   ;;  %v8426_v49 = vld [vmem:[%s11089_s7 + $0xc0] sm:$0xff]  }
 0x2b2   : > { %8275 = vmatprep.subr.bf16.mxu0 %v11129_v46  ;;  %v3576_v21 = vsel %vm9787_vm2, %v3571_v12, %v3575_v22  ;;  %v3993_v59 = vrot.slane %v3991_v24, 7  ;;  %v4207_v51 = vrot.slane %v4200_v33, %v9034_v48  ;;  %v3594_v7 = vrot.slane %v3586_v20, %v9034_v48  ;;  %v8424_v20 = vld [vmem:[%s11089_s7 + $0xd0] sm:$0xff]   ;;  %v8429_v57 = vld [vmem:[%s11089_s7 + $0x108] sm:$0xff]   ;;  %v8430_v11 = vld [vmem:[%s11089_s7 + $0x100] sm:$0xff]  }
 0x2b3   : > { %v3587_v2 = vcombine.low %v9895_v31, %v3576_v21  ;;  %v3805_v45 = vcombine.low %v9935_v8, %v9945_v17  ;;  %v4120_v4 = vcombine.low %v9938_v13, %v9948_v0  ;;  %v3989_v53 = vrot.slane %v3988_v23, 2  ;;  %v8428_v26 = vld [vmem:[%s11089_s7 + $0x110] sm:$0xff]   ;;  %v8436_v8 = vld [vmem:[%s11092_s10 + $0x64] ss:$8 sps:$4 sm:$0xff]   ;;  %v8443_v0 = vld [vmem:[%s11092_s10 + $0x40] ss:$8 sps:$4 sm:$0xff]  }
 0x2b4   : > { %v9960_v19 = vcombine.low %v3687_v1, %v4207_v51  ;;  %v9963_v15 = vrot.slane %v4376_v56, %v9034_v48  ;;  %v8407_v1 = vld [vmem:[%s11089_s7 + $0x58] sm:$0xff]   ;;  %v4012_v60 = vrot.slane %v4004_v47, %v9034_v48  ;;  %v8448_v13 = vld [vmem:[%s11092_s10 + $0xe4] ss:$8 sps:$4 sm:$0xff]   ;;  %vm4613_vm1 = vsmask.f32 256 }
 0x2b5   : > { %8276 = vmatpush3.bf16.msra.mxu0 %v8404_v10  ;;  %v9970_v55 = vrot.slane %v3587_v2, %v9034_v48  ;;  %v3994_v58 = vsel %vm9787_vm2, %v3989_v53, %v3993_v59  ;;  %v8431_v24 = vld [vmem:[%s11092_s10 + $0x70] ss:$8 sps:$4 sm:$0xff]   ;;  %v8433_v50 = vld [vmem:[%s11092_s10 + $0x74] ss:$8 sps:$4 sm:$0xff]   ;;  %v8445_v33 = vld [vmem:[%s11092_s10 + $0x44] ss:$8 sps:$4 sm:$0xff]  }
 0x2b6   : > { %8277 = vmatprep.subr.bf16.mxu0 %v11129_v46  ;;  %v4005_v6 = vcombine.low %v3576_v21, %v3994_v58  ;;  %v4288_v18 = vcombine.low %v3994_v58, %v9797_v9  ;;  %v4384_v5 = vcombine.low %v9945_v17, %v9963_v15  ;;  %v8408_v9 = vld [vmem:[%s11089_s7 + $0xb8] sm:$0xff]   ;;  %v8446_v10 = vld [vmem:[%s11092_s10 + $0xe0] ss:$8 sps:$4 sm:$0xff]   ;;  %v8460_v21 = vld [vmem:[%s11092_s10 + $0xc4] ss:$8 sps:$4 sm:$0xff]   ;;  %v8853_v59 = vmov 0  }
 0x2b7   : > { %v3602_v30 = vcombine.low %v3594_v7, %v9970_v55  ;;  %v8439_v44 = vld [vmem:[%s11092_s10 + $0x54] ss:$8 sps:$4 sm:$0xff]   ;;  %v8440_v52 = vld [vmem:[%s11092_s10 + $0xf0] ss:$8 sps:$4 sm:$0xff]   ;;  %v8457_v2 = vld [vmem:[%s11092_s10 + $0x24] ss:$8 sps:$4 sm:$0xff]  }
 0x2b8   : > { %v4019_v34 = vrot.slane %v4005_v6, %v9034_v48  ;;  %v9988_v62 = vrot.slane %v4288_v18, %v9034_v48  ;;  %v8442_v12 = vld [vmem:[%s11092_s10 + $0xf4] ss:$8 sps:$4 sm:$0xff]   ;;  %v8437_v22 = vld [vmem:[%s11092_s10 + $0x50] ss:$8 sps:$4 sm:$0xff]   ;;  %v8455_v53 = vld [vmem:[%s11092_s10 + $0x20] ss:$8 sps:$4 sm:$0xff]  }
 0x2b9   : > { %8278 = vmatpush3.bf16.msra.mxu0 %v8406_v63  ;;  %8244 = vmatmul.mubr.msk.bf16.vlgmr.msra.gmra.mxu1 %vm3627_vm11, %v3602_v30  ;;  %v8454_v17 = vld [vmem:[%s11092_s10 + $0xd4] ss:$8 sps:$4 sm:$0xff]   ;;  %v8452_v56 = vld [vmem:[%s11092_s10 + $0xd0] ss:$8 sps:$4 sm:$0xff]   ;;  %v8472_v63 = vld [vmem:[%s11092_s10 + $0xa4] ss:$8 sps:$4 sm:$0xff]  }
 0x2ba   : > { %8260 = vmatpush3.bf16.msra.mxu1 %v8407_v1  ;;  %8295 = vmatprep.subr.bf16.mxu0 %v11129_v46  ;;  %v4020_v31 = vcombine.low %v4012_v60, %v4019_v34  ;;  %v4296_v47 = vcombine.low %v9970_v55, %v9988_v62  ;;  %v8451_v23 = vld [vmem:[%s11092_s10 + $0x34] ss:$8 sps:$4 sm:$0xff]   ;;  %v8449_v51 = vld [vmem:[%s11092_s10 + $0x30] ss:$8 sps:$4 sm:$0xff]   ;;  %v8469_v55 = vld [vmem:[%s11092_s10 + $0x4] ss:$8 sps:$4 sm:$0xff]  }
 0x2bb   : > { %8261 = vmatprep.subr.bf16.mxu1 %v11129_v46  ;;  %8267 = vmatprep.mubr.msk.bf16.mxu1 %vm8852_vm3, %v11129_v46  ;;  %v8464_v15 = vld [vmem:[%s11092_s10 + $0xb0] ss:$8 sps:$4 sm:$0xff]   ;;  %v8470_v58 = vld [vmem:[%s11092_s10 + $0xa0] ss:$8 sps:$4 sm:$0xff]   ;;  %v8478_v1 = vld [vmem:[%s11092_s10 + $0x94] ss:$8 sps:$4 sm:$0xff]  }
 0x2bc   : > { %8280 = vmatmul.mubr.msk.bf16.vlgmr.msra.gmra.mxu0 %vm3627_vm11, %v3902_v41  ;;  %v8415_v41 = vld [vmem:[%s11089_s7 + $0x98] sm:$0xff]   ;;  %v8467_v6 = vld [vmem:[%s11092_s10] ss:$8 sps:$4 sm:$0xff]   ;;  %v8484_v30 = vld [vmem:[%s11092_s10 + $0x84] ss:$8 sps:$4 sm:$0xff]  }
 0x2bd   : > { %8296 = vmatpush3.bf16.msra.mxu0 %v8408_v9  ;;  %8303 = vmatprep.mubr.msk.bf16.mxu0 %vm8852_vm3, %v11129_v46  ;;  %v8461_v7 = vld [vmem:[%s11092_s10 + $0x10] ss:$8 sps:$4 sm:$0xff]   ;;  %v8475_v18 = vld [vmem:[%s11092_s10 + $0x1f4] ss:$8 sps:$4 sm:$0xff]   ;;  %v8482_v62 = vld [vmem:[%s11092_s10 + $0x80] ss:$8 sps:$4 sm:$0xff]  }
 0x2be   : > { %8262 = vmatpush3.bf16.msra.mxu1 %v8409_v27  ;;  %8297 = vmatprep.subr.bf16.mxu0 %v11129_v46  ;;  %v8490_v9 = vld [vmem:[%s11092_s10 + $0x174] ss:$8 sps:$4 sm:$0xff]   ;;  %vm4614_vm7 = vsmask.f32 1284  ;;  %vm4620_vm2 = vsmask.f32 4368 }
 0x2bf   : > { %8263 = vmatprep.subr.bf16.mxu1 %v11129_v46  ;;  %vm4615_vm8 = vmor %vm4613_vm1, %vm4614_vm7  ;;  %vm4626_vm7 = vsmask.f32 7452 }
 0x2c1   : > { %8298 = vmatpush3.bf16.msra.mxu0 %v8410_v36 }
 0x2c2   : > { %8264 = vmatpush3.bf16.msra.mxu1 %v8411_v38  ;;  %8299 = vmatprep.subr.bf16.mxu0 %v11129_v46 }
 0x2c3   : > { %8265 = vmatprep.subr.bf16.mxu1 %v11129_v46 }
 0x2c5   : > { %8300 = vmatpush3.bf16.msra.mxu0 %v8412_v28 }
 0x2c6   : > { %8266 = vmatpush3.bf16.msra.mxu1 %v8413_v43  ;;  %8301 = vmatprep.subr.bf16.mxu0 %v11129_v46 }
 0x2c7   : > { %8283 = vmatprep.subr.bf16.mxu1 %v11129_v46 }
 0x2c9   : > { %8268 = vmatmul.mubr.msk.bf16.vlgmr.msra.gmra.mxu1 %vm3627_vm11, %v3805_v45  ;;  %8302 = vmatpush3.bf16.msra.mxu0 %v8414_v32  ;;  %v8458_v45 = vld [vmem:[%s11092_s10 + $0xc0] ss:$8 sps:$4 sm:$0xff]  }
 0x2ca   : > { %8284 = vmatpush3.bf16.msra.mxu1 %v8415_v41  ;;  %8319 = vmatprep.subr.bf16.mxu0 %v11129_v46 }
 0x2cb   : > { %8285 = vmatprep.subr.bf16.mxu1 %v11129_v46  ;;  %8291 = vmatprep.mubr.msk.bf16.mxu1 %vm8852_vm3, %v11129_v46 }
 0x2cc   : > { %8304 = vmatmul.mubr.msk.bf16.vlgmr.msra.gmra.mxu0 %vm3627_vm11, %v4120_v4  ;;  %v8466_v4 = vld [vmem:[%s11092_s10 + $0xb4] ss:$8 sps:$4 sm:$0xff]  }
 0x2cd   : > { %8320 = vmatpush3.bf16.msra.mxu0 %v8416_v42  ;;  %8327 = vmatprep.mubr.msk.bf16.mxu0 %vm8852_vm3, %v11129_v46 }
 0x2ce   : > { %8286 = vmatpush3.bf16.msra.mxu1 %v8417_v3  ;;  %8321 = vmatprep.subr.bf16.mxu0 %v11129_v46 }
 0x2cf   : > { %8287 = vmatprep.subr.bf16.mxu1 %v11129_v46 }
 0x2d1   : > { %8322 = vmatpush3.bf16.msra.mxu0 %v8418_v25 }
 0x2d2   : > { %8288 = vmatpush3.bf16.msra.mxu1 %v8419_v40  ;;  %8323 = vmatprep.subr.bf16.mxu0 %v11129_v46 }
 0x2d3   : > { %8289 = vmatprep.subr.bf16.mxu1 %v11129_v46 }
 0x2d5   : > { %8324 = vmatpush3.bf16.msra.mxu0 %v8420_v54 }
 0x2d6   : > { %8290 = vmatpush3.bf16.msra.mxu1 %v8421_v61  ;;  %8325 = vmatprep.subr.bf16.mxu0 %v11129_v46 }
 0x2d7   : > { %8307 = vmatprep.subr.bf16.mxu1 %v11129_v46 }
 0x2d9   : > { %8292 = vmatmul.mubr.msk.bf16.vlgmr.msra.gmra.mxu1 %vm3627_vm11, %v4020_v31  ;;  %8326 = vmatpush3.bf16.msra.mxu0 %v8422_v37 }
 0x2da   : > { %8308 = vmatpush3.bf16.msra.mxu1 %v8423_v39  ;;  %8315 = vmatprep.mubr.msk.bf16.mxu1 %vm8852_vm3, %v11129_v46 }
 0x2db   : > { %8309 = vmatprep.subr.bf16.mxu1 %v11129_v46  ;;  %4759 = vmatprep.subr.bf16.mxu0 %v8442_v12 }
 0x2dc   : > { %8328 = vmatmul.mubr.msk.bf16.vlgmr.msra.gmra.mxu0 %vm3627_vm11, %v4296_v47 }
 0x2dd   : > { %4760 = vmatpush1.bf16.msra.mxu0 %v8440_v52  ;;  %4791 = vmatprep.mubr.bf16.mxu0 %v8853_v59 }
 0x2de   : > { %8310 = vmatpush3.bf16.msra.mxu1 %v8424_v20  ;;  %4761 = vmatprep.subr.bf16.mxu0 %v8448_v13 }
 0x2df   : > { %8311 = vmatprep.subr.bf16.mxu1 %v11129_v46 }
 0x2e1   : > { %4762 = vmatpush1.bf16.msra.mxu0 %v8446_v10 }
 0x2e2   : > { %8312 = vmatpush3.bf16.msra.mxu1 %v8425_v14  ;;  %4763 = vmatprep.subr.bf16.mxu0 %v8454_v17 }
 0x2e3   : > { %8313 = vmatprep.subr.bf16.mxu1 %v11129_v46 }
 0x2e5   : > { %4764 = vmatpush1.bf16.msra.mxu0 %v8452_v56 }
 0x2e6   : > { %8314 = vmatpush3.bf16.msra.mxu1 %v8426_v49  ;;  %4765 = vmatprep.subr.bf16.mxu0 %v8460_v21 }
 0x2e7   : > { %8331 = vmatprep.subr.bf16.mxu1 %v11129_v46 }
 0x2e9   : > { %8316 = vmatmul.mubr.msk.bf16.vlgmr.msra.gmra.mxu1 %vm3627_vm11, %v9960_v19  ;;  %4766 = vmatpush1.bf16.msra.mxu0 %v8458_v45  ;;  %v8463_v19 = vld [vmem:[%s11092_s10 + $0x14] ss:$8 sps:$4 sm:$0xff]  }
 0x2ea   : > { %8332 = vmatpush3.bf16.msra.mxu1 %v8427_v35  ;;  %8339 = vmatprep.mubr.msk.bf16.mxu1 %vm8852_vm3, %v11129_v46  ;;  %vm4617_vm3 = vmor %vm4615_vm8, %vm4616_vm10 }
 0x2eb   : > { %8333 = vmatprep.subr.bf16.mxu1 %v11129_v46  ;;  %4767 = vmatprep.subr.bf16.mxu0 %v8466_v4  ;;  %vm4619_vm15 = vmor %vm4617_vm3, %vm4618_vm13 }
 0x2ec   : > { %vm4621_vm5 = vmor %vm4619_vm15, %vm4620_vm2 }
 0x2ed   : > { %4768 = vmatpush1.bf16.msra.mxu0 %v8464_v15  ;;  %v7543_v15 = vld [vmem:[%s11091_s9] ss:$0 sm:$0xff]  ;;  %vm4623_vm9 = vmor %vm4621_vm5, %vm4622_vm4 }
 0x2ee   : > { %8334 = vmatpush3.bf16.msra.mxu1 %v8428_v26  ;;  %4769 = vmatprep.subr.bf16.mxu0 %v8472_v63 }
 0x2ef   : > { %8335 = vmatprep.subr.bf16.mxu1 %v11129_v46 }
 0x2f1   : > { %4770 = vmatpush1.bf16.msra.mxu0 %v8470_v58 }
 0x2f2   : > { %8336 = vmatpush3.bf16.msra.mxu1 %v8429_v57  ;;  %4771 = vmatprep.subr.bf16.mxu0 %v8478_v1  ;;  %v8854_v1 = vmov 1966171168  }
 0x2f3   : > { %8337 = vmatprep.subr.bf16.mxu1 %v11129_v46  ;;  %v8434_v46 = vld [vmem:[%s11092_s10 + $0x60] ss:$8 sps:$4 sm:$0xff]  }
 0x2f6   : > { %8338 = vmatpush3.bf16.msra.mxu1 %v8430_v11 }
 0x2f7   : > { %4896 = vmatprep.subr.bf16.mxu1 %v8433_v50 }
 0x2f9   : > { %8340 = vmatmul.mubr.msk.bf16.vlgmr.msra.gmra.mxu1 %vm3627_vm11, %v4384_v5  ;;  %v8476_v5 = vld [vmem:[%s11092_s10 + $0x90] ss:$8 sps:$4 sm:$0xff]   ;;  %vm4624_vm11 = vsmask.f32 6424 }
 0x2fa   : > { %4897 = vmatpush1.bf16.msra.mxu1 %v8431_v24  ;;  %4928 = vmatprep.mubr.bf16.mxu1 %v8853_v59  ;;  %vm4625_vm1 = vmor %vm4623_vm9, %vm4624_vm11 }
 0x2fb   : > { %4898 = vmatprep.subr.bf16.mxu1 %v8436_v8  ;;  %4772 = vmatpush1.bf16.msra.mxu0 %v8476_v5  ;;  %vm10253_vm8 = vmor %vm4625_vm1, %vm4626_vm7 }
 0x2fc   : > { %4773 = vmatprep.subr.bf16.mxu0 %v8484_v30 }
 0x2fe   : > { %4899 = vmatpush1.bf16.msra.mxu1 %v8434_v46 }
 0x2ff   : > { %4900 = vmatprep.subr.bf16.mxu1 %v8439_v44  ;;  %4774 = vmatpush1.bf16.msra.mxu0 %v8482_v62 }
 0x300   : > { %5050 = vmatprep.subr.bf16.mxu0 %v8490_v9 }
 0x302   : > { %4901 = vmatpush1.bf16.msra.mxu1 %v8437_v22 }
 0x303   : > { %4902 = vmatprep.subr.bf16.mxu1 %v8445_v33 }
 0x306   : > { %4903 = vmatpush1.bf16.msra.mxu1 %v8443_v0 }
 0x307   : > { %4904 = vmatprep.subr.bf16.mxu1 %v8451_v23 }
 0x30a   : > { %4905 = vmatpush1.bf16.msra.mxu1 %v8449_v51 }
 0x30b   : > { %4906 = vmatprep.subr.bf16.mxu1 %v8457_v2 }
 0x30e   : > { %4907 = vmatpush1.bf16.msra.mxu1 %v8455_v53  ;;  %v7542_v53 = vld [vmem:[%s11090_s8] ss:$0 sm:$0xff] }
 0x30f   : > { %4908 = vmatprep.subr.bf16.mxu1 %v8463_v19 }
 0x312   : > { %4909 = vmatpush1.bf16.msra.mxu1 %v8461_v7 }
 0x313   : > { %4910 = vmatprep.subr.bf16.mxu1 %v8469_v55 }
 0x316   : > { %4911 = vmatpush1.bf16.msra.mxu1 %v8467_v6  ;;  %v4570_v6 = vunpack.c.l.s4 %v8854_v1 }
 0x317   : > { %5207 = vmatprep.subr.bf16.mxu1 %v8475_v18 }
 0x318   : > { %v4571_v62 = vunpack.c.0.s8 %v4570_v6  ;;  %v8479_v6 = vld [vmem:[%s11092_s10 + $0x1e0] ss:$8 sps:$4 sm:$0xff]  }
 0x36c   : > { %v3750_v60 = vpop.f32.mrf.mxu0 }
 0x36e   : > { %v8257_v34 = vpop.f32.mrf.mxu0 }
 0x370   : > { %v3753_v27 = vpop.f32.mrf.mxu0 }
 0x372   : > { %v8258_v31 = vpop.f32.mrf.mxu0 }
 0x379   : > { %v3665_v47 = vpop.f32.mrf.mxu1 }
 0x37a   : > { %v3751_v22 = vadd.f32 %v3750_v60, %v3665_v47 }
 0x37b   : > { %v8245_v36 = vpop.f32.mrf.mxu1 }
 0x37c   : > { %v3964_v38 = vpop.f32.mrf.mxu0  ;;  %v11130_v36 = vld [vmem:[#allocation2_spill] sm:$0xff] }
 0x37d   : > { %v3668_v28 = vpop.f32.mrf.mxu1 }
 0x37e   : > { %v3754_v43 = vadd.f32 %v3753_v27, %v3668_v28  ;;  %v8281_v32 = vpop.f32.mrf.mxu0 }
 0x37f   : > { %v8246_v41 = vpop.f32.mrf.mxu1 }
 0x380   : > { %v3967_v42 = vpop.f32.mrf.mxu0 }
 0x382   : > { %v8282_v3 = vpop.f32.mrf.mxu0 }
 0x389   : > { %v3867_v25 = vpop.f32.mrf.mxu1 }
 0x38a   : > { %v3874_v13 = vadd.f32 %v3867_v25, %v3751_v22 }
 0x38b   : > { %v8269_v40 = vpop.f32.mrf.mxu1 }
 0x38c   : > { %v4182_v54 = vpop.f32.mrf.mxu0  ;;  %v3971_v17 = vadd.f32 %v3964_v38, %v3874_v13  ;;  %v10222_v38 = vsub.s32 %v4571_v62, %v11130_v36 }
 0x38d   : > { %v3870_v61 = vpop.f32.mrf.mxu1 }
 0x38e   : > { %v3875_v37 = vadd.f32 %v3870_v61, %v3754_v43  ;;  %v8305_v39 = vpop.f32.mrf.mxu0  ;;  %v4575_v3 = vrot.slane %v11120_v29, %v10222_v38 }
 0x38f   : > { %v8270_v20 = vpop.f32.mrf.mxu1 }
 0x390   : > { %v4185_v14 = vpop.f32.mrf.mxu0  ;;  %v3972_v49 = vadd.f32 %v3967_v42, %v3875_v37  ;;  %v4576_v20 = vcombine.high %v4575_v3, %v4575_v3 }
 0x392   : > { %v8306_v35 = vpop.f32.mrf.mxu0 }
 0x399   : > { %v4082_v26 = vpop.f32.mrf.mxu1 }
 0x39a   : > { %v4089_v23 = vadd.f32 %v4082_v26, %v3971_v17 }
 0x39b   : > { %v8293_v57 = vpop.f32.mrf.mxu1 }
 0x39c   : > { %v4358_v11 = vpop.f32.mrf.mxu0  ;;  %v4189_v21 = vadd.f32 %v4182_v54, %v4089_v23 }
 0x39d   : > { %v4085_v24 = vpop.f32.mrf.mxu1 }
 0x39e   : > { %v4090_v50 = vadd.f32 %v4085_v24, %v3972_v49  ;;  %v8329_v46 = vpop.f32.mrf.mxu0 }
 0x39f   : > { %v8294_v8 = vpop.f32.mrf.mxu1 }
 0x3a0   : > { %v4361_v44 = vpop.f32.mrf.mxu0  ;;  %v4190_v52 = vadd.f32 %v4185_v14, %v4090_v50 }
 0x3a2   : > { %v8330_v12 = vpop.f32.mrf.mxu0 }
 0x3a9   : > { %v4270_v33 = vpop.f32.mrf.mxu1 }
 0x3aa   : > { %v4277_v51 = vadd.f32 %v4270_v33, %v4189_v21 }
 0x3ab   : > { %v8317_v10 = vpop.f32.mrf.mxu1 }
 0x3ac   : > { %v4365_v45 = vadd.f32 %v4358_v11, %v4277_v51  ;;  %v8535_v51 = vld [vmem:[%s11092_s10 + $0x2d4] ss:$8 sps:$4 sm:$0xff]  }
 0x3ad   : > { %v4273_v0 = vpop.f32.mrf.mxu1 }
 0x3ae   : > { %v4278_v2 = vadd.f32 %v4273_v0, %v4190_v52 }
 0x3af   : > { %v8318_v56 = vpop.f32.mrf.mxu1 }
 0x3b0   : > { %v4366_v55 = vadd.f32 %v4361_v44, %v4278_v2  ;;  %v10239_v44 = vrot.slane %v4576_v20, %v10222_v38  ;;  %v8508_v20 = vld [vmem:[%s11092_s10 + $0x144] ss:$8 sps:$4 sm:$0xff]  }
 0x3b2   : > { %v4634_v17 = vshll.u32 %v10239_v44, 16 }
 0x3b9   : > { %v4446_v4 = vpop.f32.mrf.mxu1 }
 0x3ba   : > { %v4453_v19 = vadd.f32 %v4446_v4, %v4365_v45  ;;  %v8473_v45 = vld [vmem:[%s11092_s10 + $0x1f0] ss:$8 sps:$4 sm:$0xff]  }
 0x3bb   : > { %v8341_v63 = vpop.f32.mrf.mxu1 }
 0x3bc   : > { %v4462_v7 = vmul.f32 %v7542_v53, %v4453_v19  ;;  %v8481_v19 = vld [vmem:[%s11092_s10 + $0x1e4] ss:$8 sps:$4 sm:$0xff]  }
 0x3bd   : > { %v4449_v58 = vpop.f32.mrf.mxu1 }
 0x3be   : > { %v4471_v18 = vadd.f32 %v7543_v15, %v4462_v7  ;;  %v4454_v5 = vadd.f32 %v4449_v58, %v4366_v55 }
 0x3bf   : > { %v8342_v30 = vpop.f32.mrf.mxu1 }
 0x3c0   : > { %v4473_v60 = vmax.f32 %v4471_v18, 0.0  ;;  %v4463_v34 = vmul.f32 %v7542_v53, %v4454_v5  ;;  %v8487_v18 = vld [vmem:[%s11092_s10 + $0x1d4] ss:$8 sps:$4 sm:$0xff]  }
 0x3c2   : > { %v4477_v9 = vcombine.high %v4473_v60, %v4473_v60  ;;  %v4472_v27 = vadd.f32 %v7543_v15, %v4463_v34 }
 0x3c4   : > { %v4481_v31 = vmax.f32 %v4473_v60, %v4477_v9  ;;  %v4474_v47 = vmax.f32 %v4472_v27, 0.0  ;;  %v8485_v9 = vld [vmem:[%s11092_s10 + $0x1d0] ss:$8 sps:$4 sm:$0xff]  }
 0x3c6   : > { %v4491_v28 = vrot.slane %v4481_v31, %v9034_v48  ;;  %v4478_v43 = vcombine.high %v4474_v47, %v4474_v47  ;;  %v8488_v31 = vld [vmem:[%s11092_s10 + $0x170] ss:$8 sps:$4 sm:$0xff]  }
 0x3c8   : > { %v4492_v32 = vcombine.high %v4491_v28, %v4491_v28  ;;  %v7544_v41 = vrot.slane %v4491_v28, 9  ;;  %v4482_v42 = vmax.f32 %v4474_v47, %v4478_v43  ;;  %v8493_v47 = vld [vmem:[%s11092_s10 + $0x1c4] ss:$8 sps:$4 sm:$0xff]  }
 0x3ca   : > { %v7545_v25 = vrot.slane %v4492_v32, 9  ;;  %v4517_v40 = vmax.f32 %v4491_v28, %v7544_v41  ;;  %v4499_v54 = vrot.slane %v4482_v42, %v9034_v48  ;;  %v4583_v48 = vrot.slane %v4575_v3, %v10222_v38  ;;  %v8491_v3 = vld [vmem:[%s11092_s10 + $0x1c0] ss:$8 sps:$4 sm:$0xff]  }
 0x3cc   : > { %v4518_v61 = vmax.f32 %v4492_v32, %v7545_v25  ;;  %v4500_v37 = vcombine.high %v4499_v54, %v4499_v54  ;;  %v7546_v39 = vrot.slane %v4499_v54, 9  ;;  %v4528_v14 = vrot.slane %v4517_v40, %v11126_v16  ;;  %v8496_v32 = vld [vmem:[%s11092_s10 + $0x164] ss:$8 sps:$4 sm:$0xff]   ;;  %v8494_v25 = vld [vmem:[%s11092_s10 + $0x160] ss:$8 sps:$4 sm:$0xff]  }
 0x3cd   : > { %v4629_v10 = vshrl.u32 %v4583_v48, 16  ;;  %v8499_v40 = vld [vmem:[%s11092_s10 + $0x1b4] ss:$8 sps:$4 sm:$0xff]  }
 0x3ce   : > { %v4532_v49 = vrot.slane %v4518_v61, %v11126_v16  ;;  %v7547_v35 = vrot.slane %v4500_v37, 9  ;;  %v4519_v26 = vmax.f32 %v4499_v54, %v7546_v39  ;;  %v8502_v54 = vld [vmem:[%s11092_s10 + $0x154] ss:$8 sps:$4 sm:$0xff]   ;;  %v8497_v61 = vld [vmem:[%s11092_s10 + $0x1b0] ss:$8 sps:$4 sm:$0xff]  }
 0x3cf   : > { %v10275_v63 = vsel %vm10253_vm8, %v4629_v10, %v4634_v17  ;;  %v8505_v39 = vld [vmem:[%s11092_s10 + $0x1a4] ss:$8 sps:$4 sm:$0xff]   ;;  %v8524_v10 = vld [vmem:[%s11092_s10 + $0x110] ss:$8 sps:$4 sm:$0xff]  }
 0x3d0   : > { %v4520_v57 = vmax.f32 %v4500_v37, %v7547_v35  ;;  %v4541_v11 = vsel %vm1940_vm6, %v4532_v49, %v4528_v14  ;;  %v4536_v50 = vrot.slane %v4519_v26, %v11126_v16  ;;  %v8500_v37 = vld [vmem:[%s11092_s10 + $0x150] ss:$8 sps:$4 sm:$0xff]   ;;  %v8503_v14 = vld [vmem:[%s11092_s10 + $0x1a0] ss:$8 sps:$4 sm:$0xff]   ;;  %v8511_v35 = vld [vmem:[%s11092_s10 + $0x194] ss:$8 sps:$4 sm:$0xff]  }
 0x3d1   : > { %v4545_v24 = vsel %vm2010_vm12, 0.0, %v4541_v11  ;;  %v8506_v49 = vld [vmem:[%s11092_s10 + $0x140] ss:$8 sps:$4 sm:$0xff]   ;;  %v8514_v26 = vld [vmem:[%s11092_s10 + $0x134] ss:$8 sps:$4 sm:$0xff]  }
 0x3d2   : > { %v4540_v46 = vrot.slane %v4520_v57, %v11126_v16  ;;  %v10236_v8 = vsel %vm2395_vm14, %v4545_v24, 0.0  ;;  %v8509_v57 = vld [vmem:[%s11092_s10 + $0x190] ss:$8 sps:$4 sm:$0xff]   ;;  %v8517_v24 = vld [vmem:[%s11092_s10 + $0x184] ss:$8 sps:$4 sm:$0xff]  }
 0x3d3   : > { %v4550_v52 = vpack.c.bf16 %v10236_v8, %v10236_v8  ;;  %v8512_v11 = vld [vmem:[%s11092_s10 + $0x130] ss:$8 sps:$4 sm:$0xff]   ;;  %v8529_v17 = vld [vmem:[%s11092_s10 + $0x2e4] ss:$8 sps:$4 sm:$0xff]  }
 0x3d4   : > { %v4542_v12 = vsel %vm1940_vm6, %v4540_v46, %v4536_v50  ;;  %v8520_v50 = vld [vmem:[%s11092_s10 + $0x124] ss:$8 sps:$4 sm:$0xff]   ;;  %v8515_v46 = vld [vmem:[%s11092_s10 + $0x180] ss:$8 sps:$4 sm:$0xff]  }
 0x3d5   : > { %v4597_v22 = vrot.slane %v4550_v52, %v10222_v38  ;;  %v4800_v13 = vcombine.low %v11120_v29, %v4550_v52  ;;  %v4546_v33 = vsel %vm2010_vm12, 0.0, %v4542_v12  ;;  %v8518_v52 = vld [vmem:[%s11092_s10 + $0x120] ss:$8 sps:$4 sm:$0xff]  }
 0x3d6   : > { %v10249_v0 = vsel %vm2395_vm14, %v4546_v33, 0.0 }
 0x3d7   : > { %v4598_v23 = vcombine.high %v4597_v22, %v4597_v22  ;;  %v4807_v56 = vrot.slane %v4800_v13, %v10222_v38  ;;  %v4605_v21 = vrot.slane %v4597_v22, %v10222_v38  ;;  %v10259_v2 = vpack.c.bf16 %v10249_v0, %v10249_v0  ;;  %v8526_v22 = vld [vmem:[%s11092_s10 + $0x114] ss:$8 sps:$4 sm:$0xff]   ;;  %v8521_v13 = vld [vmem:[%s11092_s10 + $0x2f0] ss:$8 sps:$4 sm:$0xff]  }
 0x3d8   : > { %v7646_v48 = vpack.c.bf16 %v10249_v0, %v10236_v8  ;;  %v8523_v8 = vld [vmem:[%s11092_s10 + $0x2f4] ss:$8 sps:$4 sm:$0xff]   ;;  %v8532_v0 = vld [vmem:[%s11092_s10 + $0x104] ss:$8 sps:$4 sm:$0xff]  }
 0x3d9   : > { %v10265_v4 = vrot.slane %v4598_v23, %v10222_v38  ;;  %v4814_v53 = vrot.slane %v4807_v56, %v10222_v38  ;;  %v5256_v15 = vrot.slane %v10259_v2, %v10222_v38  ;;  %v4638_v7 = vshrl.u32 %v4605_v21, 16  ;;  %v8527_v56 = vld [vmem:[%s11092_s10 + $0x2e0] ss:$8 sps:$4 sm:$0xff]  }
 0x3da   : > { %v5118_v12 = vrot.slane %v7646_v48, %v10222_v38  ;;  %v8530_v21 = vld [vmem:[%s11092_s10 + $0x100] ss:$8 sps:$4 sm:$0xff]  }
 0x3db   : > { %4929 = vmatmul.mubr.bf16.vlgmr.msra.gmra.mxu1 %v4814_v53  ;;  %v4643_v55 = vshll.u32 %v10265_v4, 16  ;;  %v5257_v58 = vcombine.high %v5256_v15, %v5256_v15  ;;  %v5264_v1 = vrot.slane %v5256_v15, %v10222_v38  ;;  %v4954_v23 = vcombine.low %v10239_v44, %v10265_v4  ;;  %v8538_v53 = vld [vmem:[%s11092_s10 + $0x274] ss:$8 sps:$4 sm:$0xff]   ;;  %v8536_v15 = vld [vmem:[%s11092_s10 + $0x270] ss:$8 sps:$4 sm:$0xff]  }
 0x3dc   : > { %5208 = vmatpush1.bf16.msra.mxu1 %v8473_v45  ;;  %5239 = vmatprep.mubr.bf16.mxu1 %v8853_v59  ;;  %v5125_v33 = vrot.slane %v5118_v12, %v10222_v38  ;;  %v8578_v48 = vld [vmem:[%s11092_s10 + $0x200] ss:$8 sps:$4 sm:$0xff]   ;;  %v8581_v12 = vld [vmem:[%s11092_s10 + $0x3d0] ss:$8 sps:$4 sm:$0xff]  }
 0x3dd   : > { %5209 = vmatprep.subr.bf16.mxu1 %v8481_v19  ;;  %v10288_v5 = vsel %vm10253_vm8, %v4638_v7, %v4643_v55  ;;  %v10291_v30 = vrot.slane %v5257_v58, %v10222_v38  ;;  %v5273_v34 = vshrl.u32 %v5264_v1, 16  ;;  %v4961_v45 = vrot.slane %v4954_v23, %v10222_v38  ;;  %v8533_v19 = vld [vmem:[%s11092_s10 + $0x2d0] ss:$8 sps:$4 sm:$0xff]   ;;  %v8541_v7 = vld [vmem:[%s11092_s10 + $0x2c4] ss:$8 sps:$4 sm:$0xff]  }
 0x3de   : > { %v4663_v60 = vcombine.low %v10275_v63, %v10288_v5  ;;  %v8544_v58 = vld [vmem:[%s11092_s10 + $0x264] ss:$8 sps:$4 sm:$0xff]   ;;  %v8539_v1 = vld [vmem:[%s11092_s10 + $0x2c0] ss:$8 sps:$4 sm:$0xff]   ;;  %v8596_v23 = vld [vmem:[%s11092_s10 + $0x350] ss:$8 sps:$4 sm:$0xff]  }
 0x3df   : > { %v5278_v62 = vshll.u32 %v10291_v30, 16  ;;  %v4968_v55 = vrot.slane %v4961_v45, %v10222_v38  ;;  %v8602_v45 = vld [vmem:[%s11092_s10 + $0x340] ss:$8 sps:$4 sm:$0xff]  }
 0x3e0   : > { %5210 = vmatpush1.bf16.msra.mxu1 %v8479_v6  ;;  %v4670_v27 = vrot.slane %v4663_v60, %v10222_v38  ;;  %v8542_v6 = vld [vmem:[%s11092_s10 + $0x260] ss:$8 sps:$4 sm:$0xff]   ;;  %v8550_v60 = vld [vmem:[%s11092_s10 + $0x254] ss:$8 sps:$4 sm:$0xff]  }
 0x3e1   : > { %5211 = vmatprep.subr.bf16.mxu1 %v8487_v18  ;;  %v10308_v28 = vsel %vm10253_vm8, %v5273_v34, %v5278_v62  ;;  %v8547_v18 = vld [vmem:[%s11092_s10 + $0x2b4] ss:$8 sps:$4 sm:$0xff]   ;;  %v8545_v34 = vld [vmem:[%s11092_s10 + $0x2b0] ss:$8 sps:$4 sm:$0xff]  }
 0x3e2   : > { %v4677_v43 = vrot.slane %v4670_v27, %v10222_v38  ;;  %v5298_v41 = vcombine.low %v10288_v5, %v10308_v28  ;;  %v5766_v42 = vcombine.low %v10308_v28, %v10275_v63  ;;  %v8548_v62 = vld [vmem:[%s11092_s10 + $0x250] ss:$8 sps:$4 sm:$0xff]   ;;  %v8556_v27 = vld [vmem:[%s11092_s10 + $0x244] ss:$8 sps:$4 sm:$0xff]   ;;  %v5610_v63 = vcombine.low %v10259_v2, %v11120_v29  ;;  %v8620_v28 = vld [vmem:[%s11092_s10 + $0x300] ss:$8 sps:$4 sm:$0xff]  }
 0x3e3   : > { %v8589_v5 = vld [vmem:[%s11092_s10 + $0x3c4] ss:$8 sps:$4 sm:$0xff]  }
 0x3e4   : > { %5212 = vmatpush1.bf16.msra.mxu1 %v8485_v9  ;;  %4792 = vmatmul.mubr.bf16.vlgmr.msra.gmra.mxu0 %v4677_v43  ;;  %v8553_v9 = vld [vmem:[%s11092_s10 + $0x2a4] ss:$8 sps:$4 sm:$0xff]   ;;  %v8559_v43 = vld [vmem:[%s11092_s10 + $0x294] ss:$8 sps:$4 sm:$0xff]  }
 0x3e5   : > { %5051 = vmatpush1.bf16.msra.mxu0 %v8488_v31  ;;  %5213 = vmatprep.subr.bf16.mxu1 %v8493_v47  ;;  %v8551_v31 = vld [vmem:[%s11092_s10 + $0x2a0] ss:$8 sps:$4 sm:$0xff]   ;;  %v8628_v2 = vld [vmem:[%s11092_s10 + $0x464] ss:$8 sps:$4 sm:$0xff]  }
 0x3e6   : > { %5052 = vmatprep.subr.bf16.mxu0 %v8496_v32  ;;  %5082 = vmatprep.mubr.bf16.mxu0 %v8853_v59  ;;  %v8554_v47 = vld [vmem:[%s11092_s10 + $0x240] ss:$8 sps:$4 sm:$0xff]   ;;  %v8562_v32 = vld [vmem:[%s11092_s10 + $0x234] ss:$8 sps:$4 sm:$0xff]  }
 0x3e8   : > { %5214 = vmatpush1.bf16.msra.mxu1 %v8491_v3  ;;  %v8557_v3 = vld [vmem:[%s11092_s10 + $0x290] ss:$8 sps:$4 sm:$0xff]  }
 0x3e9   : > { %5053 = vmatpush1.bf16.msra.mxu0 %v8494_v25  ;;  %5215 = vmatprep.subr.bf16.mxu1 %v8499_v40  ;;  %v8560_v25 = vld [vmem:[%s11092_s10 + $0x230] ss:$8 sps:$4 sm:$0xff]   ;;  %v8565_v40 = vld [vmem:[%s11092_s10 + $0x284] ss:$8 sps:$4 sm:$0xff]  }
 0x3ea   : > { %5054 = vmatprep.subr.bf16.mxu0 %v8502_v54  ;;  %v5454_v54 = vcombine.low %v10265_v4, %v10291_v30  ;;  %v8571_v4 = vld [vmem:[%s11092_s10 + $0x3f4] ss:$8 sps:$4 sm:$0xff]  }
 0x3ec   : > { %5216 = vmatpush1.bf16.msra.mxu1 %v8497_v61  ;;  %v8568_v61 = vld [vmem:[%s11092_s10 + $0x224] ss:$8 sps:$4 sm:$0xff]  }
 0x3ed   : > { %5055 = vmatpush1.bf16.msra.mxu0 %v8500_v37  ;;  %5217 = vmatprep.subr.bf16.mxu1 %v8505_v39  ;;  %v8563_v37 = vld [vmem:[%s11092_s10 + $0x280] ss:$8 sps:$4 sm:$0xff]  }
 0x3ee   : > { %5056 = vmatprep.subr.bf16.mxu0 %v8508_v20  ;;  %v8566_v39 = vld [vmem:[%s11092_s10 + $0x220] ss:$8 sps:$4 sm:$0xff]   ;;  %v5461_v20 = vrot.slane %v5454_v54, %v10222_v38  ;;  %v8640_v54 = vld [vmem:[%s11092_s10 + $0x424] ss:$8 sps:$4 sm:$0xff]  }
 0x3f0   : > { %5218 = vmatpush1.bf16.msra.mxu1 %v8503_v14  ;;  %v8574_v14 = vld [vmem:[%s11092_s10 + $0x214] ss:$8 sps:$4 sm:$0xff]  }
 0x3f1   : > { %5057 = vmatpush1.bf16.msra.mxu0 %v8506_v49  ;;  %5219 = vmatprep.subr.bf16.mxu1 %v8511_v35  ;;  %v8569_v49 = vld [vmem:[%s11092_s10 + $0x3f0] ss:$8 sps:$4 sm:$0xff]   ;;  %v5468_v35 = vrot.slane %v5461_v20, %v10222_v38  ;;  %v8646_v20 = vld [vmem:[%s11092_s10 + $0x404] ss:$8 sps:$4 sm:$0xff]  }
 0x3f2   : > { %5058 = vmatprep.subr.bf16.mxu0 %v8514_v26  ;;  %v8572_v26 = vld [vmem:[%s11092_s10 + $0x210] ss:$8 sps:$4 sm:$0xff]  }
 0x3f4   : > { %5220 = vmatpush1.bf16.msra.mxu1 %v8509_v57  ;;  %v8577_v57 = vld [vmem:[%s11092_s10 + $0x3e4] ss:$8 sps:$4 sm:$0xff]  }
 0x3f5   : > { %5059 = vmatpush1.bf16.msra.mxu0 %v8512_v11  ;;  %5221 = vmatprep.subr.bf16.mxu1 %v8517_v24  ;;  %v8580_v11 = vld [vmem:[%s11092_s10 + $0x204] ss:$8 sps:$4 sm:$0xff]   ;;  %v8575_v24 = vld [vmem:[%s11092_s10 + $0x3e0] ss:$8 sps:$4 sm:$0xff]  }
 0x3f6   : > { %5060 = vmatprep.subr.bf16.mxu0 %v8520_v50  ;;  %v8583_v50 = vld [vmem:[%s11092_s10 + $0x3d4] ss:$8 sps:$4 sm:$0xff]  }
 0x3f8   : > { %5222 = vmatpush1.bf16.msra.mxu1 %v8515_v46  ;;  %v5305_v46 = vrot.slane %v5298_v41, %v10222_v38 }
 0x3f9   : > { %5061 = vmatpush1.bf16.msra.mxu0 %v8518_v52  ;;  %5550 = vmatprep.subr.bf16.mxu1 %v8523_v8  ;;  %v8586_v52 = vld [vmem:[%s11092_s10 + $0x374] ss:$8 sps:$4 sm:$0xff]   ;;  %v8584_v8 = vld [vmem:[%s11092_s10 + $0x370] ss:$8 sps:$4 sm:$0xff]  }
 0x3fa   : > { %5062 = vmatprep.subr.bf16.mxu0 %v8526_v22  ;;  %v5312_v41 = vrot.slane %v5305_v46, %v10222_v38  ;;  %v8592_v22 = vld [vmem:[%s11092_s10 + $0x364] ss:$8 sps:$4 sm:$0xff]   ;;  %v8659_v46 = vld [vmem:[%s11095_s13 + $0xa0] ss:$16 sps:$4 sm:$0xff]  }
 0x3fb   : > { %5240 = vmatmul.mubr.bf16.vlgmr.msra.gmra.mxu1 %v5125_v33  ;;  %v8590_v33 = vld [vmem:[%s11092_s10 + $0x360] ss:$8 sps:$4 sm:$0xff]  }
 0x3fc   : > { %5551 = vmatpush1.bf16.msra.mxu1 %v8521_v13  ;;  %5582 = vmatprep.mubr.bf16.mxu1 %v8853_v59  ;;  %v8587_v13 = vld [vmem:[%s11092_s10 + $0x3c0] ss:$8 sps:$4 sm:$0xff]  }
 0x3fd   : > { %5063 = vmatpush1.bf16.msra.mxu0 %v8524_v10  ;;  %5552 = vmatprep.subr.bf16.mxu1 %v8529_v17  ;;  %v8595_v10 = vld [vmem:[%s11092_s10 + $0x3b4] ss:$8 sps:$4 sm:$0xff]  }
 0x3fe   : > { %5064 = vmatprep.subr.bf16.mxu0 %v8532_v0  ;;  %v8598_v17 = vld [vmem:[%s11092_s10 + $0x354] ss:$8 sps:$4 sm:$0xff]   ;;  %v8593_v0 = vld [vmem:[%s11092_s10 + $0x3b0] ss:$8 sps:$4 sm:$0xff]  }
 0x400   : > { %5553 = vmatpush1.bf16.msra.mxu1 %v8527_v56  ;;  %v8601_v56 = vld [vmem:[%s11092_s10 + $0x3a4] ss:$8 sps:$4 sm:$0xff]  }
 0x401   : > { %5065 = vmatpush1.bf16.msra.mxu0 %v8530_v21  ;;  %5554 = vmatprep.subr.bf16.mxu1 %v8535_v51  ;;  %v8604_v21 = vld [vmem:[%s11092_s10 + $0x344] ss:$8 sps:$4 sm:$0xff]   ;;  %v8599_v51 = vld [vmem:[%s11092_s10 + $0x3a0] ss:$8 sps:$4 sm:$0xff]  }
 0x402   : > { %5394 = vmatprep.subr.bf16.mxu0 %v8538_v53  ;;  %v8607_v53 = vld [vmem:[%s11092_s10 + $0x394] ss:$8 sps:$4 sm:$0xff]  }
 0x404   : > { %5083 = vmatmul.mubr.bf16.vlgmr.msra.gmra.mxu0 %v4968_v55  ;;  %5555 = vmatpush1.bf16.msra.mxu1 %v8533_v19  ;;  %v8610_v19 = vld [vmem:[%s11092_s10 + $0x334] ss:$8 sps:$4 sm:$0xff]   ;;  %v8613_v55 = vld [vmem:[%s11092_s10 + $0x384] ss:$8 sps:$4 sm:$0xff]  }
 0x405   : > { %5395 = vmatpush1.bf16.msra.mxu0 %v8536_v15  ;;  %5556 = vmatprep.subr.bf16.mxu1 %v8541_v7  ;;  %v8605_v15 = vld [vmem:[%s11092_s10 + $0x390] ss:$8 sps:$4 sm:$0xff]  }
 0x406   : > { %5396 = vmatprep.subr.bf16.mxu0 %v8544_v58  ;;  %5426 = vmatprep.mubr.bf16.mxu0 %v8853_v59  ;;  %v8608_v7 = vld [vmem:[%s11092_s10 + $0x330] ss:$8 sps:$4 sm:$0xff]   ;;  %v8616_v58 = vld [vmem:[%s11092_s10 + $0x324] ss:$8 sps:$4 sm:$0xff]  }
 0x408   : > { %5557 = vmatpush1.bf16.msra.mxu1 %v8539_v1  ;;  %v8611_v1 = vld [vmem:[%s11092_s10 + $0x380] ss:$8 sps:$4 sm:$0xff]  }
 0x409   : > { %5397 = vmatpush1.bf16.msra.mxu0 %v8542_v6  ;;  %5558 = vmatprep.subr.bf16.mxu1 %v8547_v18  ;;  %v8614_v6 = vld [vmem:[%s11092_s10 + $0x320] ss:$8 sps:$4 sm:$0xff]   ;;  %v5773_v18 = vrot.slane %v5766_v42, %v10222_v38  ;;  %v5617_v42 = vrot.slane %v5610_v63, %v10222_v38 }
 0x40a   : > { %5398 = vmatprep.subr.bf16.mxu0 %v8550_v60  ;;  %v8619_v60 = vld [vmem:[%s11092_s10 + $0x314] ss:$8 sps:$4 sm:$0xff]  }
 0x40b   : > { %v5624_v29 = vrot.slane %v5617_v42, %v10222_v38 }
 0x40c   : > { %5559 = vmatpush1.bf16.msra.mxu1 %v8545_v34  ;;  %v5780_v34 = vrot.slane %v5773_v18, %v10222_v38  ;;  %v8692_v18 = vld [vmem:[%s11095_s13 + $0x8] ss:$16 sps:$4 sm:$0xff]  }
 0x40d   : > { %5399 = vmatpush1.bf16.msra.mxu0 %v8548_v62  ;;  %5560 = vmatprep.subr.bf16.mxu1 %v8553_v9  ;;  %v8617_v62 = vld [vmem:[%s11092_s10 + $0x310] ss:$8 sps:$4 sm:$0xff]   ;;  %v8622_v9 = vld [vmem:[%s11092_s10 + $0x304] ss:$8 sps:$4 sm:$0xff]  }
 0x40e   : > { %5400 = vmatprep.subr.bf16.mxu0 %v8556_v27  ;;  %v8625_v27 = vld [vmem:[%s11092_s10 + $0x474] ss:$8 sps:$4 sm:$0xff]  }
 0x410   : > { %5561 = vmatpush1.bf16.msra.mxu1 %v8551_v31  ;;  %v8623_v31 = vld [vmem:[%s11092_s10 + $0x470] ss:$8 sps:$4 sm:$0xff]  }
 0x411   : > { %5401 = vmatpush1.bf16.msra.mxu0 %v8554_v47  ;;  %5562 = vmatprep.subr.bf16.mxu1 %v8559_v43  ;;  %v8626_v47 = vld [vmem:[%s11092_s10 + $0x460] ss:$8 sps:$4 sm:$0xff]   ;;  %v8631_v43 = vld [vmem:[%s11092_s10 + $0x454] ss:$8 sps:$4 sm:$0xff]  }
 0x412   : > { %5402 = vmatprep.subr.bf16.mxu0 %v8562_v32  ;;  %v8629_v32 = vld [vmem:[%s11092_s10 + $0x450] ss:$8 sps:$4 sm:$0xff]  }
 0x414   : > { %5563 = vmatpush1.bf16.msra.mxu1 %v8557_v3  ;;  %v8634_v3 = vld [vmem:[%s11092_s10 + $0x444] ss:$8 sps:$4 sm:$0xff]  }
 0x415   : > { %5403 = vmatpush1.bf16.msra.mxu0 %v8560_v25  ;;  %5564 = vmatprep.subr.bf16.mxu1 %v8565_v40  ;;  %v8637_v25 = vld [vmem:[%s11092_s10 + $0x434] ss:$8 sps:$4 sm:$0xff]   ;;  %v8635_v40 = vld [vmem:[%s11092_s10 + $0x430] ss:$8 sps:$4 sm:$0xff]  }
 0x416   : > { %5404 = vmatprep.subr.bf16.mxu0 %v8568_v61  ;;  %v8638_v61 = vld [vmem:[%s11092_s10 + $0x420] ss:$8 sps:$4 sm:$0xff]  }
 0x418   : > { %5565 = vmatpush1.bf16.msra.mxu1 %v8563_v37  ;;  %v8643_v37 = vld [vmem:[%s11092_s10 + $0x414] ss:$8 sps:$4 sm:$0xff]  }
 0x419   : > { %5405 = vmatpush1.bf16.msra.mxu0 %v8566_v39  ;;  %5862 = vmatprep.subr.bf16.mxu1 %v8571_v4  ;;  %v8641_v39 = vld [vmem:[%s11092_s10 + $0x410] ss:$8 sps:$4 sm:$0xff]   ;;  %v5922_v4 = vcombine.low %v10291_v30, %v10239_v44  ;;  %v8649_v44 = vld [vmem:[%s11095_s13 + $0xe4] ss:$16 sps:$4 sm:$0xff]  }
 0x41a   : > { %5406 = vmatprep.subr.bf16.mxu0 %v8574_v14  ;;  %v8644_v14 = vld [vmem:[%s11092_s10 + $0x400] ss:$8 sps:$4 sm:$0xff]  }
 0x41b   : > { %5583 = vmatmul.mubr.bf16.vlgmr.msra.gmra.mxu1 %v5468_v35  ;;  %v8650_v30 = vld [vmem:[%s11095_s13 + $0xe8] ss:$16 sps:$4 sm:$0xff]  }
 0x41c   : > { %5863 = vmatpush1.bf16.msra.mxu1 %v8569_v49  ;;  %5894 = vmatprep.mubr.bf16.mxu1 %v8853_v59  ;;  %v5929_v49 = vrot.slane %v5922_v4, %v10222_v38  ;;  %v8713_v4 = vld [vmem:[%s11095_s13 + $0x180] ss:$16 sps:$4 sm:$0xff]  }
 0x41d   : > { %5407 = vmatpush1.bf16.msra.mxu0 %v8572_v26  ;;  %5864 = vmatprep.subr.bf16.mxu1 %v8577_v57  ;;  %v8647_v26 = vld [vmem:[%s11095_s13 + $0xe0] ss:$16 sps:$4 sm:$0xff]   ;;  %v8652_v57 = vld [vmem:[%s11095_s13 + $0xec] ss:$16 sps:$4 sm:$0xff]  }
 0x41e   : > { %5408 = vmatprep.subr.bf16.mxu0 %v8580_v11  ;;  %v5936_v35 = vrot.slane %v5929_v49, %v10222_v38  ;;  %v8653_v11 = vld [vmem:[%s11095_s13 + $0xc0] ss:$16 sps:$4 sm:$0xff]   ;;  %v8721_v49 = vld [vmem:[%s11095_s13 + $0x164] ss:$16 sps:$4 sm:$0xff]  }
 0x420   : > { %5865 = vmatpush1.bf16.msra.mxu1 %v8575_v24  ;;  %v8655_v24 = vld [vmem:[%s11095_s13 + $0xc4] ss:$16 sps:$4 sm:$0xff]  }
 0x421   : > { %5409 = vmatpush1.bf16.msra.mxu0 %v8578_v48  ;;  %5866 = vmatprep.subr.bf16.mxu1 %v8583_v50  ;;  %v8656_v48 = vld [vmem:[%s11095_s13 + $0xc8] ss:$16 sps:$4 sm:$0xff]   ;;  %v8658_v50 = vld [vmem:[%s11095_s13 + $0xcc] ss:$16 sps:$4 sm:$0xff]  }
 0x422   : > { %5706 = vmatprep.subr.bf16.mxu0 %v8586_v52  ;;  %v8661_v52 = vld [vmem:[%s11095_s13 + $0xa4] ss:$16 sps:$4 sm:$0xff]  }
 0x424   : > { %5427 = vmatmul.mubr.bf16.vlgmr.msra.gmra.mxu0 %v5312_v41  ;;  %5867 = vmatpush1.bf16.msra.mxu1 %v8581_v12  ;;  %v8662_v12 = vld [vmem:[%s11095_s13 + $0xa8] ss:$16 sps:$4 sm:$0xff]   ;;  %v8670_v41 = vld [vmem:[%s11095_s13 + $0x8c] ss:$16 sps:$4 sm:$0xff]  }
 0x425   : > { %5707 = vmatpush1.bf16.msra.mxu0 %v8584_v8  ;;  %5868 = vmatprep.subr.bf16.mxu1 %v8589_v5  ;;  %v8664_v8 = vld [vmem:[%s11095_s13 + $0xac] ss:$16 sps:$4 sm:$0xff]   ;;  %v8667_v5 = vld [vmem:[%s11095_s13 + $0x84] ss:$16 sps:$4 sm:$0xff]  }
 0x426   : > { %5708 = vmatprep.subr.bf16.mxu0 %v8592_v22  ;;  %5738 = vmatprep.mubr.bf16.mxu0 %v8853_v59  ;;  %v8665_v22 = vld [vmem:[%s11095_s13 + $0x80] ss:$16 sps:$4 sm:$0xff]  }
 0x428   : > { %5869 = vmatpush1.bf16.msra.mxu1 %v8587_v13  ;;  %v8668_v13 = vld [vmem:[%s11095_s13 + $0x88] ss:$16 sps:$4 sm:$0xff]  }
 0x429   : > { %5709 = vmatpush1.bf16.msra.mxu0 %v8590_v33  ;;  %5870 = vmatprep.subr.bf16.mxu1 %v8595_v10  ;;  %v8673_v33 = vld [vmem:[%s11095_s13 + $0x64] ss:$16 sps:$4 sm:$0xff]   ;;  %v8676_v10 = vld [vmem:[%s11095_s13 + $0x6c] ss:$16 sps:$4 sm:$0xff]  }
 0x42a   : > { %5710 = vmatprep.subr.bf16.mxu0 %v8598_v17  ;;  %v8671_v17 = vld [vmem:[%s11095_s13 + $0x60] ss:$16 sps:$4 sm:$0xff]  }
 0x42c   : > { %5871 = vmatpush1.bf16.msra.mxu1 %v8593_v0  ;;  %v8674_v0 = vld [vmem:[%s11095_s13 + $0x68] ss:$16 sps:$4 sm:$0xff]  }
 0x42d   : > { %5711 = vmatpush1.bf16.msra.mxu0 %v8596_v23  ;;  %5872 = vmatprep.subr.bf16.mxu1 %v8601_v56  ;;  %v8679_v23 = vld [vmem:[%s11095_s13 + $0x44] ss:$16 sps:$4 sm:$0xff]   ;;  %v8682_v56 = vld [vmem:[%s11095_s13 + $0x4c] ss:$16 sps:$4 sm:$0xff]  }
 0x42e   : > { %5712 = vmatprep.subr.bf16.mxu0 %v8604_v21  ;;  %v8677_v21 = vld [vmem:[%s11095_s13 + $0x40] ss:$16 sps:$4 sm:$0xff]  }
 0x430   : > { %5873 = vmatpush1.bf16.msra.mxu1 %v8599_v51  ;;  %v8680_v51 = vld [vmem:[%s11095_s13 + $0x48] ss:$16 sps:$4 sm:$0xff]  }
 0x431   : > { %5713 = vmatpush1.bf16.msra.mxu0 %v8602_v45  ;;  %5874 = vmatprep.subr.bf16.mxu1 %v8607_v53  ;;  %v8685_v45 = vld [vmem:[%s11095_s13 + $0x24] ss:$16 sps:$4 sm:$0xff]   ;;  %v8688_v53 = vld [vmem:[%s11095_s13 + $0x2c] ss:$16 sps:$4 sm:$0xff]  }
 0x432   : > { %5714 = vmatprep.subr.bf16.mxu0 %v8610_v19  ;;  %v8683_v19 = vld [vmem:[%s11095_s13 + $0x20] ss:$16 sps:$4 sm:$0xff]  }
 0x434   : > { %5875 = vmatpush1.bf16.msra.mxu1 %v8605_v15  ;;  %v8686_v15 = vld [vmem:[%s11095_s13 + $0x28] ss:$16 sps:$4 sm:$0xff]  }
 0x435   : > { %5715 = vmatpush1.bf16.msra.mxu0 %v8608_v7  ;;  %5876 = vmatprep.subr.bf16.mxu1 %v8613_v55  ;;  %v8691_v7 = vld [vmem:[%s11095_s13 + $0x4] ss:$16 sps:$4 sm:$0xff]   ;;  %v8694_v55 = vld [vmem:[%s11095_s13 + $0xc] ss:$16 sps:$4 sm:$0xff]  }
 0x436   : > { %5716 = vmatprep.subr.bf16.mxu0 %v8616_v58 }
 0x438   : > { %5877 = vmatpush1.bf16.msra.mxu1 %v8611_v1  ;;  %v8689_v1 = vld [vmem:[%s11095_s13] ss:$16 sps:$4 sm:$0xff]  }
 0x439   : > { %5717 = vmatpush1.bf16.msra.mxu0 %v8614_v6  ;;  %6516 = vmatprep.subr.bf16.mxu1 %v8649_v44 }
 0x43a   : > { %5718 = vmatprep.subr.bf16.mxu0 %v8619_v60  ;;  %v8697_v60 = vld [vmem:[%s11095_s13 + $0x1e4] ss:$16 sps:$4 sm:$0xff]  }
 0x43b   : > { %5895 = vmatmul.mubr.bf16.vlgmr.msra.gmra.mxu1 %v5780_v34  ;;  %v8700_v34 = vld [vmem:[%s11095_s13 + $0x1ec] ss:$16 sps:$4 sm:$0xff]  }
 0x43c   : > { %6517 = vmatpush1.bf16.msra.mxu1 %v8647_v26  ;;  %v8724_v26 = vld [vmem:[%s11095_s13 + $0x16c] ss:$16 sps:$4 sm:$0xff]  }
 0x43d   : > { %5719 = vmatpush1.bf16.msra.mxu0 %v8617_v62  ;;  %6518 = vmatprep.subr.bf16.mxu1 %v8655_v24 }
 0x43e   : > { %5720 = vmatprep.subr.bf16.mxu0 %v8622_v9  ;;  %v8695_v9 = vld [vmem:[%s11095_s13 + $0x1e0] ss:$16 sps:$4 sm:$0xff]  }
 0x440   : > { %6519 = vmatpush1.bf16.msra.mxu1 %v8653_v11  ;;  %v8727_v11 = vld [vmem:[%s11095_s13 + $0x144] ss:$16 sps:$4 sm:$0xff]  }
 0x441   : > { %5721 = vmatpush1.bf16.msra.mxu0 %v8620_v28  ;;  %6520 = vmatprep.subr.bf16.mxu1 %v8661_v52  ;;  %v8698_v28 = vld [vmem:[%s11095_s13 + $0x1e8] ss:$16 sps:$4 sm:$0xff]  }
 0x442   : > { %6018 = vmatprep.subr.bf16.mxu0 %v8625_v27  ;;  %v8728_v52 = vld [vmem:[%s11095_s13 + $0x148] ss:$16 sps:$4 sm:$0xff]  }
 0x444   : > { %5739 = vmatmul.mubr.bf16.vlgmr.msra.gmra.mxu0 %v5624_v29  ;;  %6521 = vmatpush1.bf16.msra.mxu1 %v8659_v46 }
 0x445   : > { %6019 = vmatpush1.bf16.msra.mxu0 %v8623_v31  ;;  %6050 = vmatprep.mubr.bf16.mxu0 %v8853_v59  ;;  %v8632_v59 = vld [vmem:[%s11092_s10 + $0x440] ss:$8 sps:$4 sm:$0xff]  }
 0x446   : > { %6020 = vmatprep.subr.bf16.mxu0 %v8628_v2  ;;  %6522 = vmatprep.subr.bf16.mxu1 %v8667_v5  ;;  %v8736_v5 = vld [vmem:[%s11095_s13 + $0x12c] ss:$16 sps:$4 sm:$0xff]  }
 0x448   : > { %6523 = vmatpush1.bf16.msra.mxu1 %v8665_v22 }
 0x449   : > { %6021 = vmatpush1.bf16.msra.mxu0 %v8626_v47  ;;  %6524 = vmatprep.subr.bf16.mxu1 %v8673_v33  ;;  %v8731_v33 = vld [vmem:[%s11095_s13 + $0x120] ss:$16 sps:$4 sm:$0xff]  }
 0x44a   : > { %6022 = vmatprep.subr.bf16.mxu0 %v8631_v43  ;;  %v8701_v43 = vld [vmem:[%s11095_s13 + $0x1c0] ss:$16 sps:$4 sm:$0xff]  }
 0x44c   : > { %6525 = vmatpush1.bf16.msra.mxu1 %v8671_v17  ;;  %v8734_v17 = vld [vmem:[%s11095_s13 + $0x128] ss:$16 sps:$4 sm:$0xff]  }
 0x44d   : > { %6023 = vmatpush1.bf16.msra.mxu0 %v8629_v32  ;;  %6526 = vmatprep.subr.bf16.mxu1 %v8679_v23  ;;  %v8703_v32 = vld [vmem:[%s11095_s13 + $0x1c4] ss:$16 sps:$4 sm:$0xff]  }
 0x44e   : > { %6024 = vmatprep.subr.bf16.mxu0 %v8634_v3  ;;  %v8704_v3 = vld [vmem:[%s11095_s13 + $0x1c8] ss:$16 sps:$4 sm:$0xff]  }
 0x450   : > { %6527 = vmatpush1.bf16.msra.mxu1 %v8677_v21 }
 0x451   : > { %6025 = vmatpush1.bf16.msra.mxu0 %v8632_v59  ;;  %6528 = vmatprep.subr.bf16.mxu1 %v8685_v45  ;;  %v8706_v59 = vld [vmem:[%s11095_s13 + $0x1cc] ss:$16 sps:$4 sm:$0xff]   ;;  %v8740_v45 = vld [vmem:[%s11095_s13 + $0x108] ss:$16 sps:$4 sm:$0xff]  }
 0x452   : > { %6026 = vmatprep.subr.bf16.mxu0 %v8637_v25  ;;  %v8709_v25 = vld [vmem:[%s11095_s13 + $0x1a4] ss:$16 sps:$4 sm:$0xff]  }
 0x454   : > { %6529 = vmatpush1.bf16.msra.mxu1 %v8683_v19  ;;  %v8748_v19 = vld [vmem:[%s11097_s15 + $0x174] ss:$8 sps:$4 sm:$0xff]  }
 0x455   : > { %6027 = vmatpush1.bf16.msra.mxu0 %v8635_v40  ;;  %6530 = vmatprep.subr.bf16.mxu1 %v8691_v7  ;;  %v8712_v40 = vld [vmem:[%s11095_s13 + $0x1ac] ss:$16 sps:$4 sm:$0xff]  }
 0x456   : > { %6028 = vmatprep.subr.bf16.mxu0 %v8640_v54  ;;  %v8707_v54 = vld [vmem:[%s11095_s13 + $0x1a0] ss:$16 sps:$4 sm:$0xff]  }
 0x458   : > { %6531 = vmatpush1.bf16.msra.mxu1 %v8689_v1 }
 0x459   : > { %6029 = vmatpush1.bf16.msra.mxu0 %v8638_v61  ;;  %6532 = vmatprep.subr.bf16.mxu1 %v8697_v60  ;;  %v8710_v61 = vld [vmem:[%s11095_s13 + $0x1a8] ss:$16 sps:$4 sm:$0xff]  }
 0x45a   : > { %6030 = vmatprep.subr.bf16.mxu0 %v8643_v37  ;;  %v8715_v37 = vld [vmem:[%s11095_s13 + $0x184] ss:$16 sps:$4 sm:$0xff]  }
 0x45c   : > { %6533 = vmatpush2.bf16.msra.mxu1 %v8695_v9 }
 0x45d   : > { %6031 = vmatpush1.bf16.msra.mxu0 %v8641_v39  ;;  %6534 = vmatprep.subr.bf16.mxu1 %v8703_v32  ;;  %v8718_v39 = vld [vmem:[%s11095_s13 + $0x18c] ss:$16 sps:$4 sm:$0xff]  }
 0x45e   : > { %6032 = vmatprep.subr.bf16.mxu0 %v8646_v20 }
 0x460   : > { %6535 = vmatpush2.bf16.msra.mxu1 %v8701_v43 }
 0x461   : > { %6033 = vmatpush1.bf16.msra.mxu0 %v8644_v14  ;;  %6536 = vmatprep.subr.bf16.mxu1 %v8709_v25  ;;  %v8716_v14 = vld [vmem:[%s11095_s13 + $0x188] ss:$16 sps:$4 sm:$0xff]   ;;  %v10862_v25 = vsub.s32 1, %v11130_v36 }
 0x462   : > { %6557 = vmatprep.subr.bf16.mxu0 %v8652_v57  ;;  %v8722_v57 = vld [vmem:[%s11095_s13 + $0x168] ss:$16 sps:$4 sm:$0xff]  }
 0x464   : > { %6051 = vmatmul.mubr.bf16.vlgmr.msra.gmra.mxu0 %v5936_v35  ;;  %6537 = vmatpush2.bf16.msra.mxu1 %v8707_v54 }
 0x465   : > { %6558 = vmatpush1.bf16.msra.mxu0 %v8650_v30  ;;  %6538 = vmatprep.subr.bf16.mxu1 %v8715_v37  ;;  %v8719_v30 = vld [vmem:[%s11095_s13 + $0x160] ss:$16 sps:$4 sm:$0xff]  }
 0x466   : > { %6559 = vmatprep.subr.bf16.mxu0 %v8658_v50  ;;  %v8725_v50 = vld [vmem:[%s11095_s13 + $0x140] ss:$16 sps:$4 sm:$0xff]  }
 0x468   : > { %6539 = vmatpush2.bf16.msra.mxu1 %v8713_v4 }
 0x469   : > { %6560 = vmatpush1.bf16.msra.mxu0 %v8656_v48  ;;  %6540 = vmatprep.subr.bf16.mxu1 %v8721_v49  ;;  %v8730_v48 = vld [vmem:[%s11095_s13 + $0x14c] ss:$16 sps:$4 sm:$0xff]  }
 0x46a   : > { %6561 = vmatprep.subr.bf16.mxu0 %v8664_v8 }
 0x46c   : > { %6541 = vmatpush2.bf16.msra.mxu1 %v8719_v30 }
 0x46d   : > { %6562 = vmatpush1.bf16.msra.mxu0 %v8662_v12  ;;  %6542 = vmatprep.subr.bf16.mxu1 %v8727_v11  ;;  %v8733_v12 = vld [vmem:[%s11095_s13 + $0x124] ss:$16 sps:$4 sm:$0xff]  }
 0x46e   : > { %6563 = vmatprep.subr.bf16.mxu0 %v8670_v41 }
 0x470   : > { %6543 = vmatpush2.bf16.msra.mxu1 %v8725_v50 }
 0x471   : > { %6564 = vmatpush1.bf16.msra.mxu0 %v8668_v13  ;;  %6544 = vmatprep.subr.bf16.mxu1 %v8733_v12 }
 0x472   : > { %6565 = vmatprep.subr.bf16.mxu0 %v8676_v10 }
 0x474   : > { %6545 = vmatpush2.bf16.msra.mxu1 %v8731_v33 }
 0x475   : > { %6566 = vmatpush1.bf16.msra.mxu0 %v8674_v0  ;;  %v8739_v0 = vld [vmem:[%s11095_s13 + $0x104] ss:$16 sps:$4 sm:$0xff]  }
 0x476   : > { %6567 = vmatprep.subr.bf16.mxu0 %v8682_v56  ;;  %v8742_v56 = vld [vmem:[%s11095_s13 + $0x10c] ss:$16 sps:$4 sm:$0xff]   ;;  %6546 = vmatprep.subr.bf16.mxu1 %v8739_v0 }
 0x479   : > { %6568 = vmatpush1.bf16.msra.mxu0 %v8680_v51  ;;  %v8737_v51 = vld [vmem:[%s11095_s13 + $0x100] ss:$16 sps:$4 sm:$0xff]  }
 0x47a   : > { %6569 = vmatprep.subr.bf16.mxu0 %v8688_v53  ;;  %v8745_v53 = vld [vmem:[%s11097_s15 + $0x74] ss:$8 sps:$4 sm:$0xff]   ;;  %6547 = vmatpush2.bf16.msra.mxu1 %v8737_v51 }
 0x47b   : > { %7002 = vmatprep.subr.bf16.mxu1 %v8745_v53 }
 0x47d   : > { %6570 = vmatpush1.bf16.msra.mxu0 %v8686_v15 }
 0x47e   : > { %6571 = vmatprep.subr.bf16.mxu0 %v8694_v55 }
 0x481   : > { %6572 = vmatpush1.bf16.msra.mxu0 %v8692_v18 }
 0x482   : > { %6573 = vmatprep.subr.bf16.mxu0 %v8700_v34 }
 0x485   : > { %6574 = vmatpush2.bf16.msra.mxu0 %v8698_v28 }
 0x486   : > { %6575 = vmatprep.subr.bf16.mxu0 %v8706_v59 }
 0x489   : > { %6576 = vmatpush2.bf16.msra.mxu0 %v8704_v3  ;;  %v6061_v3 = vld [vmem:[%s11093_s11] sm:$0x3] }
 0x48a   : > { %6577 = vmatprep.subr.bf16.mxu0 %v8712_v40  ;;  %v6075_v40 = vld [vmem:[%s11094_s12] sm:$0x3] }
 0x48d   : > { %6578 = vmatpush2.bf16.msra.mxu0 %v8710_v61  ;;  %v6066_v61 = vrot.slane %v6061_v3, %v11126_v16 }
 0x48e   : > { %6579 = vmatprep.subr.bf16.mxu0 %v8718_v39 }
 0x491   : > { %6580 = vmatpush2.bf16.msra.mxu0 %v8716_v14  ;;  %v6070_v14 = vrot.slane %v6061_v3, %v10862_v25  ;;  %v8776_v3 = vld [vmem:[%s11097_s15 + $0x120] ss:$8 sps:$4 sm:$0xff]  }
 0x492   : > { %6581 = vmatprep.subr.bf16.mxu0 %v8724_v26 }
 0x495   : > { %6582 = vmatpush2.bf16.msra.mxu0 %v8722_v57 }
 0x496   : > { %6583 = vmatprep.subr.bf16.mxu0 %v8730_v48 }
 0x499   : > { %6584 = vmatpush2.bf16.msra.mxu0 %v8728_v52 }
 0x49a   : > { %6585 = vmatprep.subr.bf16.mxu0 %v8736_v5 }
 0x49b   : > { %v4930_v58 = vpop.f32.mrf.mxu1 }
 0x49d   : > { %v4932_v6 = vpop.f32.mrf.mxu1  ;;  %6586 = vmatpush2.bf16.msra.mxu0 %v8734_v17 }
 0x49e   : > { %6587 = vmatprep.subr.bf16.mxu0 %v8742_v56 }
 0x49f   : > { %v4934_v62 = vpop.f32.mrf.mxu1 }
 0x4a1   : > { %v4935_v63 = vpop.f32.mrf.mxu1  ;;  %6588 = vmatpush2.bf16.msra.mxu0 %v8740_v45 }
 0x4a2   : > { %7043 = vmatprep.subr.bf16.mxu0 %v8748_v19  ;;  %v8743_v19 = vld [vmem:[%s11097_s15 + $0x70] ss:$8 sps:$4 sm:$0xff]  }
 0x4a4   : > { %v4793_v42 = vpop.f32.mrf.mxu0 }
 0x4a5   : > { %v4931_v27 = vadd.f32 %v4930_v58, %v4793_v42 }
 0x4a6   : > { %v4795_v31 = vpop.f32.mrf.mxu0 }
 0x4a7   : > { %v4933_v29 = vadd.f32 %v4932_v6, %v4795_v31 }
 0x4a8   : > { %v4797_v2 = vpop.f32.mrf.mxu0 }
 0x4aa   : > { %v4798_v47 = vpop.f32.mrf.mxu0 }
 0x4bb   : > { %v5241_v20 = vpop.f32.mrf.mxu1 }
 0x4bd   : > { %v5243_v35 = vpop.f32.mrf.mxu1 }
 0x4bf   : > { %v5245_v44 = vpop.f32.mrf.mxu1 }
 0x4c0   : > { %v6084_v44 = vrot.slane %v6075_v40, %v10862_v25 }
 0x4c1   : > { %v5246_v24 = vpop.f32.mrf.mxu1 }
 0x4c4   : > { %v5084_v46 = vpop.f32.mrf.mxu0 }
 0x4c5   : > { %v5091_v8 = vadd.f32 %v5084_v46, %v4931_v27 }
 0x4c6   : > { %v5086_v41 = vpop.f32.mrf.mxu0 }
 0x4c7   : > { %v5092_v22 = vadd.f32 %v5086_v41, %v4933_v29  ;;  %v5248_v13 = vadd.f32 %v5241_v20, %v5091_v8  ;;  %v6080_v20 = vrot.slane %v6075_v40, %v11126_v16  ;;  %v8784_v40 = vld [vmem:[%s11097_s15 + $0x114] ss:$8 sps:$4 sm:$0xff]  }
 0x4c8   : > { %v5088_v10 = vpop.f32.mrf.mxu0 }
 0x4c9   : > { %v5249_v23 = vadd.f32 %v5243_v35, %v5092_v22 }
 0x4ca   : > { %v5089_v21 = vpop.f32.mrf.mxu0 }
 0x4db   : > { %v5584_v15 = vpop.f32.mrf.mxu1 }
 0x4dd   : > { %v5586_v7 = vpop.f32.mrf.mxu1 }
 0x4df   : > { %v5588_v55 = vpop.f32.mrf.mxu1 }
 0x4e0   : > { %v8751_v55 = vld [vmem:[%s11097_s15 + $0x64] ss:$8 sps:$4 sm:$0xff]  }
 0x4e1   : > { %v5589_v58 = vpop.f32.mrf.mxu1 }
 0x4e2   : > { %v8754_v58 = vld [vmem:[%s11097_s15 + $0x164] ss:$8 sps:$4 sm:$0xff]  }
 0x4e4   : > { %v5428_v1 = vpop.f32.mrf.mxu0 }
 0x4e5   : > { %v5435_v6 = vadd.f32 %v5428_v1, %v5248_v13  ;;  %v8749_v1 = vld [vmem:[%s11097_s15 + $0x60] ss:$8 sps:$4 sm:$0xff]  }
 0x4e6   : > { %v5430_v18 = vpop.f32.mrf.mxu0 }
 0x4e7   : > { %v5436_v60 = vadd.f32 %v5430_v18, %v5249_v23  ;;  %v5591_v34 = vadd.f32 %v5584_v15, %v5435_v6  ;;  %v8746_v15 = vld [vmem:[%s11097_s15 + $0x170] ss:$8 sps:$4 sm:$0xff]   ;;  %v8752_v6 = vld [vmem:[%s11097_s15 + $0x160] ss:$8 sps:$4 sm:$0xff]   ;;  %v8757_v18 = vld [vmem:[%s11097_s15 + $0x54] ss:$8 sps:$4 sm:$0xff]  }
 0x4e8   : > { %v5432_v62 = vpop.f32.mrf.mxu0 }
 0x4e9   : > { %v5592_v9 = vadd.f32 %v5586_v7, %v5436_v60  ;;  %v8760_v60 = vld [vmem:[%s11097_s15 + $0x154] ss:$8 sps:$4 sm:$0xff]   ;;  %v8758_v62 = vld [vmem:[%s11097_s15 + $0x150] ss:$8 sps:$4 sm:$0xff]  }
 0x4ea   : > { %v5433_v63 = vpop.f32.mrf.mxu0 }
 0x4eb   : > { %v8766_v63 = vld [vmem:[%s11097_s15 + $0x144] ss:$8 sps:$4 sm:$0xff]  }
 0x4fb   : > { %v5896_v28 = vpop.f32.mrf.mxu1 }
 0x4fd   : > { %v5898_v42 = vpop.f32.mrf.mxu1 }
 0x4ff   : > { %v5900_v27 = vpop.f32.mrf.mxu1 }
 0x500   : > { %v8769_v27 = vld [vmem:[%s11097_s15 + $0x34] ss:$8 sps:$4 sm:$0xff]  }
 0x501   : > { %v5901_v31 = vpop.f32.mrf.mxu1 }
 0x502   : > { %v8772_v31 = vld [vmem:[%s11097_s15 + $0x134] ss:$8 sps:$4 sm:$0xff]  }
 0x504   : > { %v5740_v29 = vpop.f32.mrf.mxu0 }
 0x505   : > { %v5747_v32 = vadd.f32 %v5740_v29, %v5591_v34  ;;  %v8755_v34 = vld [vmem:[%s11097_s15 + $0x50] ss:$8 sps:$4 sm:$0xff]  }
 0x506   : > { %v5742_v2 = vpop.f32.mrf.mxu0  ;;  %v8767_v29 = vld [vmem:[%s11097_s15 + $0x30] ss:$8 sps:$4 sm:$0xff]  }
 0x507   : > { %v5748_v59 = vadd.f32 %v5742_v2, %v5592_v9  ;;  %v5903_v54 = vadd.f32 %v5896_v28, %v5747_v32  ;;  %v8763_v9 = vld [vmem:[%s11097_s15 + $0x44] ss:$8 sps:$4 sm:$0xff]   ;;  %v8761_v28 = vld [vmem:[%s11097_s15 + $0x40] ss:$8 sps:$4 sm:$0xff]   ;;  %v8770_v2 = vld [vmem:[%s11097_s15 + $0x130] ss:$8 sps:$4 sm:$0xff]  }
 0x508   : > { %v5744_v47 = vpop.f32.mrf.mxu0  ;;  %v8773_v32 = vld [vmem:[%s11097_s15 + $0x20] ss:$8 sps:$4 sm:$0xff]  }
 0x509   : > { %v5904_v4 = vadd.f32 %v5898_v42, %v5748_v59  ;;  %v8764_v42 = vld [vmem:[%s11097_s15 + $0x140] ss:$8 sps:$4 sm:$0xff]   ;;  %v8775_v47 = vld [vmem:[%s11097_s15 + $0x24] ss:$8 sps:$4 sm:$0xff]   ;;  %v8781_v59 = vld [vmem:[%s11097_s15 + $0x14] ss:$8 sps:$4 sm:$0xff]  }
 0x50a   : > { %v5745_v43 = vpop.f32.mrf.mxu0 }
 0x50b   : > { %v8778_v43 = vld [vmem:[%s11097_s15 + $0x124] ss:$8 sps:$4 sm:$0xff]  }
 0x524   : > { %v6052_v37 = vpop.f32.mrf.mxu0 }
 0x525   : > { %v6059_v39 = vadd.f32 %v6052_v37, %v5903_v54  ;;  %v8779_v54 = vld [vmem:[%s11097_s15 + $0x10] ss:$8 sps:$4 sm:$0xff]   ;;  %v8787_v37 = vld [vmem:[%s11097_s15 + $0x4] ss:$8 sps:$4 sm:$0xff]  }
 0x526   : > { %v6054_v49 = vpop.f32.mrf.mxu0 }
 0x527   : > { %v6073_v35 = vmul.f32 %v6066_v61, %v6059_v39  ;;  %v6060_v26 = vadd.f32 %v6054_v49, %v5904_v4  ;;  %v8782_v61 = vld [vmem:[%s11097_s15 + $0x110] ss:$8 sps:$4 sm:$0xff]   ;;  %v8790_v39 = vld [vmem:[%s11097_s15 + $0x104] ss:$8 sps:$4 sm:$0xff]   ;;  %v8788_v4 = vld [vmem:[%s11097_s15 + $0x100] ss:$8 sps:$4 sm:$0xff]  }
 0x528   : > { %v6056_v30 = vpop.f32.mrf.mxu0  ;;  %v8796_v49 = vld [vmem:[%s11097_s15 + $0x1f4] ss:$8 sps:$4 sm:$0xff]  }
 0x529   : > { %v6087_v57 = vadd.f32 %v6080_v20, %v6073_v35  ;;  %v6074_v11 = vmul.f32 %v6070_v14, %v6060_v26  ;;  %v8785_v20 = vld [vmem:[%s11097_s15] ss:$8 sps:$4 sm:$0xff]   ;;  %v8793_v14 = vld [vmem:[%s11097_s15 + $0xf4] ss:$8 sps:$4 sm:$0xff]   ;;  %v8791_v35 = vld [vmem:[%s11097_s15 + $0xf0] ss:$8 sps:$4 sm:$0xff]  }
 0x52a   : > { %v6057_v24 = vpop.f32.mrf.mxu0  ;;  %v8794_v26 = vld [vmem:[%s11097_s15 + $0x1f0] ss:$8 sps:$4 sm:$0xff]   ;;  %v8802_v30 = vld [vmem:[%s11097_s15 + $0x1e4] ss:$8 sps:$4 sm:$0xff]  }
 0x52b   : > { %v6089_v48 = vmax.f32 %v6087_v57, 0.0  ;;  %v6088_v50 = vadd.f32 %v6084_v44, %v6074_v11  ;;  %v8799_v44 = vld [vmem:[%s11097_s15 + $0xe4] ss:$8 sps:$4 sm:$0xff]   ;;  %v8797_v57 = vld [vmem:[%s11097_s15 + $0xe0] ss:$8 sps:$4 sm:$0xff]  }
 0x52c   : > { %v8800_v11 = vld [vmem:[%s11097_s15 + $0x1e0] ss:$8 sps:$4 sm:$0xff]   ;;  %v8805_v24 = vld [vmem:[%s11097_s15 + $0xd4] ss:$8 sps:$4 sm:$0xff]  }
 0x52d   : > { %v6091_v46 = vsel %vm718_vm0, %v6089_v48, 0.0  ;;  %v6090_v52 = vmax.f32 %v6088_v50, 0.0  ;;  %v8808_v48 = vld [vmem:[%s11097_s15 + $0x1d4] ss:$8 sps:$4 sm:$0xff]   ;;  %v8803_v50 = vld [vmem:[%s11097_s15 + $0xd0] ss:$8 sps:$4 sm:$0xff]  }
 0x52e   : > { %v6092_v12 = vrot.slane %v6091_v46, 4 }
 0x52f   : > { %v6098_v8 = vsel %vm718_vm0, %v6090_v52, 0.0  ;;  %v8811_v52 = vld [vmem:[%s11097_s15 + $0xc4] ss:$8 sps:$4 sm:$0xff]  }
 0x530   : > { %v6093_v5 = vadd.f32 %v6092_v12, %v6091_v46  ;;  %v6099_v41 = vrot.slane %v6098_v8, 4  ;;  %v8806_v46 = vld [vmem:[%s11097_s15 + $0x1d0] ss:$8 sps:$4 sm:$0xff]   ;;  %v8814_v12 = vld [vmem:[%s11097_s15 + $0x1c4] ss:$8 sps:$4 sm:$0xff]  }
 0x532   : > { %v6094_v22 = vrot.slane %v6093_v5, 2  ;;  %v6100_v13 = vadd.f32 %v6099_v41, %v6098_v8  ;;  %v8809_v8 = vld [vmem:[%s11097_s15 + $0xc0] ss:$8 sps:$4 sm:$0xff]   ;;  %v8817_v41 = vld [vmem:[%s11097_s15 + $0xb4] ss:$8 sps:$4 sm:$0xff]  }
 0x534   : > { %v6095_v33 = vadd.f32 %v6094_v22, %v6093_v5  ;;  %v6101_v10 = vrot.slane %v6100_v13, 2  ;;  %v8812_v5 = vld [vmem:[%s11097_s15 + $0x1c0] ss:$8 sps:$4 sm:$0xff]   ;;  %v8820_v22 = vld [vmem:[%s11097_s15 + $0x1b4] ss:$8 sps:$4 sm:$0xff]  }
 0x536   : > { %v6102_v17 = vadd.f32 %v6101_v10, %v6100_v13  ;;  %v6096_v0 = vrot.slane %v6095_v33, 1  ;;  %v8815_v13 = vld [vmem:[%s11097_s15 + $0xb0] ss:$8 sps:$4 sm:$0xff]   ;;  %v8823_v10 = vld [vmem:[%s11097_s15 + $0xa4] ss:$8 sps:$4 sm:$0xff]  }
 0x538   : > { %v6103_v23 = vrot.slane %v6102_v17, 1  ;;  %v6097_v56 = vadd.f32 %v6096_v0, %v6095_v33  ;;  %v8818_v33 = vld [vmem:[%s11097_s15 + $0x1b0] ss:$8 sps:$4 sm:$0xff]   ;;  %v8821_v0 = vld [vmem:[%s11097_s15 + $0xa0] ss:$8 sps:$4 sm:$0xff]  }
 0x53a   : > { %v6104_v21 = vadd.f32 %v6103_v23, %v6102_v17  ;;  %v6106_v51 = vmul.f32 0.25, %v6097_v56  ;;  %v8826_v17 = vld [vmem:[%s11097_s15 + $0x1a4] ss:$8 sps:$4 sm:$0xff]   ;;  %v8824_v23 = vld [vmem:[%s11097_s15 + $0x1a0] ss:$8 sps:$4 sm:$0xff]  }
 0x53b   : > { %v8827_v56 = vld [vmem:[%s11097_s15 + $0x90] ss:$8 sps:$4 sm:$0xff]  }
 0x53c   : > { %v6107_v45 = vmul.f32 0.25, %v6104_v21  ;;  %v6108_v7 = vpack.c.bf16 %v6106_v51, %v6106_v51  ;;  %v8829_v21 = vld [vmem:[%s11097_s15 + $0x94] ss:$8 sps:$4 sm:$0xff]   ;;  %v8830_v51 = vld [vmem:[%s11097_s15 + $0x190] ss:$8 sps:$4 sm:$0xff]  }
 0x53e   : > { %v6109_v53 = vpack.c.bf16 %v6107_v45, %v6107_v45  ;;  %v8832_v45 = vld [vmem:[%s11097_s15 + $0x194] ss:$8 sps:$4 sm:$0xff]  }
 0x540   : > { %6548 = vmatprep.mubr.bf16.mxu1 %v6109_v53  ;;  %6589 = vmatprep.mubr.bf16.mxu0 %v6109_v53  ;;  %v8835_v53 = vld [vmem:[%s11097_s15 + $0x84] ss:$8 sps:$4 sm:$0xff]  }
 0x541   : > { %6549 = vmatmul.mubr.bf16.vlgmr.msra.gmra.mxu1 %v6108_v7  ;;  %6590 = vmatmul.mubr.bf16.vlgmr.msra.gmra.mxu0 %v6108_v7  ;;  %v8836_v7 = vld [vmem:[%s11097_s15 + $0x180] ss:$8 sps:$4 sm:$0xff]  }
 0x542   : > { %7003 = vmatpush1.bf16.msra.mxu1 %v8743_v19  ;;  %7044 = vmatpush1.bf16.msra.mxu0 %v8746_v15  ;;  %v8838_v19 = vld [vmem:[%s11097_s15 + $0x184] ss:$8 sps:$4 sm:$0xff]   ;;  %v8833_v15 = vld [vmem:[%s11097_s15 + $0x80] ss:$8 sps:$4 sm:$0xff]  }
 0x543   : > { %7004 = vmatprep.subr.bf16.mxu1 %v8751_v55  ;;  %7045 = vmatprep.subr.bf16.mxu0 %v8754_v58  ;;  %v6506_v55 = vsub.s32 2, %v11130_v36  ;;  %v6174_v58 = vld [vmem:[%s11096_s14] sm:$0xf] }
 0x546   : > { %7005 = vmatpush1.bf16.msra.mxu1 %v8749_v1  ;;  %7046 = vmatpush1.bf16.msra.mxu0 %v8752_v6  ;;  %v6510_v1 = vsub.s32 3, %v11130_v36  ;;  %v6499_v6 = vrot.slane %v6174_v58, %v11126_v16 }
 0x547   : > { %7006 = vmatprep.subr.bf16.mxu1 %v8757_v18  ;;  %7047 = vmatprep.subr.bf16.mxu0 %v8760_v60  ;;  %v6507_v18 = vrot.slane %v6174_v58, %v6506_v55  ;;  %v6503_v60 = vrot.slane %v6174_v58, %v10862_v25 }
 0x54a   : > { %7007 = vmatpush1.bf16.msra.mxu1 %v8755_v34  ;;  %7048 = vmatpush1.bf16.msra.mxu0 %v8758_v62  ;;  %v6511_v34 = vrot.slane %v6174_v58, %v6510_v1 }
 0x54b   : > { %7008 = vmatprep.subr.bf16.mxu1 %v8763_v9  ;;  %7049 = vmatprep.subr.bf16.mxu0 %v8766_v63 }
 0x54e   : > { %7009 = vmatpush1.bf16.msra.mxu1 %v8761_v28  ;;  %7050 = vmatpush1.bf16.msra.mxu0 %v8764_v42 }
 0x54f   : > { %7010 = vmatprep.subr.bf16.mxu1 %v8769_v27  ;;  %7051 = vmatprep.subr.bf16.mxu0 %v8772_v31 }
 0x552   : > { %7011 = vmatpush1.bf16.msra.mxu1 %v8767_v29  ;;  %7052 = vmatpush1.bf16.msra.mxu0 %v8770_v2 }
 0x553   : > { %7012 = vmatprep.subr.bf16.mxu1 %v8775_v47  ;;  %7053 = vmatprep.subr.bf16.mxu0 %v8778_v43 }
 0x556   : > { %7013 = vmatpush1.bf16.msra.mxu1 %v8773_v32  ;;  %7054 = vmatpush1.bf16.msra.mxu0 %v8776_v3 }
 0x557   : > { %7014 = vmatprep.subr.bf16.mxu1 %v8781_v59  ;;  %7055 = vmatprep.subr.bf16.mxu0 %v8784_v40 }
 0x55a   : > { %7015 = vmatpush1.bf16.msra.mxu1 %v8779_v54  ;;  %7056 = vmatpush1.bf16.msra.mxu0 %v8782_v61 }
 0x55b   : > { %7016 = vmatprep.subr.bf16.mxu1 %v8787_v37  ;;  %7057 = vmatprep.subr.bf16.mxu0 %v8790_v39 }
 0x55e   : > { %7017 = vmatpush1.bf16.msra.mxu1 %v8785_v20  ;;  %7058 = vmatpush1.bf16.msra.mxu0 %v8788_v4  ;;  %v6670_v20 = vld [vmem:[%s11098_s16] sm:$0x3] }
 0x55f   : > { %7018 = vmatprep.subr.bf16.mxu1 %v8793_v14  ;;  %7059 = vmatprep.subr.bf16.mxu0 %v8796_v49  ;;  %v6995_v4 = vrot.slane %v6670_v20, %v11126_v16  ;;  %v6999_v14 = vrot.slane %v6670_v20, %v10862_v25  ;;  %v11133_v25 = vlaneseq }
 0x561   : > { %vm7104_vm0 = vcmp.lt.s32.totalorder %v11133_v25, 256 }
 0x562   : > { %7019 = vmatpush2.bf16.msra.mxu1 %v8791_v35  ;;  %7060 = vmatpush2.bf16.msra.mxu0 %v8794_v26 }
 0x563   : > { %7020 = vmatprep.subr.bf16.mxu1 %v8799_v44  ;;  %7061 = vmatprep.subr.bf16.mxu0 %v8802_v30 }
 0x566   : > { %7021 = vmatpush2.bf16.msra.mxu1 %v8797_v57  ;;  %7062 = vmatpush2.bf16.msra.mxu0 %v8800_v11 }
 0x567   : > { %7022 = vmatprep.subr.bf16.mxu1 %v8805_v24  ;;  %7063 = vmatprep.subr.bf16.mxu0 %v8808_v48 }
 0x56a   : > { %7023 = vmatpush2.bf16.msra.mxu1 %v8803_v50  ;;  %7064 = vmatpush2.bf16.msra.mxu0 %v8806_v46 }
 0x56b   : > { %7024 = vmatprep.subr.bf16.mxu1 %v8811_v52  ;;  %7065 = vmatprep.subr.bf16.mxu0 %v8814_v12 }
 0x56e   : > { %7025 = vmatpush2.bf16.msra.mxu1 %v8809_v8  ;;  %7066 = vmatpush2.bf16.msra.mxu0 %v8812_v5 }
 0x56f   : > { %7026 = vmatprep.subr.bf16.mxu1 %v8817_v41  ;;  %7067 = vmatprep.subr.bf16.mxu0 %v8820_v22 }
 0x572   : > { %7027 = vmatpush2.bf16.msra.mxu1 %v8815_v13  ;;  %7068 = vmatpush2.bf16.msra.mxu0 %v8818_v33 }
 0x573   : > { %7028 = vmatprep.subr.bf16.mxu1 %v8823_v10  ;;  %7069 = vmatprep.subr.bf16.mxu0 %v8826_v17 }
 0x576   : > { %7029 = vmatpush2.bf16.msra.mxu1 %v8821_v0  ;;  %7070 = vmatpush2.bf16.msra.mxu0 %v8824_v23 }
 0x577   : > { %7030 = vmatprep.subr.bf16.mxu1 %v8829_v21  ;;  %7071 = vmatprep.subr.bf16.mxu0 %v8832_v45 }
 0x57a   : > { %7031 = vmatpush2.bf16.msra.mxu1 %v8827_v56  ;;  %7072 = vmatpush2.bf16.msra.mxu0 %v8830_v51 }
 0x57b   : > { %7032 = vmatprep.subr.bf16.mxu1 %v8835_v53  ;;  %7073 = vmatprep.subr.bf16.mxu0 %v8838_v19 }
 0x57e   : > { %7033 = vmatpush2.bf16.msra.mxu1 %v8833_v15  ;;  %7074 = vmatpush2.bf16.msra.mxu0 %v8836_v7 }
 0x601   : > { %v6550_v62 = vpop.f32.mrf.mxu1  ;;  %v6591_v9 = vpop.f32.mrf.mxu0 }
 0x602   : > { %v6551_v63 = vadd.f32 %v6550_v62, %v6499_v6  ;;  %v6592_v28 = vadd.f32 %v6591_v9, %v6507_v18 }
 0x603   : > { %v6552_v42 = vpop.f32.mrf.mxu1  ;;  %v6593_v27 = vpop.f32.mrf.mxu0 }
 0x604   : > { %v6553_v31 = vadd.f32 %v6552_v42, %v6503_v60  ;;  %v6594_v29 = vadd.f32 %v6593_v27, %v6511_v34  ;;  %v6598_v2 = vmax.f32 %v6551_v63, 0.0  ;;  %v6600_v47 = vmax.f32 %v6592_v28, 0.0 }
 0x605   : > { %v6554_v43 = vpop.f32.mrf.mxu1  ;;  %v6595_v32 = vpop.f32.mrf.mxu0 }
 0x606   : > { %v6599_v36 = vmax.f32 %v6553_v31, 0.0  ;;  %v6601_v3 = vmax.f32 %v6594_v29, 0.0  ;;  %v6602_v37 = vpack.c.bf16 %v6598_v2, %v6598_v2  ;;  %v6604_v39 = vpack.c.bf16 %v6600_v47, %v6600_v47 }
 0x607   : > { %v6555_v59 = vpop.f32.mrf.mxu1  ;;  %v6596_v40 = vpop.f32.mrf.mxu0 }
 0x608   : > { %v6603_v54 = vpack.c.bf16 %v6599_v36, %v6599_v36  ;;  %v6605_v61 = vpack.c.bf16 %v6601_v3, %v6601_v3 }
 0x60a   : > { %7034 = vmatprep.mubr.bf16.mxu1 %v6603_v54  ;;  %7075 = vmatprep.mubr.bf16.mxu0 %v6605_v61 }
 0x60b   : > { %7035 = vmatmul.mubr.bf16.vlgmr.msra.gmra.mxu1 %v6602_v37  ;;  %7076 = vmatmul.mubr.bf16.vlgmr.msra.gmra.mxu0 %v6604_v39 }
 0x6cb   : > { %v7036_v49 = vpop.f32.mrf.mxu1  ;;  %v7077_v35 = vpop.f32.mrf.mxu0 }
 0x6cc   : > { %v7037_v26 = vadd.f32 %v7036_v49, %v6995_v4 }
 0x6cd   : > { %v7038_v44 = vpop.f32.mrf.mxu1  ;;  %v7079_v30 = vpop.f32.mrf.mxu0 }
 0x6ce   : > { %v7039_v57 = vadd.f32 %v7038_v44, %v6999_v14  ;;  %v7078_v48 = vadd.f32 %v7077_v35, %v7037_v26 }
 0x6cf   : > { %v7040_v11 = vpop.f32.mrf.mxu1  ;;  %v7081_v24 = vpop.f32.mrf.mxu0 }
 0x6d0   : > { %v7080_v50 = vadd.f32 %v7079_v30, %v7039_v57 }
 0x6d1   : > { %v7041_v46 = vpop.f32.mrf.mxu1  ;;  %v7082_v52 = vpop.f32.mrf.mxu0 }
 0x6d2   : > { %v7086_v12 = vcombine.low %v7078_v48, %v7080_v50 }
 0x6d4   : > { %v7093_v16 = vrot.slane %v7086_v12, %v10222_v38 }
 0x6d6   : > { %v7100_v8 = vrot.slane %v7093_v16, %v10222_v38 }
 0x6d8   : > { %7106 = vst.msk [vmem:[%s548_s21] sm:$0x3] %vm7104_vm0, %v7100_v8 }
 0x6d9 PF: > { %s27_s24 = sadd.s32 1, %s8846_s24  }
 0x6da   : > { %p24_p5 = scmp.ge.s32.totalorder %s27_s24, 4  }
 0x6dc   :  { %26 = sbr.rel (!%p24_p5) target bundleno = 3 (0x3), region = 142 }

</bundles_post_ra>
